<compile_context>
chip_gen: v7x
topology: tpu7x:2x2x1
jax: 0.10.0
libtpu: 0.0.40
codegen_flags: <defaults>
</compile_context>

<pallas_src>
import functools

import jax
import jax.numpy as jnp
from jax import lax
from jax.experimental import pallas as pl
from jax.experimental.pallas import tpu as pltpu


def _make_fused_kernel(H, W, n_imgs, layer_cfg, margin_l):
    """Fused 6-layer conv3x3(+BN)+act kernel over `n_imgs` lane-folded images.

    layer_cfg: tuple of (cin, cout, act) per layer; cin is the (8-padded)
    channel count actually stored for that layer's input.
    """
    Wp = W + 2
    P = (H + 2) * Wp          # flattened padded image size
    Pl = n_imgs * P           # lanes handled per grid step (batch folded in)
    n_layers = len(layer_cfg)
    # 3x3 tap offsets in the flattened padded image (dy outer, dx inner —
    # must match the (9, Cout, Cin) per-tap weight packing below).
    offsets = [(dy - 1) * Wp + (dx - 1) for dy in range(3) for dx in range(3)]

    def kernel(*refs):
        x_ref, mask_ref = refs[0], refs[1]
        w_refs = refs[2:2 + n_layers]
        b_refs = refs[2 + n_layers:2 + 2 * n_layers]
        o_ref = refs[2 + 2 * n_layers]
        buf_a, buf_b = refs[2 + 2 * n_layers + 1:]

        # Zero the scratch once: only the margins ever stay stale afterwards,
        # and margin reads only feed border outputs that are re-masked below
        # (or sliced off outside the kernel for the final layer).
        @pl.when(pl.program_id(0) == 0)
        def _():
            buf_a[...] = jnp.zeros_like(buf_a)
            buf_b[...] = jnp.zeros_like(buf_b)

        keep = mask_ref[...] != 0.0          # (1, Pl): interior of each slab
        bufs = (buf_a, buf_b)

        for li, (cin, cout, act) in enumerate(layer_cfg):
            # ---- 9 per-tap MXU matmuls, accumulated in f32; operands bf16.
            #      No im2col staging buffer: slices feed the MXU directly. ----
            acc = None
            for t, off in enumerate(offsets):
                s = margin_l + off
                if li == 0:
                    sl = x_ref[0, 0:cin, s:s + Pl]
                else:
                    sl = bufs[(li + 1) % 2][0:cin, s:s + Pl]
                part = jnp.dot(w_refs[li][t], sl.astype(jnp.bfloat16),
                               preferred_element_type=jnp.float32)
                acc = part if acc is None else acc + part

            y = acc + b_refs[li][...]        # folded conv-bias / BatchNorm bias

            if act == "leaky_relu":
                y = jnp.where(y >= 0.0, y, 0.01 * y)
                # Re-zero the 1-pixel border: this buffer is then directly the
                # next layer's zero-padded input.
                y = jnp.where(keep, y, 0.0)
                bufs[li % 2][0:cout, margin_l:margin_l + Pl] = y
            else:                            # final layer: Sigmoid -> output
                o_ref[...] = jax.nn.sigmoid(y).reshape(1, cout, Pl)

    return kernel


def _single_tensorcore_chip():
    """True for single-TensorCore chips (v5e / v6e): fold the batch into lanes
    there; keep the 2-way parallel batch grid on multi-TC chips (v7x, ...)."""
    try:
        kind = jax.devices()[0].device_kind.lower()
    except Exception:
        return False
    return any(t in kind for t in
               ("v5e", "v5 lite", "v5lite", "v6e", "v6 lite", "v6lite"))


@functools.partial(jax.jit, static_argnames="fold_batch")
def _reveal_net_forward_impl(x, weights, biases, fold_batch):
    N, C, H, W = x.shape
    Hp, Wp = H + 2, W + 2
    P = Hp * Wp
    NB = N if fold_batch else 1      # images folded into lanes per grid step
    n_steps = N // NB
    Pl = NB * P
    margin_l = 128                   # lane-aligned inter-layer stores
    margin_r = Wp + 1                # largest positive 3x3 tap offset
    tot = margin_l + Pl + margin_r

    # weights[i] is (9, cout, cin_pad) bf16; biases[i] is (cout, 1) f32.
    cfg = tuple((w.shape[2], w.shape[1],
                 "leaky_relu" if i < len(weights) - 1 else "sigmoid")
                for i, w in enumerate(weights))
    cin0 = cfg[0][0]
    c_out = cfg[-1][1]
    c_max = max(max(ci, co) for ci, co, _ in cfg)

    # Flattened, margin-padded input; batch (optionally) folded into lanes.
    # Channels padded up to cin0 (multiple of 8); done once on the input only.
    xp = jnp.pad(x, ((0, 0), (0, cin0 - C), (1, 1), (1, 1)))        # (N,cin0,Hp,Wp)
    xf = xp.reshape(n_steps, NB, cin0, P).transpose(0, 2, 1, 3)
    xf = xf.reshape(n_steps, cin0, Pl)
    x_flat = jnp.pad(xf, ((0, 0), (0, 0), (margin_l, margin_r)))

    # Interior (non-border) mask over the flattened padded slabs.
    idx = jnp.arange(P, dtype=jnp.int32)
    rows, cols = idx // Wp, idx % Wp
    interior = (rows >= 1) & (rows <= H) & (cols >= 1) & (cols <= W)
    mask = jnp.tile(interior.astype(jnp.float32).reshape(1, P), (1, NB))

    kernel = _make_fused_kernel(H, W, NB, cfg, margin_l)

    in_specs = (
        [pl.BlockSpec((1, cin0, tot), lambda n: (n, 0, 0)),
         pl.BlockSpec((1, Pl), lambda n: (0, 0))]
        + [pl.BlockSpec(w.shape, lambda n: (0, 0, 0)) for w in weights]
        + [pl.BlockSpec(b.shape, lambda n: (0, 0)) for b in biases]
    )

    out_flat = pl.pallas_call(
        kernel,
        out_shape=jax.ShapeDtypeStruct((n_steps, c_out, Pl), jnp.float32),
        grid_spec=pltpu.PrefetchScalarGridSpec(
            num_scalar_prefetch=0,
            grid=(n_steps,),
            in_specs=in_specs,
            out_specs=pl.BlockSpec((1, c_out, Pl), lambda n: (n, 0, 0)),
            scratch_shapes=[
                pltpu.VMEM((c_max, tot), jnp.float32),   # activation ping
                pltpu.VMEM((c_max, tot), jnp.float32),   # activation pong
            ],
        ),
        compiler_params=pltpu.CompilerParams(
            dimension_semantics=(("parallel",) if n_steps > 1
                                 else ("arbitrary",))),
    )(x_flat, mask, *weights, *biases)

    out = out_flat.reshape(n_steps, c_out, NB, Hp, Wp).transpose(0, 2, 1, 3, 4)
    return out.reshape(N, c_out, Hp, Wp)[:, :, 1:H + 1, 1:W + 1]


def reveal_net_forward(x, weights, biases):
    """x: (N, C, H, W) float32 (NCHW, like PyTorch) -> (N, C, H, W) in [0, 1]."""
    return _reveal_net_forward_impl(x, weights, biases,
                                    fold_batch=_single_tensorcore_chip())


def make_reveal_net_params(key, nc=3, nhf=8):
    """Synthetic parameters matching RevealNet's layer shapes.

    Returns kernel-ready (weights, biases) plus raw per-layer params for the
    pure-JAX reference.  BatchNorm is folded in eval/inference mode.
    """
    channels = [nc, nhf, nhf * 2, nhf * 4, nhf * 2, nhf, nc]
    eps = 1e-5
    weights, biases, raw = [], [], []
    for i in range(6):
        cin, cout = channels[i], channels[i + 1]
        key, k_w, k_b, k_g, k_be, k_m, k_v = jax.random.split(key, 7)
        w = 0.1 * jax.random.normal(k_w, (3, 3, cin, cout), jnp.float32)  # HWIO
        conv_b = 0.1 * jax.random.normal(k_b, (cout,), jnp.float32)
        if i < 5:
            gamma = 1.0 + 0.1 * jax.random.normal(k_g, (cout,), jnp.float32)
            beta = 0.1 * jax.random.normal(k_be, (cout,), jnp.float32)
            mean = 0.1 * jax.random.normal(k_m, (cout,), jnp.float32)
            var = jnp.abs(jax.random.normal(k_v, (cout,), jnp.float32)) + 0.5
            scale = gamma / jnp.sqrt(var + eps)      # BN eval-mode fold
            bias = (conv_b - mean) * scale + beta
            act = "leaky_relu"
        else:
            scale = jnp.ones((cout,), jnp.float32)
            bias = conv_b
            act = "sigmoid"
        raw.append((w, scale, bias, act))

        # Kernel-ready weight: BN scale pre-folded, input channels padded to a
        # multiple of 8, packed per 3x3 tap as (9, Cout, Cin_pad) and cast to
        # bf16 for single-pass MXU matmuls (accumulation stays f32 in-kernel).
        cin_pad = -(-cin // 8) * 8
        w_f = w * scale[None, None, None, :]
        if cin_pad != cin:
            w_f = jnp.pad(w_f, ((0, 0), (0, 0), (0, cin_pad - cin), (0, 0)))
        w_tap = jnp.transpose(w_f, (0, 1, 3, 2)).reshape(9, cout, cin_pad)
        weights.append(w_tap.astype(jnp.bfloat16))
        biases.append(bias.reshape(cout, 1))
    return weights, biases, raw, key


def reveal_net_reference(x, raw_params):
    """Pure-JAX NCHW reference (lax.conv + folded BN + activation)."""
    y = x
    for w_hwio, scale, bias, act in raw_params:
        w_oihw = jnp.transpose(w_hwio, (3, 2, 0, 1))
        y = lax.conv_general_dilated(
            y, w_oihw, window_strides=(1, 1), padding=((1, 1), (1, 1)),
            dimension_numbers=("NCHW", "OIHW", "NCHW"),
            precision=lax.Precision.HIGHEST)
        y = y * scale[None, :, None, None] + bias[None, :, None, None]
        if act == "leaky_relu":
            y = jnp.where(y >= 0.0, y, 0.01 * y)
        else:
            y = jax.nn.sigmoid(y)
    return y


if __name__ == "__main__":
    nc, nhf = 3, 8                 # small synthetic sizes (PyTorch default nc=3)
    N, H, W = 2, 16, 16

    key = jax.random.PRNGKey(0)
    weights, biases, raw, key = make_reveal_net_params(key, nc=nc, nhf=nhf)

    key, kx = jax.random.split(key)
    x = jax.random.normal(kx, (N, nc, H, W), jnp.float32)   # NCHW, like PyTorch

    out = jax.block_until_ready(reveal_net_forward(x, weights, biases))

    assert out.shape == (N, nc, H, W)
    assert bool(jnp.all(jnp.isfinite(out)))

    ref = reveal_net_reference(x, raw)
    max_err = float(jnp.max(jnp.abs(out - ref)))
    assert max_err < 3e-2, f"kernel vs reference mismatch: {max_err}"

    print("KERNEL_OK")
</pallas_src>

<mosaic_0001>
module attributes {stable_mosaic.version = 11 : i64} {
  func.func @kernel(%arg0: i32, %arg1: memref<1x8x471xf32, #tpu.memory_space<vmem>>, %arg2: memref<1x324xf32, #tpu.memory_space<vmem>>, %arg3: memref<9x8x8xbf16, #tpu.memory_space<vmem>>, %arg4: memref<9x16x8xbf16, #tpu.memory_space<vmem>>, %arg5: memref<9x32x16xbf16, #tpu.memory_space<vmem>>, %arg6: memref<9x16x32xbf16, #tpu.memory_space<vmem>>, %arg7: memref<9x8x16xbf16, #tpu.memory_space<vmem>>, %arg8: memref<9x3x8xbf16, #tpu.memory_space<vmem>>, %arg9: memref<8x1xf32, #tpu.memory_space<vmem>>, %arg10: memref<16x1xf32, #tpu.memory_space<vmem>>, %arg11: memref<32x1xf32, #tpu.memory_space<vmem>>, %arg12: memref<16x1xf32, #tpu.memory_space<vmem>>, %arg13: memref<8x1xf32, #tpu.memory_space<vmem>>, %arg14: memref<3x1xf32, #tpu.memory_space<vmem>>, %arg15: memref<1x3x324xf32, #tpu.memory_space<vmem>>, %arg16: memref<32x471xf32, #tpu.memory_space<vmem>>, %arg17: memref<32x471xf32, #tpu.memory_space<vmem>>) attributes {dimension_semantics = [#tpu.dimension_semantics<parallel>], iteration_bounds = array<i64: 2>, scalar_prefetch = 0 : i64, scratch_operands = 2 : i64, tpu.core_type = #tpu.core_type<tc>, window_params = [{transform_indices = @transform_0, window_bounds = array<i64: 1, 8, 471>}, {pipeline_mode = #tpu.pipeline_mode<synchronous>, transform_indices = @transform_1, window_bounds = array<i64: 1, 324>}, {pipeline_mode = #tpu.pipeline_mode<synchronous>, transform_indices = @transform_2, window_bounds = array<i64: 9, 8, 8>}, {pipeline_mode = #tpu.pipeline_mode<synchronous>, transform_indices = @transform_3, window_bounds = array<i64: 9, 16, 8>}, {pipeline_mode = #tpu.pipeline_mode<synchronous>, transform_indices = @transform_4, window_bounds = array<i64: 9, 32, 16>}, {pipeline_mode = #tpu.pipeline_mode<synchronous>, transform_indices = @transform_5, window_bounds = array<i64: 9, 16, 32>}, {pipeline_mode = #tpu.pipeline_mode<synchronous>, transform_indices = @transform_6, window_bounds = array<i64: 9, 8, 16>}, {pipeline_mode = #tpu.pipeline_mode<synchronous>, transform_indices = @transform_7, window_bounds = array<i64: 9, 3, 8>}, {pipeline_mode = #tpu.pipeline_mode<synchronous>, transform_indices = @transform_8, window_bounds = array<i64: 8, 1>}, {pipeline_mode = #tpu.pipeline_mode<synchronous>, transform_indices = @transform_9, window_bounds = array<i64: 16, 1>}, {pipeline_mode = #tpu.pipeline_mode<synchronous>, transform_indices = @transform_10, window_bounds = array<i64: 32, 1>}, {pipeline_mode = #tpu.pipeline_mode<synchronous>, transform_indices = @transform_11, window_bounds = array<i64: 16, 1>}, {pipeline_mode = #tpu.pipeline_mode<synchronous>, transform_indices = @transform_12, window_bounds = array<i64: 8, 1>}, {pipeline_mode = #tpu.pipeline_mode<synchronous>, transform_indices = @transform_13, window_bounds = array<i64: 3, 1>}, {transform_indices = @transform_14, window_bounds = array<i64: 1, 3, 324>}]} {
    %c0_i32 = arith.constant 0 : i32
    %0 = arith.cmpi eq, %arg0, %c0_i32 : i32
    %1 = arith.extui %0 : i1 to i32
    %c0_i32_0 = arith.constant 0 : i32
    %2 = arith.cmpi ne, %1, %c0_i32_0 : i32
    scf.if %2 {
      %cst_359 = arith.constant 0.000000e+00 : f32
      %408 = vector.broadcast %cst_359 : f32 to vector<32x471xf32>
      %c0_360 = arith.constant 0 : index
      %c0_361 = arith.constant 0 : index
      %409 = vector.load %arg16[%c0_360, %c0_361] : memref<32x471xf32, #tpu.memory_space<vmem>>, vector<32x471xf32>
      tpu.vector_store %arg16[%c0_360, %c0_361], %408 {strides = array<i32>} : memref<32x471xf32, #tpu.memory_space<vmem>>, vector<32x471xf32>,
      %cst_362 = arith.constant 0.000000e+00 : f32
      %410 = vector.broadcast %cst_362 : f32 to vector<32x471xf32>
      %c0_363 = arith.constant 0 : index
      %c0_364 = arith.constant 0 : index
      %411 = vector.load %arg17[%c0_363, %c0_364] : memref<32x471xf32, #tpu.memory_space<vmem>>, vector<32x471xf32>
      tpu.vector_store %arg17[%c0_363, %c0_364], %410 {strides = array<i32>} : memref<32x471xf32, #tpu.memory_space<vmem>>, vector<32x471xf32>,
    } else {
    }
    %c0 = arith.constant 0 : index
    %c0_1 = arith.constant 0 : index
    %3 = vector.load %arg2[%c0, %c0_1] : memref<1x324xf32, #tpu.memory_space<vmem>>, vector<1x324xf32>
    %cst = arith.constant 0.000000e+00 : f32
    %4 = vector.broadcast %cst : f32 to vector<1x324xf32>
    %5 = arith.cmpf one, %3, %4 : vector<1x324xf32>
    %c0_2 = arith.constant 0 : index
    %c0_3 = arith.constant 0 : index
    %c109 = arith.constant 109 : index
    %6 = vector.load %arg1[%c0_2, %c0_3, %c109] : memref<1x8x471xf32, #tpu.memory_space<vmem>>, vector<1x8x324xf32>
    %7 = vector.shape_cast %6 : vector<1x8x324xf32> to vector<8x324xf32>
    %c0_4 = arith.constant 0 : index
    %c0_5 = arith.constant 0 : index
    %c0_6 = arith.constant 0 : index
    %8 = vector.load %arg3[%c0_4, %c0_5, %c0_6] : memref<9x8x8xbf16, #tpu.memory_space<vmem>>, vector<1x8x8xbf16>
    %9 = vector.shape_cast %8 : vector<1x8x8xbf16> to vector<8x8xbf16>
    %10 = arith.truncf %7 : vector<8x324xf32> to vector<8x324xbf16>
    %cst_7 = arith.constant dense<0.000000e+00> : vector<8x324xf32>
    %11 = tpu.matmul %9, %10, %cst_7 {dimension_numbers = #tpu.dot_dimension_numbers<[1], [0], [0], [1], [0, 0, 1, 1], [], []>} : vector<8x8xbf16>, vector<8x324xbf16>, vector<8x324xf32> -> vector<8x324xf32>
    %c0_8 = arith.constant 0 : index
    %c0_9 = arith.constant 0 : index
    %c110 = arith.constant 110 : index
    %12 = vector.load %arg1[%c0_8, %c0_9, %c110] : memref<1x8x471xf32, #tpu.memory_space<vmem>>, vector<1x8x324xf32>
    %13 = vector.shape_cast %12 : vector<1x8x324xf32> to vector<8x324xf32>
    %c1 = arith.constant 1 : index
    %c0_10 = arith.constant 0 : index
    %c0_11 = arith.constant 0 : index
    %14 = vector.load %arg3[%c1, %c0_10, %c0_11] : memref<9x8x8xbf16, #tpu.memory_space<vmem>>, vector<1x8x8xbf16>
    %15 = vector.shape_cast %14 : vector<1x8x8xbf16> to vector<8x8xbf16>
    %16 = arith.truncf %13 : vector<8x324xf32> to vector<8x324xbf16>
    %cst_12 = arith.constant dense<0.000000e+00> : vector<8x324xf32>
    %17 = tpu.matmul %15, %16, %cst_12 {dimension_numbers = #tpu.dot_dimension_numbers<[1], [0], [0], [1], [0, 0, 1, 1], [], []>} : vector<8x8xbf16>, vector<8x324xbf16>, vector<8x324xf32> -> vector<8x324xf32>
    %18 = arith.addf %11, %17 : vector<8x324xf32>
    %c0_13 = arith.constant 0 : index
    %c0_14 = arith.constant 0 : index
    %c111 = arith.constant 111 : index
    %19 = vector.load %arg1[%c0_13, %c0_14, %c111] : memref<1x8x471xf32, #tpu.memory_space<vmem>>, vector<1x8x324xf32>
    %20 = vector.shape_cast %19 : vector<1x8x324xf32> to vector<8x324xf32>
    %c2 = arith.constant 2 : index
    %c0_15 = arith.constant 0 : index
    %c0_16 = arith.constant 0 : index
    %21 = vector.load %arg3[%c2, %c0_15, %c0_16] : memref<9x8x8xbf16, #tpu.memory_space<vmem>>, vector<1x8x8xbf16>
    %22 = vector.shape_cast %21 : vector<1x8x8xbf16> to vector<8x8xbf16>
    %23 = arith.truncf %20 : vector<8x324xf32> to vector<8x324xbf16>
    %cst_17 = arith.constant dense<0.000000e+00> : vector<8x324xf32>
    %24 = tpu.matmul %22, %23, %cst_17 {dimension_numbers = #tpu.dot_dimension_numbers<[1], [0], [0], [1], [0, 0, 1, 1], [], []>} : vector<8x8xbf16>, vector<8x324xbf16>, vector<8x324xf32> -> vector<8x324xf32>
    %25 = arith.addf %18, %24 : vector<8x324xf32>
    %c0_18 = arith.constant 0 : index
    %c0_19 = arith.constant 0 : index
    %c127 = arith.constant 127 : index
    %26 = vector.load %arg1[%c0_18, %c0_19, %c127] : memref<1x8x471xf32, #tpu.memory_space<vmem>>, vector<1x8x324xf32>
    %27 = vector.shape_cast %26 : vector<1x8x324xf32> to vector<8x324xf32>
    %c3 = arith.constant 3 : index
    %c0_20 = arith.constant 0 : index
    %c0_21 = arith.constant 0 : index
    %28 = vector.load %arg3[%c3, %c0_20, %c0_21] : memref<9x8x8xbf16, #tpu.memory_space<vmem>>, vector<1x8x8xbf16>
    %29 = vector.shape_cast %28 : vector<1x8x8xbf16> to vector<8x8xbf16>
    %30 = arith.truncf %27 : vector<8x324xf32> to vector<8x324xbf16>
    %cst_22 = arith.constant dense<0.000000e+00> : vector<8x324xf32>
    %31 = tpu.matmul %29, %30, %cst_22 {dimension_numbers = #tpu.dot_dimension_numbers<[1], [0], [0], [1], [0, 0, 1, 1], [], []>} : vector<8x8xbf16>, vector<8x324xbf16>, vector<8x324xf32> -> vector<8x324xf32>
    %32 = arith.addf %25, %31 : vector<8x324xf32>
    %c0_23 = arith.constant 0 : index
    %c0_24 = arith.constant 0 : index
    %c128 = arith.constant 128 : index
    %33 = vector.load %arg1[%c0_23, %c0_24, %c128] : memref<1x8x471xf32, #tpu.memory_space<vmem>>, vector<1x8x324xf32>
    %34 = vector.shape_cast %33 : vector<1x8x324xf32> to vector<8x324xf32>
    %c4 = arith.constant 4 : index
    %c0_25 = arith.constant 0 : index
    %c0_26 = arith.constant 0 : index
    %35 = vector.load %arg3[%c4, %c0_25, %c0_26] : memref<9x8x8xbf16, #tpu.memory_space<vmem>>, vector<1x8x8xbf16>
    %36 = vector.shape_cast %35 : vector<1x8x8xbf16> to vector<8x8xbf16>
    %37 = arith.truncf %34 : vector<8x324xf32> to vector<8x324xbf16>
    %cst_27 = arith.constant dense<0.000000e+00> : vector<8x324xf32>
    %38 = tpu.matmul %36, %37, %cst_27 {dimension_numbers = #tpu.dot_dimension_numbers<[1], [0], [0], [1], [0, 0, 1, 1], [], []>} : vector<8x8xbf16>, vector<8x324xbf16>, vector<8x324xf32> -> vector<8x324xf32>
    %39 = arith.addf %32, %38 : vector<8x324xf32>
    %c0_28 = arith.constant 0 : index
    %c0_29 = arith.constant 0 : index
    %c129 = arith.constant 129 : index
    %40 = vector.load %arg1[%c0_28, %c0_29, %c129] : memref<1x8x471xf32, #tpu.memory_space<vmem>>, vector<1x8x324xf32>
    %41 = vector.shape_cast %40 : vector<1x8x324xf32> to vector<8x324xf32>
    %c5 = arith.constant 5 : index
    %c0_30 = arith.constant 0 : index
    %c0_31 = arith.constant 0 : index
    %42 = vector.load %arg3[%c5, %c0_30, %c0_31] : memref<9x8x8xbf16, #tpu.memory_space<vmem>>, vector<1x8x8xbf16>
    %43 = vector.shape_cast %42 : vector<1x8x8xbf16> to vector<8x8xbf16>
    %44 = arith.truncf %41 : vector<8x324xf32> to vector<8x324xbf16>
    %cst_32 = arith.constant dense<0.000000e+00> : vector<8x324xf32>
    %45 = tpu.matmul %43, %44, %cst_32 {dimension_numbers = #tpu.dot_dimension_numbers<[1], [0], [0], [1], [0, 0, 1, 1], [], []>} : vector<8x8xbf16>, vector<8x324xbf16>, vector<8x324xf32> -> vector<8x324xf32>
    %46 = arith.addf %39, %45 : vector<8x324xf32>
    %c0_33 = arith.constant 0 : index
    %c0_34 = arith.constant 0 : index
    %c145 = arith.constant 145 : index
    %47 = vector.load %arg1[%c0_33, %c0_34, %c145] : memref<1x8x471xf32, #tpu.memory_space<vmem>>, vector<1x8x324xf32>
    %48 = vector.shape_cast %47 : vector<1x8x324xf32> to vector<8x324xf32>
    %c6 = arith.constant 6 : index
    %c0_35 = arith.constant 0 : index
    %c0_36 = arith.constant 0 : index
    %49 = vector.load %arg3[%c6, %c0_35, %c0_36] : memref<9x8x8xbf16, #tpu.memory_space<vmem>>, vector<1x8x8xbf16>
    %50 = vector.shape_cast %49 : vector<1x8x8xbf16> to vector<8x8xbf16>
    %51 = arith.truncf %48 : vector<8x324xf32> to vector<8x324xbf16>
    %cst_37 = arith.constant dense<0.000000e+00> : vector<8x324xf32>
    %52 = tpu.matmul %50, %51, %cst_37 {dimension_numbers = #tpu.dot_dimension_numbers<[1], [0], [0], [1], [0, 0, 1, 1], [], []>} : vector<8x8xbf16>, vector<8x324xbf16>, vector<8x324xf32> -> vector<8x324xf32>
    %53 = arith.addf %46, %52 : vector<8x324xf32>
    %c0_38 = arith.constant 0 : index
    %c0_39 = arith.constant 0 : index
    %c146 = arith.constant 146 : index
    %54 = vector.load %arg1[%c0_38, %c0_39, %c146] : memref<1x8x471xf32, #tpu.memory_space<vmem>>, vector<1x8x324xf32>
    %55 = vector.shape_cast %54 : vector<1x8x324xf32> to vector<8x324xf32>
    %c7 = arith.constant 7 : index
    %c0_40 = arith.constant 0 : index
    %c0_41 = arith.constant 0 : index
    %56 = vector.load %arg3[%c7, %c0_40, %c0_41] : memref<9x8x8xbf16, #tpu.memory_space<vmem>>, vector<1x8x8xbf16>
    %57 = vector.shape_cast %56 : vector<1x8x8xbf16> to vector<8x8xbf16>
    %58 = arith.truncf %55 : vector<8x324xf32> to vector<8x324xbf16>
    %cst_42 = arith.constant dense<0.000000e+00> : vector<8x324xf32>
    %59 = tpu.matmul %57, %58, %cst_42 {dimension_numbers = #tpu.dot_dimension_numbers<[1], [0], [0], [1], [0, 0, 1, 1], [], []>} : vector<8x8xbf16>, vector<8x324xbf16>, vector<8x324xf32> -> vector<8x324xf32>
    %60 = arith.addf %53, %59 : vector<8x324xf32>
    %c0_43 = arith.constant 0 : index
    %c0_44 = arith.constant 0 : index
    %c147 = arith.constant 147 : index
    %61 = vector.load %arg1[%c0_43, %c0_44, %c147] : memref<1x8x471xf32, #tpu.memory_space<vmem>>, vector<1x8x324xf32>
    %62 = vector.shape_cast %61 : vector<1x8x324xf32> to vector<8x324xf32>
    %c8 = arith.constant 8 : index
    %c0_45 = arith.constant 0 : index
    %c0_46 = arith.constant 0 : index
    %63 = vector.load %arg3[%c8, %c0_45, %c0_46] : memref<9x8x8xbf16, #tpu.memory_space<vmem>>, vector<1x8x8xbf16>
    %64 = vector.shape_cast %63 : vector<1x8x8xbf16> to vector<8x8xbf16>
    %65 = arith.truncf %62 : vector<8x324xf32> to vector<8x324xbf16>
    %cst_47 = arith.constant dense<0.000000e+00> : vector<8x324xf32>
    %66 = tpu.matmul %64, %65, %cst_47 {dimension_numbers = #tpu.dot_dimension_numbers<[1], [0], [0], [1], [0, 0, 1, 1], [], []>} : vector<8x8xbf16>, vector<8x324xbf16>, vector<8x324xf32> -> vector<8x324xf32>
    %67 = arith.addf %60, %66 : vector<8x324xf32>
    %c0_48 = arith.constant 0 : index
    %c0_49 = arith.constant 0 : index
    %68 = vector.load %arg9[%c0_48, %c0_49] : memref<8x1xf32, #tpu.memory_space<vmem>>, vector<8x1xf32>
    %69 = vector.broadcast %68 : vector<8x1xf32> to vector<8x324xf32>
    %70 = arith.addf %67, %69 : vector<8x324xf32>
    %cst_50 = arith.constant 0.000000e+00 : f32
    %71 = vector.broadcast %cst_50 : f32 to vector<8x324xf32>
    %72 = arith.cmpf oge, %70, %71 : vector<8x324xf32>
    %cst_51 = arith.constant 0.00999999977 : f32
    %73 = vector.broadcast %cst_51 : f32 to vector<8x324xf32>
    %74 = arith.mulf %73, %70 : vector<8x324xf32>
    %75 = arith.select %72, %70, %74 : vector<8x324xi1>, vector<8x324xf32>
    %cst_52 = arith.constant 0.000000e+00 : f32
    %76 = vector.shape_cast %5 : vector<1x324xi1> to vector<1x324xi1>
    %77 = vector.broadcast %76 : vector<1x324xi1> to vector<8x324xi1>
    %78 = vector.broadcast %cst_52 : f32 to vector<8x324xf32>
    %79 = arith.select %77, %75, %78 : vector<8x324xi1>, vector<8x324xf32>
    %c0_53 = arith.constant 0 : index
    %c128_54 = arith.constant 128 : index
    %80 = vector.load %arg16[%c0_53, %c128_54] : memref<32x471xf32, #tpu.memory_space<vmem>>, vector<8x324xf32>
    tpu.vector_store %arg16[%c0_53, %c128_54], %79 {strides = array<i32>} : memref<32x471xf32, #tpu.memory_space<vmem>>, vector<8x324xf32>,
    %c0_55 = arith.constant 0 : index
    %c109_56 = arith.constant 109 : index
    %81 = vector.load %arg16[%c0_55, %c109_56] : memref<32x471xf32, #tpu.memory_space<vmem>>, vector<8x324xf32>
    %c0_57 = arith.constant 0 : index
    %c0_58 = arith.constant 0 : index
    %c0_59 = arith.constant 0 : index
    %82 = vector.load %arg4[%c0_57, %c0_58, %c0_59] : memref<9x16x8xbf16, #tpu.memory_space<vmem>>, vector<1x16x8xbf16>
    %83 = vector.shape_cast %82 : vector<1x16x8xbf16> to vector<16x8xbf16>
    %84 = arith.truncf %81 : vector<8x324xf32> to vector<8x324xbf16>
    %cst_60 = arith.constant dense<0.000000e+00> : vector<16x324xf32>
    %85 = tpu.matmul %83, %84, %cst_60 {dimension_numbers = #tpu.dot_dimension_numbers<[1], [0], [0], [1], [0, 0, 1, 1], [], []>} : vector<16x8xbf16>, vector<8x324xbf16>, vector<16x324xf32> -> vector<16x324xf32>
    %c0_61 = arith.constant 0 : index
    %c110_62 = arith.constant 110 : index
    %86 = vector.load %arg16[%c0_61, %c110_62] : memref<32x471xf32, #tpu.memory_space<vmem>>, vector<8x324xf32>
    %c1_63 = arith.constant 1 : index
    %c0_64 = arith.constant 0 : index
    %c0_65 = arith.constant 0 : index
    %87 = vector.load %arg4[%c1_63, %c0_64, %c0_65] : memref<9x16x8xbf16, #tpu.memory_space<vmem>>, vector<1x16x8xbf16>
    %88 = vector.shape_cast %87 : vector<1x16x8xbf16> to vector<16x8xbf16>
    %89 = arith.truncf %86 : vector<8x324xf32> to vector<8x324xbf16>
    %cst_66 = arith.constant dense<0.000000e+00> : vector<16x324xf32>
    %90 = tpu.matmul %88, %89, %cst_66 {dimension_numbers = #tpu.dot_dimension_numbers<[1], [0], [0], [1], [0, 0, 1, 1], [], []>} : vector<16x8xbf16>, vector<8x324xbf16>, vector<16x324xf32> -> vector<16x324xf32>
    %91 = arith.addf %85, %90 : vector<16x324xf32>
    %c0_67 = arith.constant 0 : index
    %c111_68 = arith.constant 111 : index
    %92 = vector.load %arg16[%c0_67, %c111_68] : memref<32x471xf32, #tpu.memory_space<vmem>>, vector<8x324xf32>
    %c2_69 = arith.constant 2 : index
    %c0_70 = arith.constant 0 : index
    %c0_71 = arith.constant 0 : index
    %93 = vector.load %arg4[%c2_69, %c0_70, %c0_71] : memref<9x16x8xbf16, #tpu.memory_space<vmem>>, vector<1x16x8xbf16>
    %94 = vector.shape_cast %93 : vector<1x16x8xbf16> to vector<16x8xbf16>
    %95 = arith.truncf %92 : vector<8x324xf32> to vector<8x324xbf16>
    %cst_72 = arith.constant dense<0.000000e+00> : vector<16x324xf32>
    %96 = tpu.matmul %94, %95, %cst_72 {dimension_numbers = #tpu.dot_dimension_numbers<[1], [0], [0], [1], [0, 0, 1, 1], [], []>} : vector<16x8xbf16>, vector<8x324xbf16>, vector<16x324xf32> -> vector<16x324xf32>
    %97 = arith.addf %91, %96 : vector<16x324xf32>
    %c0_73 = arith.constant 0 : index
    %c127_74 = arith.constant 127 : index
    %98 = vector.load %arg16[%c0_73, %c127_74] : memref<32x471xf32, #tpu.memory_space<vmem>>, vector<8x324xf32>
    %c3_75 = arith.constant 3 : index
    %c0_76 = arith.constant 0 : index
    %c0_77 = arith.constant 0 : index
    %99 = vector.load %arg4[%c3_75, %c0_76, %c0_77] : memref<9x16x8xbf16, #tpu.memory_space<vmem>>, vector<1x16x8xbf16>
    %100 = vector.shape_cast %99 : vector<1x16x8xbf16> to vector<16x8xbf16>
    %101 = arith.truncf %98 : vector<8x324xf32> to vector<8x324xbf16>
    %cst_78 = arith.constant dense<0.000000e+00> : vector<16x324xf32>
    %102 = tpu.matmul %100, %101, %cst_78 {dimension_numbers = #tpu.dot_dimension_numbers<[1], [0], [0], [1], [0, 0, 1, 1], [], []>} : vector<16x8xbf16>, vector<8x324xbf16>, vector<16x324xf32> -> vector<16x324xf32>
    %103 = arith.addf %97, %102 : vector<16x324xf32>
    %c0_79 = arith.constant 0 : index
    %c128_80 = arith.constant 128 : index
    %104 = vector.load %arg16[%c0_79, %c128_80] : memref<32x471xf32, #tpu.memory_space<vmem>>, vector<8x324xf32>
    %c4_81 = arith.constant 4 : index
    %c0_82 = arith.constant 0 : index
    %c0_83 = arith.constant 0 : index
    %105 = vector.load %arg4[%c4_81, %c0_82, %c0_83] : memref<9x16x8xbf16, #tpu.memory_space<vmem>>, vector<1x16x8xbf16>
    %106 = vector.shape_cast %105 : vector<1x16x8xbf16> to vector<16x8xbf16>
    %107 = arith.truncf %104 : vector<8x324xf32> to vector<8x324xbf16>
    %cst_84 = arith.constant dense<0.000000e+00> : vector<16x324xf32>
    %108 = tpu.matmul %106, %107, %cst_84 {dimension_numbers = #tpu.dot_dimension_numbers<[1], [0], [0], [1], [0, 0, 1, 1], [], []>} : vector<16x8xbf16>, vector<8x324xbf16>, vector<16x324xf32> -> vector<16x324xf32>
    %109 = arith.addf %103, %108 : vector<16x324xf32>
    %c0_85 = arith.constant 0 : index
    %c129_86 = arith.constant 129 : index
    %110 = vector.load %arg16[%c0_85, %c129_86] : memref<32x471xf32, #tpu.memory_space<vmem>>, vector<8x324xf32>
    %c5_87 = arith.constant 5 : index
    %c0_88 = arith.constant 0 : index
    %c0_89 = arith.constant 0 : index
    %111 = vector.load %arg4[%c5_87, %c0_88, %c0_89] : memref<9x16x8xbf16, #tpu.memory_space<vmem>>, vector<1x16x8xbf16>
    %112 = vector.shape_cast %111 : vector<1x16x8xbf16> to vector<16x8xbf16>
    %113 = arith.truncf %110 : vector<8x324xf32> to vector<8x324xbf16>
    %cst_90 = arith.constant dense<0.000000e+00> : vector<16x324xf32>
    %114 = tpu.matmul %112, %113, %cst_90 {dimension_numbers = #tpu.dot_dimension_numbers<[1], [0], [0], [1], [0, 0, 1, 1], [], []>} : vector<16x8xbf16>, vector<8x324xbf16>, vector<16x324xf32> -> vector<16x324xf32>
    %115 = arith.addf %109, %114 : vector<16x324xf32>
    %c0_91 = arith.constant 0 : index
    %c145_92 = arith.constant 145 : index
    %116 = vector.load %arg16[%c0_91, %c145_92] : memref<32x471xf32, #tpu.memory_space<vmem>>, vector<8x324xf32>
    %c6_93 = arith.constant 6 : index
    %c0_94 = arith.constant 0 : index
    %c0_95 = arith.constant 0 : index
    %117 = vector.load %arg4[%c6_93, %c0_94, %c0_95] : memref<9x16x8xbf16, #tpu.memory_space<vmem>>, vector<1x16x8xbf16>
    %118 = vector.shape_cast %117 : vector<1x16x8xbf16> to vector<16x8xbf16>
    %119 = arith.truncf %116 : vector<8x324xf32> to vector<8x324xbf16>
    %cst_96 = arith.constant dense<0.000000e+00> : vector<16x324xf32>
    %120 = tpu.matmul %118, %119, %cst_96 {dimension_numbers = #tpu.dot_dimension_numbers<[1], [0], [0], [1], [0, 0, 1, 1], [], []>} : vector<16x8xbf16>, vector<8x324xbf16>, vector<16x324xf32> -> vector<16x324xf32>
    %121 = arith.addf %115, %120 : vector<16x324xf32>
    %c0_97 = arith.constant 0 : index
    %c146_98 = arith.constant 146 : index
    %122 = vector.load %arg16[%c0_97, %c146_98] : memref<32x471xf32, #tpu.memory_space<vmem>>, vector<8x324xf32>
    %c7_99 = arith.constant 7 : index
    %c0_100 = arith.constant 0 : index
    %c0_101 = arith.constant 0 : index
    %123 = vector.load %arg4[%c7_99, %c0_100, %c0_101] : memref<9x16x8xbf16, #tpu.memory_space<vmem>>, vector<1x16x8xbf16>
    %124 = vector.shape_cast %123 : vector<1x16x8xbf16> to vector<16x8xbf16>
    %125 = arith.truncf %122 : vector<8x324xf32> to vector<8x324xbf16>
    %cst_102 = arith.constant dense<0.000000e+00> : vector<16x324xf32>
    %126 = tpu.matmul %124, %125, %cst_102 {dimension_numbers = #tpu.dot_dimension_numbers<[1], [0], [0], [1], [0, 0, 1, 1], [], []>} : vector<16x8xbf16>, vector<8x324xbf16>, vector<16x324xf32> -> vector<16x324xf32>
    %127 = arith.addf %121, %126 : vector<16x324xf32>
    %c0_103 = arith.constant 0 : index
    %c147_104 = arith.constant 147 : index
    %128 = vector.load %arg16[%c0_103, %c147_104] : memref<32x471xf32, #tpu.memory_space<vmem>>, vector<8x324xf32>
    %c8_105 = arith.constant 8 : index
    %c0_106 = arith.constant 0 : index
    %c0_107 = arith.constant 0 : index
    %129 = vector.load %arg4[%c8_105, %c0_106, %c0_107] : memref<9x16x8xbf16, #tpu.memory_space<vmem>>, vector<1x16x8xbf16>
    %130 = vector.shape_cast %129 : vector<1x16x8xbf16> to vector<16x8xbf16>
    %131 = arith.truncf %128 : vector<8x324xf32> to vector<8x324xbf16>
    %cst_108 = arith.constant dense<0.000000e+00> : vector<16x324xf32>
    %132 = tpu.matmul %130, %131, %cst_108 {dimension_numbers = #tpu.dot_dimension_numbers<[1], [0], [0], [1], [0, 0, 1, 1], [], []>} : vector<16x8xbf16>, vector<8x324xbf16>, vector<16x324xf32> -> vector<16x324xf32>
    %133 = arith.addf %127, %132 : vector<16x324xf32>
    %c0_109 = arith.constant 0 : index
    %c0_110 = arith.constant 0 : index
    %134 = vector.load %arg10[%c0_109, %c0_110] : memref<16x1xf32, #tpu.memory_space<vmem>>, vector<16x1xf32>
    %135 = vector.broadcast %134 : vector<16x1xf32> to vector<16x324xf32>
    %136 = arith.addf %133, %135 : vector<16x324xf32>
    %cst_111 = arith.constant 0.000000e+00 : f32
    %137 = vector.broadcast %cst_111 : f32 to vector<16x324xf32>
    %138 = arith.cmpf oge, %136, %137 : vector<16x324xf32>
    %cst_112 = arith.constant 0.00999999977 : f32
    %139 = vector.broadcast %cst_112 : f32 to vector<16x324xf32>
    %140 = arith.mulf %139, %136 : vector<16x324xf32>
    %141 = arith.select %138, %136, %140 : vector<16x324xi1>, vector<16x324xf32>
    %cst_113 = arith.constant 0.000000e+00 : f32
    %142 = vector.shape_cast %5 : vector<1x324xi1> to vector<1x324xi1>
    %143 = vector.broadcast %142 : vector<1x324xi1> to vector<16x324xi1>
    %144 = vector.broadcast %cst_113 : f32 to vector<16x324xf32>
    %145 = arith.select %143, %141, %144 : vector<16x324xi1>, vector<16x324xf32>
    %c0_114 = arith.constant 0 : index
    %c128_115 = arith.constant 128 : index
    %146 = vector.load %arg17[%c0_114, %c128_115] : memref<32x471xf32, #tpu.memory_space<vmem>>, vector<16x324xf32>
    tpu.vector_store %arg17[%c0_114, %c128_115], %145 {strides = array<i32>} : memref<32x471xf32, #tpu.memory_space<vmem>>, vector<16x324xf32>,
    %c0_116 = arith.constant 0 : index
    %c109_117 = arith.constant 109 : index
    %147 = vector.load %arg17[%c0_116, %c109_117] : memref<32x471xf32, #tpu.memory_space<vmem>>, vector<16x324xf32>
    %c0_118 = arith.constant 0 : index
    %c0_119 = arith.constant 0 : index
    %c0_120 = arith.constant 0 : index
    %148 = vector.load %arg5[%c0_118, %c0_119, %c0_120] : memref<9x32x16xbf16, #tpu.memory_space<vmem>>, vector<1x32x16xbf16>
    %149 = vector.shape_cast %148 : vector<1x32x16xbf16> to vector<32x16xbf16>
    %150 = arith.truncf %147 : vector<16x324xf32> to vector<16x324xbf16>
    %cst_121 = arith.constant dense<0.000000e+00> : vector<32x324xf32>
    %151 = tpu.matmul %149, %150, %cst_121 {dimension_numbers = #tpu.dot_dimension_numbers<[1], [0], [0], [1], [0, 0, 1, 1], [], []>} : vector<32x16xbf16>, vector<16x324xbf16>, vector<32x324xf32> -> vector<32x324xf32>
    %c0_122 = arith.constant 0 : index
    %c110_123 = arith.constant 110 : index
    %152 = vector.load %arg17[%c0_122, %c110_123] : memref<32x471xf32, #tpu.memory_space<vmem>>, vector<16x324xf32>
    %c1_124 = arith.constant 1 : index
    %c0_125 = arith.constant 0 : index
    %c0_126 = arith.constant 0 : index
    %153 = vector.load %arg5[%c1_124, %c0_125, %c0_126] : memref<9x32x16xbf16, #tpu.memory_space<vmem>>, vector<1x32x16xbf16>
    %154 = vector.shape_cast %153 : vector<1x32x16xbf16> to vector<32x16xbf16>
    %155 = arith.truncf %152 : vector<16x324xf32> to vector<16x324xbf16>
    %cst_127 = arith.constant dense<0.000000e+00> : vector<32x324xf32>
    %156 = tpu.matmul %154, %155, %cst_127 {dimension_numbers = #tpu.dot_dimension_numbers<[1], [0], [0], [1], [0, 0, 1, 1], [], []>} : vector<32x16xbf16>, vector<16x324xbf16>, vector<32x324xf32> -> vector<32x324xf32>
    %157 = arith.addf %151, %156 : vector<32x324xf32>
    %c0_128 = arith.constant 0 : index
    %c111_129 = arith.constant 111 : index
    %158 = vector.load %arg17[%c0_128, %c111_129] : memref<32x471xf32, #tpu.memory_space<vmem>>, vector<16x324xf32>
    %c2_130 = arith.constant 2 : index
    %c0_131 = arith.constant 0 : index
    %c0_132 = arith.constant 0 : index
    %159 = vector.load %arg5[%c2_130, %c0_131, %c0_132] : memref<9x32x16xbf16, #tpu.memory_space<vmem>>, vector<1x32x16xbf16>
    %160 = vector.shape_cast %159 : vector<1x32x16xbf16> to vector<32x16xbf16>
    %161 = arith.truncf %158 : vector<16x324xf32> to vector<16x324xbf16>
    %cst_133 = arith.constant dense<0.000000e+00> : vector<32x324xf32>
    %162 = tpu.matmul %160, %161, %cst_133 {dimension_numbers = #tpu.dot_dimension_numbers<[1], [0], [0], [1], [0, 0, 1, 1], [], []>} : vector<32x16xbf16>, vector<16x324xbf16>, vector<32x324xf32> -> vector<32x324xf32>
    %163 = arith.addf %157, %162 : vector<32x324xf32>
    %c0_134 = arith.constant 0 : index
    %c127_135 = arith.constant 127 : index
    %164 = vector.load %arg17[%c0_134, %c127_135] : memref<32x471xf32, #tpu.memory_space<vmem>>, vector<16x324xf32>
    %c3_136 = arith.constant 3 : index
    %c0_137 = arith.constant 0 : index
    %c0_138 = arith.constant 0 : index
    %165 = vector.load %arg5[%c3_136, %c0_137, %c0_138] : memref<9x32x16xbf16, #tpu.memory_space<vmem>>, vector<1x32x16xbf16>
    %166 = vector.shape_cast %165 : vector<1x32x16xbf16> to vector<32x16xbf16>
    %167 = arith.truncf %164 : vector<16x324xf32> to vector<16x324xbf16>
    %cst_139 = arith.constant dense<0.000000e+00> : vector<32x324xf32>
    %168 = tpu.matmul %166, %167, %cst_139 {dimension_numbers = #tpu.dot_dimension_numbers<[1], [0], [0], [1], [0, 0, 1, 1], [], []>} : vector<32x16xbf16>, vector<16x324xbf16>, vector<32x324xf32> -> vector<32x324xf32>
    %169 = arith.addf %163, %168 : vector<32x324xf32>
    %c0_140 = arith.constant 0 : index
    %c128_141 = arith.constant 128 : index
    %170 = vector.load %arg17[%c0_140, %c128_141] : memref<32x471xf32, #tpu.memory_space<vmem>>, vector<16x324xf32>
    %c4_142 = arith.constant 4 : index
    %c0_143 = arith.constant 0 : index
    %c0_144 = arith.constant 0 : index
    %171 = vector.load %arg5[%c4_142, %c0_143, %c0_144] : memref<9x32x16xbf16, #tpu.memory_space<vmem>>, vector<1x32x16xbf16>
    %172 = vector.shape_cast %171 : vector<1x32x16xbf16> to vector<32x16xbf16>
    %173 = arith.truncf %170 : vector<16x324xf32> to vector<16x324xbf16>
    %cst_145 = arith.constant dense<0.000000e+00> : vector<32x324xf32>
    %174 = tpu.matmul %172, %173, %cst_145 {dimension_numbers = #tpu.dot_dimension_numbers<[1], [0], [0], [1], [0, 0, 1, 1], [], []>} : vector<32x16xbf16>, vector<16x324xbf16>, vector<32x324xf32> -> vector<32x324xf32>
    %175 = arith.addf %169, %174 : vector<32x324xf32>
    %c0_146 = arith.constant 0 : index
    %c129_147 = arith.constant 129 : index
    %176 = vector.load %arg17[%c0_146, %c129_147] : memref<32x471xf32, #tpu.memory_space<vmem>>, vector<16x324xf32>
    %c5_148 = arith.constant 5 : index
    %c0_149 = arith.constant 0 : index
    %c0_150 = arith.constant 0 : index
    %177 = vector.load %arg5[%c5_148, %c0_149, %c0_150] : memref<9x32x16xbf16, #tpu.memory_space<vmem>>, vector<1x32x16xbf16>
    %178 = vector.shape_cast %177 : vector<1x32x16xbf16> to vector<32x16xbf16>
    %179 = arith.truncf %176 : vector<16x324xf32> to vector<16x324xbf16>
    %cst_151 = arith.constant dense<0.000000e+00> : vector<32x324xf32>
    %180 = tpu.matmul %178, %179, %cst_151 {dimension_numbers = #tpu.dot_dimension_numbers<[1], [0], [0], [1], [0, 0, 1, 1], [], []>} : vector<32x16xbf16>, vector<16x324xbf16>, vector<32x324xf32> -> vector<32x324xf32>
    %181 = arith.addf %175, %180 : vector<32x324xf32>
    %c0_152 = arith.constant 0 : index
    %c145_153 = arith.constant 145 : index
    %182 = vector.load %arg17[%c0_152, %c145_153] : memref<32x471xf32, #tpu.memory_space<vmem>>, vector<16x324xf32>
    %c6_154 = arith.constant 6 : index
    %c0_155 = arith.constant 0 : index
    %c0_156 = arith.constant 0 : index
    %183 = vector.load %arg5[%c6_154, %c0_155, %c0_156] : memref<9x32x16xbf16, #tpu.memory_space<vmem>>, vector<1x32x16xbf16>
    %184 = vector.shape_cast %183 : vector<1x32x16xbf16> to vector<32x16xbf16>
    %185 = arith.truncf %182 : vector<16x324xf32> to vector<16x324xbf16>
    %cst_157 = arith.constant dense<0.000000e+00> : vector<32x324xf32>
    %186 = tpu.matmul %184, %185, %cst_157 {dimension_numbers = #tpu.dot_dimension_numbers<[1], [0], [0], [1], [0, 0, 1, 1], [], []>} : vector<32x16xbf16>, vector<16x324xbf16>, vector<32x324xf32> -> vector<32x324xf32>
    %187 = arith.addf %181, %186 : vector<32x324xf32>
    %c0_158 = arith.constant 0 : index
    %c146_159 = arith.constant 146 : index
    %188 = vector.load %arg17[%c0_158, %c146_159] : memref<32x471xf32, #tpu.memory_space<vmem>>, vector<16x324xf32>
    %c7_160 = arith.constant 7 : index
    %c0_161 = arith.constant 0 : index
    %c0_162 = arith.constant 0 : index
    %189 = vector.load %arg5[%c7_160, %c0_161, %c0_162] : memref<9x32x16xbf16, #tpu.memory_space<vmem>>, vector<1x32x16xbf16>
    %190 = vector.shape_cast %189 : vector<1x32x16xbf16> to vector<32x16xbf16>
    %191 = arith.truncf %188 : vector<16x324xf32> to vector<16x324xbf16>
    %cst_163 = arith.constant dense<0.000000e+00> : vector<32x324xf32>
    %192 = tpu.matmul %190, %191, %cst_163 {dimension_numbers = #tpu.dot_dimension_numbers<[1], [0], [0], [1], [0, 0, 1, 1], [], []>} : vector<32x16xbf16>, vector<16x324xbf16>, vector<32x324xf32> -> vector<32x324xf32>
    %193 = arith.addf %187, %192 : vector<32x324xf32>
    %c0_164 = arith.constant 0 : index
    %c147_165 = arith.constant 147 : index
    %194 = vector.load %arg17[%c0_164, %c147_165] : memref<32x471xf32, #tpu.memory_space<vmem>>, vector<16x324xf32>
    %c8_166 = arith.constant 8 : index
    %c0_167 = arith.constant 0 : index
    %c0_168 = arith.constant 0 : index
    %195 = vector.load %arg5[%c8_166, %c0_167, %c0_168] : memref<9x32x16xbf16, #tpu.memory_space<vmem>>, vector<1x32x16xbf16>
    %196 = vector.shape_cast %195 : vector<1x32x16xbf16> to vector<32x16xbf16>
    %197 = arith.truncf %194 : vector<16x324xf32> to vector<16x324xbf16>
    %cst_169 = arith.constant dense<0.000000e+00> : vector<32x324xf32>
    %198 = tpu.matmul %196, %197, %cst_169 {dimension_numbers = #tpu.dot_dimension_numbers<[1], [0], [0], [1], [0, 0, 1, 1], [], []>} : vector<32x16xbf16>, vector<16x324xbf16>, vector<32x324xf32> -> vector<32x324xf32>
    %199 = arith.addf %193, %198 : vector<32x324xf32>
    %c0_170 = arith.constant 0 : index
    %c0_171 = arith.constant 0 : index
    %200 = vector.load %arg11[%c0_170, %c0_171] : memref<32x1xf32, #tpu.memory_space<vmem>>, vector<32x1xf32>
    %201 = vector.broadcast %200 : vector<32x1xf32> to vector<32x324xf32>
    %202 = arith.addf %199, %201 : vector<32x324xf32>
    %cst_172 = arith.constant 0.000000e+00 : f32
    %203 = vector.broadcast %cst_172 : f32 to vector<32x324xf32>
    %204 = arith.cmpf oge, %202, %203 : vector<32x324xf32>
    %cst_173 = arith.constant 0.00999999977 : f32
    %205 = vector.broadcast %cst_173 : f32 to vector<32x324xf32>
    %206 = arith.mulf %205, %202 : vector<32x324xf32>
    %207 = arith.select %204, %202, %206 : vector<32x324xi1>, vector<32x324xf32>
    %cst_174 = arith.constant 0.000000e+00 : f32
    %208 = vector.shape_cast %5 : vector<1x324xi1> to vector<1x324xi1>
    %209 = vector.broadcast %208 : vector<1x324xi1> to vector<32x324xi1>
    %210 = vector.broadcast %cst_174 : f32 to vector<32x324xf32>
    %211 = arith.select %209, %207, %210 : vector<32x324xi1>, vector<32x324xf32>
    %c0_175 = arith.constant 0 : index
    %c128_176 = arith.constant 128 : index
    %212 = vector.load %arg16[%c0_175, %c128_176] : memref<32x471xf32, #tpu.memory_space<vmem>>, vector<32x324xf32>
    tpu.vector_store %arg16[%c0_175, %c128_176], %211 {strides = array<i32>} : memref<32x471xf32, #tpu.memory_space<vmem>>, vector<32x324xf32>,
    %c0_177 = arith.constant 0 : index
    %c109_178 = arith.constant 109 : index
    %213 = vector.load %arg16[%c0_177, %c109_178] : memref<32x471xf32, #tpu.memory_space<vmem>>, vector<32x324xf32>
    %c0_179 = arith.constant 0 : index
    %c0_180 = arith.constant 0 : index
    %c0_181 = arith.constant 0 : index
    %214 = vector.load %arg6[%c0_179, %c0_180, %c0_181] : memref<9x16x32xbf16, #tpu.memory_space<vmem>>, vector<1x16x32xbf16>
    %215 = vector.shape_cast %214 : vector<1x16x32xbf16> to vector<16x32xbf16>
    %216 = arith.truncf %213 : vector<32x324xf32> to vector<32x324xbf16>
    %cst_182 = arith.constant dense<0.000000e+00> : vector<16x324xf32>
    %217 = tpu.matmul %215, %216, %cst_182 {dimension_numbers = #tpu.dot_dimension_numbers<[1], [0], [0], [1], [0, 0, 1, 1], [], []>} : vector<16x32xbf16>, vector<32x324xbf16>, vector<16x324xf32> -> vector<16x324xf32>
    %c0_183 = arith.constant 0 : index
    %c110_184 = arith.constant 110 : index
    %218 = vector.load %arg16[%c0_183, %c110_184] : memref<32x471xf32, #tpu.memory_space<vmem>>, vector<32x324xf32>
    %c1_185 = arith.constant 1 : index
    %c0_186 = arith.constant 0 : index
    %c0_187 = arith.constant 0 : index
    %219 = vector.load %arg6[%c1_185, %c0_186, %c0_187] : memref<9x16x32xbf16, #tpu.memory_space<vmem>>, vector<1x16x32xbf16>
    %220 = vector.shape_cast %219 : vector<1x16x32xbf16> to vector<16x32xbf16>
    %221 = arith.truncf %218 : vector<32x324xf32> to vector<32x324xbf16>
    %cst_188 = arith.constant dense<0.000000e+00> : vector<16x324xf32>
    %222 = tpu.matmul %220, %221, %cst_188 {dimension_numbers = #tpu.dot_dimension_numbers<[1], [0], [0], [1], [0, 0, 1, 1], [], []>} : vector<16x32xbf16>, vector<32x324xbf16>, vector<16x324xf32> -> vector<16x324xf32>
    %223 = arith.addf %217, %222 : vector<16x324xf32>
    %c0_189 = arith.constant 0 : index
    %c111_190 = arith.constant 111 : index
    %224 = vector.load %arg16[%c0_189, %c111_190] : memref<32x471xf32, #tpu.memory_space<vmem>>, vector<32x324xf32>
    %c2_191 = arith.constant 2 : index
    %c0_192 = arith.constant 0 : index
    %c0_193 = arith.constant 0 : index
    %225 = vector.load %arg6[%c2_191, %c0_192, %c0_193] : memref<9x16x32xbf16, #tpu.memory_space<vmem>>, vector<1x16x32xbf16>
    %226 = vector.shape_cast %225 : vector<1x16x32xbf16> to vector<16x32xbf16>
    %227 = arith.truncf %224 : vector<32x324xf32> to vector<32x324xbf16>
    %cst_194 = arith.constant dense<0.000000e+00> : vector<16x324xf32>
    %228 = tpu.matmul %226, %227, %cst_194 {dimension_numbers = #tpu.dot_dimension_numbers<[1], [0], [0], [1], [0, 0, 1, 1], [], []>} : vector<16x32xbf16>, vector<32x324xbf16>, vector<16x324xf32> -> vector<16x324xf32>
    %229 = arith.addf %223, %228 : vector<16x324xf32>
    %c0_195 = arith.constant 0 : index
    %c127_196 = arith.constant 127 : index
    %230 = vector.load %arg16[%c0_195, %c127_196] : memref<32x471xf32, #tpu.memory_space<vmem>>, vector<32x324xf32>
    %c3_197 = arith.constant 3 : index
    %c0_198 = arith.constant 0 : index
    %c0_199 = arith.constant 0 : index
    %231 = vector.load %arg6[%c3_197, %c0_198, %c0_199] : memref<9x16x32xbf16, #tpu.memory_space<vmem>>, vector<1x16x32xbf16>
    %232 = vector.shape_cast %231 : vector<1x16x32xbf16> to vector<16x32xbf16>
    %233 = arith.truncf %230 : vector<32x324xf32> to vector<32x324xbf16>
    %cst_200 = arith.constant dense<0.000000e+00> : vector<16x324xf32>
    %234 = tpu.matmul %232, %233, %cst_200 {dimension_numbers = #tpu.dot_dimension_numbers<[1], [0], [0], [1], [0, 0, 1, 1], [], []>} : vector<16x32xbf16>, vector<32x324xbf16>, vector<16x324xf32> -> vector<16x324xf32>
    %235 = arith.addf %229, %234 : vector<16x324xf32>
    %c0_201 = arith.constant 0 : index
    %c128_202 = arith.constant 128 : index
    %236 = vector.load %arg16[%c0_201, %c128_202] : memref<32x471xf32, #tpu.memory_space<vmem>>, vector<32x324xf32>
    %c4_203 = arith.constant 4 : index
    %c0_204 = arith.constant 0 : index
    %c0_205 = arith.constant 0 : index
    %237 = vector.load %arg6[%c4_203, %c0_204, %c0_205] : memref<9x16x32xbf16, #tpu.memory_space<vmem>>, vector<1x16x32xbf16>
    %238 = vector.shape_cast %237 : vector<1x16x32xbf16> to vector<16x32xbf16>
    %239 = arith.truncf %236 : vector<32x324xf32> to vector<32x324xbf16>
    %cst_206 = arith.constant dense<0.000000e+00> : vector<16x324xf32>
    %240 = tpu.matmul %238, %239, %cst_206 {dimension_numbers = #tpu.dot_dimension_numbers<[1], [0], [0], [1], [0, 0, 1, 1], [], []>} : vector<16x32xbf16>, vector<32x324xbf16>, vector<16x324xf32> -> vector<16x324xf32>
    %241 = arith.addf %235, %240 : vector<16x324xf32>
    %c0_207 = arith.constant 0 : index
    %c129_208 = arith.constant 129 : index
    %242 = vector.load %arg16[%c0_207, %c129_208] : memref<32x471xf32, #tpu.memory_space<vmem>>, vector<32x324xf32>
    %c5_209 = arith.constant 5 : index
    %c0_210 = arith.constant 0 : index
    %c0_211 = arith.constant 0 : index
    %243 = vector.load %arg6[%c5_209, %c0_210, %c0_211] : memref<9x16x32xbf16, #tpu.memory_space<vmem>>, vector<1x16x32xbf16>
    %244 = vector.shape_cast %243 : vector<1x16x32xbf16> to vector<16x32xbf16>
    %245 = arith.truncf %242 : vector<32x324xf32> to vector<32x324xbf16>
    %cst_212 = arith.constant dense<0.000000e+00> : vector<16x324xf32>
    %246 = tpu.matmul %244, %245, %cst_212 {dimension_numbers = #tpu.dot_dimension_numbers<[1], [0], [0], [1], [0, 0, 1, 1], [], []>} : vector<16x32xbf16>, vector<32x324xbf16>, vector<16x324xf32> -> vector<16x324xf32>
    %247 = arith.addf %241, %246 : vector<16x324xf32>
    %c0_213 = arith.constant 0 : index
    %c145_214 = arith.constant 145 : index
    %248 = vector.load %arg16[%c0_213, %c145_214] : memref<32x471xf32, #tpu.memory_space<vmem>>, vector<32x324xf32>
    %c6_215 = arith.constant 6 : index
    %c0_216 = arith.constant 0 : index
    %c0_217 = arith.constant 0 : index
    %249 = vector.load %arg6[%c6_215, %c0_216, %c0_217] : memref<9x16x32xbf16, #tpu.memory_space<vmem>>, vector<1x16x32xbf16>
    %250 = vector.shape_cast %249 : vector<1x16x32xbf16> to vector<16x32xbf16>
    %251 = arith.truncf %248 : vector<32x324xf32> to vector<32x324xbf16>
    %cst_218 = arith.constant dense<0.000000e+00> : vector<16x324xf32>
    %252 = tpu.matmul %250, %251, %cst_218 {dimension_numbers = #tpu.dot_dimension_numbers<[1], [0], [0], [1], [0, 0, 1, 1], [], []>} : vector<16x32xbf16>, vector<32x324xbf16>, vector<16x324xf32> -> vector<16x324xf32>
    %253 = arith.addf %247, %252 : vector<16x324xf32>
    %c0_219 = arith.constant 0 : index
    %c146_220 = arith.constant 146 : index
    %254 = vector.load %arg16[%c0_219, %c146_220] : memref<32x471xf32, #tpu.memory_space<vmem>>, vector<32x324xf32>
    %c7_221 = arith.constant 7 : index
    %c0_222 = arith.constant 0 : index
    %c0_223 = arith.constant 0 : index
    %255 = vector.load %arg6[%c7_221, %c0_222, %c0_223] : memref<9x16x32xbf16, #tpu.memory_space<vmem>>, vector<1x16x32xbf16>
    %256 = vector.shape_cast %255 : vector<1x16x32xbf16> to vector<16x32xbf16>
    %257 = arith.truncf %254 : vector<32x324xf32> to vector<32x324xbf16>
    %cst_224 = arith.constant dense<0.000000e+00> : vector<16x324xf32>
    %258 = tpu.matmul %256, %257, %cst_224 {dimension_numbers = #tpu.dot_dimension_numbers<[1], [0], [0], [1], [0, 0, 1, 1], [], []>} : vector<16x32xbf16>, vector<32x324xbf16>, vector<16x324xf32> -> vector<16x324xf32>
    %259 = arith.addf %253, %258 : vector<16x324xf32>
    %c0_225 = arith.constant 0 : index
    %c147_226 = arith.constant 147 : index
    %260 = vector.load %arg16[%c0_225, %c147_226] : memref<32x471xf32, #tpu.memory_space<vmem>>, vector<32x324xf32>
    %c8_227 = arith.constant 8 : index
    %c0_228 = arith.constant 0 : index
    %c0_229 = arith.constant 0 : index
    %261 = vector.load %arg6[%c8_227, %c0_228, %c0_229] : memref<9x16x32xbf16, #tpu.memory_space<vmem>>, vector<1x16x32xbf16>
    %262 = vector.shape_cast %261 : vector<1x16x32xbf16> to vector<16x32xbf16>
    %263 = arith.truncf %260 : vector<32x324xf32> to vector<32x324xbf16>
    %cst_230 = arith.constant dense<0.000000e+00> : vector<16x324xf32>
    %264 = tpu.matmul %262, %263, %cst_230 {dimension_numbers = #tpu.dot_dimension_numbers<[1], [0], [0], [1], [0, 0, 1, 1], [], []>} : vector<16x32xbf16>, vector<32x324xbf16>, vector<16x324xf32> -> vector<16x324xf32>
    %265 = arith.addf %259, %264 : vector<16x324xf32>
    %c0_231 = arith.constant 0 : index
    %c0_232 = arith.constant 0 : index
    %266 = vector.load %arg12[%c0_231, %c0_232] : memref<16x1xf32, #tpu.memory_space<vmem>>, vector<16x1xf32>
    %267 = vector.broadcast %266 : vector<16x1xf32> to vector<16x324xf32>
    %268 = arith.addf %265, %267 : vector<16x324xf32>
    %cst_233 = arith.constant 0.000000e+00 : f32
    %269 = vector.broadcast %cst_233 : f32 to vector<16x324xf32>
    %270 = arith.cmpf oge, %268, %269 : vector<16x324xf32>
    %cst_234 = arith.constant 0.00999999977 : f32
    %271 = vector.broadcast %cst_234 : f32 to vector<16x324xf32>
    %272 = arith.mulf %271, %268 : vector<16x324xf32>
    %273 = arith.select %270, %268, %272 : vector<16x324xi1>, vector<16x324xf32>
    %cst_235 = arith.constant 0.000000e+00 : f32
    %274 = vector.shape_cast %5 : vector<1x324xi1> to vector<1x324xi1>
    %275 = vector.broadcast %274 : vector<1x324xi1> to vector<16x324xi1>
    %276 = vector.broadcast %cst_235 : f32 to vector<16x324xf32>
    %277 = arith.select %275, %273, %276 : vector<16x324xi1>, vector<16x324xf32>
    %c0_236 = arith.constant 0 : index
    %c128_237 = arith.constant 128 : index
    %278 = vector.load %arg17[%c0_236, %c128_237] : memref<32x471xf32, #tpu.memory_space<vmem>>, vector<16x324xf32>
    tpu.vector_store %arg17[%c0_236, %c128_237], %277 {strides = array<i32>} : memref<32x471xf32, #tpu.memory_space<vmem>>, vector<16x324xf32>,
    %c0_238 = arith.constant 0 : index
    %c109_239 = arith.constant 109 : index
    %279 = vector.load %arg17[%c0_238, %c109_239] : memref<32x471xf32, #tpu.memory_space<vmem>>, vector<16x324xf32>
    %c0_240 = arith.constant 0 : index
    %c0_241 = arith.constant 0 : index
    %c0_242 = arith.constant 0 : index
    %280 = vector.load %arg7[%c0_240, %c0_241, %c0_242] : memref<9x8x16xbf16, #tpu.memory_space<vmem>>, vector<1x8x16xbf16>
    %281 = vector.shape_cast %280 : vector<1x8x16xbf16> to vector<8x16xbf16>
    %282 = arith.truncf %279 : vector<16x324xf32> to vector<16x324xbf16>
    %cst_243 = arith.constant dense<0.000000e+00> : vector<8x324xf32>
    %283 = tpu.matmul %281, %282, %cst_243 {dimension_numbers = #tpu.dot_dimension_numbers<[1], [0], [0], [1], [0, 0, 1, 1], [], []>} : vector<8x16xbf16>, vector<16x324xbf16>, vector<8x324xf32> -> vector<8x324xf32>
    %c0_244 = arith.constant 0 : index
    %c110_245 = arith.constant 110 : index
    %284 = vector.load %arg17[%c0_244, %c110_245] : memref<32x471xf32, #tpu.memory_space<vmem>>, vector<16x324xf32>
    %c1_246 = arith.constant 1 : index
    %c0_247 = arith.constant 0 : index
    %c0_248 = arith.constant 0 : index
    %285 = vector.load %arg7[%c1_246, %c0_247, %c0_248] : memref<9x8x16xbf16, #tpu.memory_space<vmem>>, vector<1x8x16xbf16>
    %286 = vector.shape_cast %285 : vector<1x8x16xbf16> to vector<8x16xbf16>
    %287 = arith.truncf %284 : vector<16x324xf32> to vector<16x324xbf16>
    %cst_249 = arith.constant dense<0.000000e+00> : vector<8x324xf32>
    %288 = tpu.matmul %286, %287, %cst_249 {dimension_numbers = #tpu.dot_dimension_numbers<[1], [0], [0], [1], [0, 0, 1, 1], [], []>} : vector<8x16xbf16>, vector<16x324xbf16>, vector<8x324xf32> -> vector<8x324xf32>
    %289 = arith.addf %283, %288 : vector<8x324xf32>
    %c0_250 = arith.constant 0 : index
    %c111_251 = arith.constant 111 : index
    %290 = vector.load %arg17[%c0_250, %c111_251] : memref<32x471xf32, #tpu.memory_space<vmem>>, vector<16x324xf32>
    %c2_252 = arith.constant 2 : index
    %c0_253 = arith.constant 0 : index
    %c0_254 = arith.constant 0 : index
    %291 = vector.load %arg7[%c2_252, %c0_253, %c0_254] : memref<9x8x16xbf16, #tpu.memory_space<vmem>>, vector<1x8x16xbf16>
    %292 = vector.shape_cast %291 : vector<1x8x16xbf16> to vector<8x16xbf16>
    %293 = arith.truncf %290 : vector<16x324xf32> to vector<16x324xbf16>
    %cst_255 = arith.constant dense<0.000000e+00> : vector<8x324xf32>
    %294 = tpu.matmul %292, %293, %cst_255 {dimension_numbers = #tpu.dot_dimension_numbers<[1], [0], [0], [1], [0, 0, 1, 1], [], []>} : vector<8x16xbf16>, vector<16x324xbf16>, vector<8x324xf32> -> vector<8x324xf32>
    %295 = arith.addf %289, %294 : vector<8x324xf32>
    %c0_256 = arith.constant 0 : index
    %c127_257 = arith.constant 127 : index
    %296 = vector.load %arg17[%c0_256, %c127_257] : memref<32x471xf32, #tpu.memory_space<vmem>>, vector<16x324xf32>
    %c3_258 = arith.constant 3 : index
    %c0_259 = arith.constant 0 : index
    %c0_260 = arith.constant 0 : index
    %297 = vector.load %arg7[%c3_258, %c0_259, %c0_260] : memref<9x8x16xbf16, #tpu.memory_space<vmem>>, vector<1x8x16xbf16>
    %298 = vector.shape_cast %297 : vector<1x8x16xbf16> to vector<8x16xbf16>
    %299 = arith.truncf %296 : vector<16x324xf32> to vector<16x324xbf16>
    %cst_261 = arith.constant dense<0.000000e+00> : vector<8x324xf32>
    %300 = tpu.matmul %298, %299, %cst_261 {dimension_numbers = #tpu.dot_dimension_numbers<[1], [0], [0], [1], [0, 0, 1, 1], [], []>} : vector<8x16xbf16>, vector<16x324xbf16>, vector<8x324xf32> -> vector<8x324xf32>
    %301 = arith.addf %295, %300 : vector<8x324xf32>
    %c0_262 = arith.constant 0 : index
    %c128_263 = arith.constant 128 : index
    %302 = vector.load %arg17[%c0_262, %c128_263] : memref<32x471xf32, #tpu.memory_space<vmem>>, vector<16x324xf32>
    %c4_264 = arith.constant 4 : index
    %c0_265 = arith.constant 0 : index
    %c0_266 = arith.constant 0 : index
    %303 = vector.load %arg7[%c4_264, %c0_265, %c0_266] : memref<9x8x16xbf16, #tpu.memory_space<vmem>>, vector<1x8x16xbf16>
    %304 = vector.shape_cast %303 : vector<1x8x16xbf16> to vector<8x16xbf16>
    %305 = arith.truncf %302 : vector<16x324xf32> to vector<16x324xbf16>
    %cst_267 = arith.constant dense<0.000000e+00> : vector<8x324xf32>
    %306 = tpu.matmul %304, %305, %cst_267 {dimension_numbers = #tpu.dot_dimension_numbers<[1], [0], [0], [1], [0, 0, 1, 1], [], []>} : vector<8x16xbf16>, vector<16x324xbf16>, vector<8x324xf32> -> vector<8x324xf32>
    %307 = arith.addf %301, %306 : vector<8x324xf32>
    %c0_268 = arith.constant 0 : index
    %c129_269 = arith.constant 129 : index
    %308 = vector.load %arg17[%c0_268, %c129_269] : memref<32x471xf32, #tpu.memory_space<vmem>>, vector<16x324xf32>
    %c5_270 = arith.constant 5 : index
    %c0_271 = arith.constant 0 : index
    %c0_272 = arith.constant 0 : index
    %309 = vector.load %arg7[%c5_270, %c0_271, %c0_272] : memref<9x8x16xbf16, #tpu.memory_space<vmem>>, vector<1x8x16xbf16>
    %310 = vector.shape_cast %309 : vector<1x8x16xbf16> to vector<8x16xbf16>
    %311 = arith.truncf %308 : vector<16x324xf32> to vector<16x324xbf16>
    %cst_273 = arith.constant dense<0.000000e+00> : vector<8x324xf32>
    %312 = tpu.matmul %310, %311, %cst_273 {dimension_numbers = #tpu.dot_dimension_numbers<[1], [0], [0], [1], [0, 0, 1, 1], [], []>} : vector<8x16xbf16>, vector<16x324xbf16>, vector<8x324xf32> -> vector<8x324xf32>
    %313 = arith.addf %307, %312 : vector<8x324xf32>
    %c0_274 = arith.constant 0 : index
    %c145_275 = arith.constant 145 : index
    %314 = vector.load %arg17[%c0_274, %c145_275] : memref<32x471xf32, #tpu.memory_space<vmem>>, vector<16x324xf32>
    %c6_276 = arith.constant 6 : index
    %c0_277 = arith.constant 0 : index
    %c0_278 = arith.constant 0 : index
    %315 = vector.load %arg7[%c6_276, %c0_277, %c0_278] : memref<9x8x16xbf16, #tpu.memory_space<vmem>>, vector<1x8x16xbf16>
    %316 = vector.shape_cast %315 : vector<1x8x16xbf16> to vector<8x16xbf16>
    %317 = arith.truncf %314 : vector<16x324xf32> to vector<16x324xbf16>
    %cst_279 = arith.constant dense<0.000000e+00> : vector<8x324xf32>
    %318 = tpu.matmul %316, %317, %cst_279 {dimension_numbers = #tpu.dot_dimension_numbers<[1], [0], [0], [1], [0, 0, 1, 1], [], []>} : vector<8x16xbf16>, vector<16x324xbf16>, vector<8x324xf32> -> vector<8x324xf32>
    %319 = arith.addf %313, %318 : vector<8x324xf32>
    %c0_280 = arith.constant 0 : index
    %c146_281 = arith.constant 146 : index
    %320 = vector.load %arg17[%c0_280, %c146_281] : memref<32x471xf32, #tpu.memory_space<vmem>>, vector<16x324xf32>
    %c7_282 = arith.constant 7 : index
    %c0_283 = arith.constant 0 : index
    %c0_284 = arith.constant 0 : index
    %321 = vector.load %arg7[%c7_282, %c0_283, %c0_284] : memref<9x8x16xbf16, #tpu.memory_space<vmem>>, vector<1x8x16xbf16>
    %322 = vector.shape_cast %321 : vector<1x8x16xbf16> to vector<8x16xbf16>
    %323 = arith.truncf %320 : vector<16x324xf32> to vector<16x324xbf16>
    %cst_285 = arith.constant dense<0.000000e+00> : vector<8x324xf32>
    %324 = tpu.matmul %322, %323, %cst_285 {dimension_numbers = #tpu.dot_dimension_numbers<[1], [0], [0], [1], [0, 0, 1, 1], [], []>} : vector<8x16xbf16>, vector<16x324xbf16>, vector<8x324xf32> -> vector<8x324xf32>
    %325 = arith.addf %319, %324 : vector<8x324xf32>
    %c0_286 = arith.constant 0 : index
    %c147_287 = arith.constant 147 : index
    %326 = vector.load %arg17[%c0_286, %c147_287] : memref<32x471xf32, #tpu.memory_space<vmem>>, vector<16x324xf32>
    %c8_288 = arith.constant 8 : index
    %c0_289 = arith.constant 0 : index
    %c0_290 = arith.constant 0 : index
    %327 = vector.load %arg7[%c8_288, %c0_289, %c0_290] : memref<9x8x16xbf16, #tpu.memory_space<vmem>>, vector<1x8x16xbf16>
    %328 = vector.shape_cast %327 : vector<1x8x16xbf16> to vector<8x16xbf16>
    %329 = arith.truncf %326 : vector<16x324xf32> to vector<16x324xbf16>
    %cst_291 = arith.constant dense<0.000000e+00> : vector<8x324xf32>
    %330 = tpu.matmul %328, %329, %cst_291 {dimension_numbers = #tpu.dot_dimension_numbers<[1], [0], [0], [1], [0, 0, 1, 1], [], []>} : vector<8x16xbf16>, vector<16x324xbf16>, vector<8x324xf32> -> vector<8x324xf32>
    %331 = arith.addf %325, %330 : vector<8x324xf32>
    %c0_292 = arith.constant 0 : index
    %c0_293 = arith.constant 0 : index
    %332 = vector.load %arg13[%c0_292, %c0_293] : memref<8x1xf32, #tpu.memory_space<vmem>>, vector<8x1xf32>
    %333 = vector.broadcast %332 : vector<8x1xf32> to vector<8x324xf32>
    %334 = arith.addf %331, %333 : vector<8x324xf32>
    %cst_294 = arith.constant 0.000000e+00 : f32
    %335 = vector.broadcast %cst_294 : f32 to vector<8x324xf32>
    %336 = arith.cmpf oge, %334, %335 : vector<8x324xf32>
    %cst_295 = arith.constant 0.00999999977 : f32
    %337 = vector.broadcast %cst_295 : f32 to vector<8x324xf32>
    %338 = arith.mulf %337, %334 : vector<8x324xf32>
    %339 = arith.select %336, %334, %338 : vector<8x324xi1>, vector<8x324xf32>
    %cst_296 = arith.constant 0.000000e+00 : f32
    %340 = vector.shape_cast %5 : vector<1x324xi1> to vector<1x324xi1>
    %341 = vector.broadcast %340 : vector<1x324xi1> to vector<8x324xi1>
    %342 = vector.broadcast %cst_296 : f32 to vector<8x324xf32>
    %343 = arith.select %341, %339, %342 : vector<8x324xi1>, vector<8x324xf32>
    %c0_297 = arith.constant 0 : index
    %c128_298 = arith.constant 128 : index
    %344 = vector.load %arg16[%c0_297, %c128_298] : memref<32x471xf32, #tpu.memory_space<vmem>>, vector<8x324xf32>
    tpu.vector_store %arg16[%c0_297, %c128_298], %343 {strides = array<i32>} : memref<32x471xf32, #tpu.memory_space<vmem>>, vector<8x324xf32>,
    %c0_299 = arith.constant 0 : index
    %c109_300 = arith.constant 109 : index
    %345 = vector.load %arg16[%c0_299, %c109_300] : memref<32x471xf32, #tpu.memory_space<vmem>>, vector<8x324xf32>
    %c0_301 = arith.constant 0 : index
    %c0_302 = arith.constant 0 : index
    %c0_303 = arith.constant 0 : index
    %346 = vector.load %arg8[%c0_301, %c0_302, %c0_303] : memref<9x3x8xbf16, #tpu.memory_space<vmem>>, vector<1x3x8xbf16>
    %347 = vector.shape_cast %346 : vector<1x3x8xbf16> to vector<3x8xbf16>
    %348 = arith.truncf %345 : vector<8x324xf32> to vector<8x324xbf16>
    %cst_304 = arith.constant dense<0.000000e+00> : vector<3x324xf32>
    %349 = tpu.matmul %347, %348, %cst_304 {dimension_numbers = #tpu.dot_dimension_numbers<[1], [0], [0], [1], [0, 0, 1, 1], [], []>} : vector<3x8xbf16>, vector<8x324xbf16>, vector<3x324xf32> -> vector<3x324xf32>
    %c0_305 = arith.constant 0 : index
    %c110_306 = arith.constant 110 : index
    %350 = vector.load %arg16[%c0_305, %c110_306] : memref<32x471xf32, #tpu.memory_space<vmem>>, vector<8x324xf32>
    %c1_307 = arith.constant 1 : index
    %c0_308 = arith.constant 0 : index
    %c0_309 = arith.constant 0 : index
    %351 = vector.load %arg8[%c1_307, %c0_308, %c0_309] : memref<9x3x8xbf16, #tpu.memory_space<vmem>>, vector<1x3x8xbf16>
    %352 = vector.shape_cast %351 : vector<1x3x8xbf16> to vector<3x8xbf16>
    %353 = arith.truncf %350 : vector<8x324xf32> to vector<8x324xbf16>
    %cst_310 = arith.constant dense<0.000000e+00> : vector<3x324xf32>
    %354 = tpu.matmul %352, %353, %cst_310 {dimension_numbers = #tpu.dot_dimension_numbers<[1], [0], [0], [1], [0, 0, 1, 1], [], []>} : vector<3x8xbf16>, vector<8x324xbf16>, vector<3x324xf32> -> vector<3x324xf32>
    %355 = arith.addf %349, %354 : vector<3x324xf32>
    %c0_311 = arith.constant 0 : index
    %c111_312 = arith.constant 111 : index
    %356 = vector.load %arg16[%c0_311, %c111_312] : memref<32x471xf32, #tpu.memory_space<vmem>>, vector<8x324xf32>
    %c2_313 = arith.constant 2 : index
    %c0_314 = arith.constant 0 : index
    %c0_315 = arith.constant 0 : index
    %357 = vector.load %arg8[%c2_313, %c0_314, %c0_315] : memref<9x3x8xbf16, #tpu.memory_space<vmem>>, vector<1x3x8xbf16>
    %358 = vector.shape_cast %357 : vector<1x3x8xbf16> to vector<3x8xbf16>
    %359 = arith.truncf %356 : vector<8x324xf32> to vector<8x324xbf16>
    %cst_316 = arith.constant dense<0.000000e+00> : vector<3x324xf32>
    %360 = tpu.matmul %358, %359, %cst_316 {dimension_numbers = #tpu.dot_dimension_numbers<[1], [0], [0], [1], [0, 0, 1, 1], [], []>} : vector<3x8xbf16>, vector<8x324xbf16>, vector<3x324xf32> -> vector<3x324xf32>
    %361 = arith.addf %355, %360 : vector<3x324xf32>
    %c0_317 = arith.constant 0 : index
    %c127_318 = arith.constant 127 : index
    %362 = vector.load %arg16[%c0_317, %c127_318] : memref<32x471xf32, #tpu.memory_space<vmem>>, vector<8x324xf32>
    %c3_319 = arith.constant 3 : index
    %c0_320 = arith.constant 0 : index
    %c0_321 = arith.constant 0 : index
    %363 = vector.load %arg8[%c3_319, %c0_320, %c0_321] : memref<9x3x8xbf16, #tpu.memory_space<vmem>>, vector<1x3x8xbf16>
    %364 = vector.shape_cast %363 : vector<1x3x8xbf16> to vector<3x8xbf16>
    %365 = arith.truncf %362 : vector<8x324xf32> to vector<8x324xbf16>
    %cst_322 = arith.constant dense<0.000000e+00> : vector<3x324xf32>
    %366 = tpu.matmul %364, %365, %cst_322 {dimension_numbers = #tpu.dot_dimension_numbers<[1], [0], [0], [1], [0, 0, 1, 1], [], []>} : vector<3x8xbf16>, vector<8x324xbf16>, vector<3x324xf32> -> vector<3x324xf32>
    %367 = arith.addf %361, %366 : vector<3x324xf32>
    %c0_323 = arith.constant 0 : index
    %c128_324 = arith.constant 128 : index
    %368 = vector.load %arg16[%c0_323, %c128_324] : memref<32x471xf32, #tpu.memory_space<vmem>>, vector<8x324xf32>
    %c4_325 = arith.constant 4 : index
    %c0_326 = arith.constant 0 : index
    %c0_327 = arith.constant 0 : index
    %369 = vector.load %arg8[%c4_325, %c0_326, %c0_327] : memref<9x3x8xbf16, #tpu.memory_space<vmem>>, vector<1x3x8xbf16>
    %370 = vector.shape_cast %369 : vector<1x3x8xbf16> to vector<3x8xbf16>
    %371 = arith.truncf %368 : vector<8x324xf32> to vector<8x324xbf16>
    %cst_328 = arith.constant dense<0.000000e+00> : vector<3x324xf32>
    %372 = tpu.matmul %370, %371, %cst_328 {dimension_numbers = #tpu.dot_dimension_numbers<[1], [0], [0], [1], [0, 0, 1, 1], [], []>} : vector<3x8xbf16>, vector<8x324xbf16>, vector<3x324xf32> -> vector<3x324xf32>
    %373 = arith.addf %367, %372 : vector<3x324xf32>
    %c0_329 = arith.constant 0 : index
    %c129_330 = arith.constant 129 : index
    %374 = vector.load %arg16[%c0_329, %c129_330] : memref<32x471xf32, #tpu.memory_space<vmem>>, vector<8x324xf32>
    %c5_331 = arith.constant 5 : index
    %c0_332 = arith.constant 0 : index
    %c0_333 = arith.constant 0 : index
    %375 = vector.load %arg8[%c5_331, %c0_332, %c0_333] : memref<9x3x8xbf16, #tpu.memory_space<vmem>>, vector<1x3x8xbf16>
    %376 = vector.shape_cast %375 : vector<1x3x8xbf16> to vector<3x8xbf16>
    %377 = arith.truncf %374 : vector<8x324xf32> to vector<8x324xbf16>
    %cst_334 = arith.constant dense<0.000000e+00> : vector<3x324xf32>
    %378 = tpu.matmul %376, %377, %cst_334 {dimension_numbers = #tpu.dot_dimension_numbers<[1], [0], [0], [1], [0, 0, 1, 1], [], []>} : vector<3x8xbf16>, vector<8x324xbf16>, vector<3x324xf32> -> vector<3x324xf32>
    %379 = arith.addf %373, %378 : vector<3x324xf32>
    %c0_335 = arith.constant 0 : index
    %c145_336 = arith.constant 145 : index
    %380 = vector.load %arg16[%c0_335, %c145_336] : memref<32x471xf32, #tpu.memory_space<vmem>>, vector<8x324xf32>
    %c6_337 = arith.constant 6 : index
    %c0_338 = arith.constant 0 : index
    %c0_339 = arith.constant 0 : index
    %381 = vector.load %arg8[%c6_337, %c0_338, %c0_339] : memref<9x3x8xbf16, #tpu.memory_space<vmem>>, vector<1x3x8xbf16>
    %382 = vector.shape_cast %381 : vector<1x3x8xbf16> to vector<3x8xbf16>
    %383 = arith.truncf %380 : vector<8x324xf32> to vector<8x324xbf16>
    %cst_340 = arith.constant dense<0.000000e+00> : vector<3x324xf32>
    %384 = tpu.matmul %382, %383, %cst_340 {dimension_numbers = #tpu.dot_dimension_numbers<[1], [0], [0], [1], [0, 0, 1, 1], [], []>} : vector<3x8xbf16>, vector<8x324xbf16>, vector<3x324xf32> -> vector<3x324xf32>
    %385 = arith.addf %379, %384 : vector<3x324xf32>
    %c0_341 = arith.constant 0 : index
    %c146_342 = arith.constant 146 : index
    %386 = vector.load %arg16[%c0_341, %c146_342] : memref<32x471xf32, #tpu.memory_space<vmem>>, vector<8x324xf32>
    %c7_343 = arith.constant 7 : index
    %c0_344 = arith.constant 0 : index
    %c0_345 = arith.constant 0 : index
    %387 = vector.load %arg8[%c7_343, %c0_344, %c0_345] : memref<9x3x8xbf16, #tpu.memory_space<vmem>>, vector<1x3x8xbf16>
    %388 = vector.shape_cast %387 : vector<1x3x8xbf16> to vector<3x8xbf16>
    %389 = arith.truncf %386 : vector<8x324xf32> to vector<8x324xbf16>
    %cst_346 = arith.constant dense<0.000000e+00> : vector<3x324xf32>
    %390 = tpu.matmul %388, %389, %cst_346 {dimension_numbers = #tpu.dot_dimension_numbers<[1], [0], [0], [1], [0, 0, 1, 1], [], []>} : vector<3x8xbf16>, vector<8x324xbf16>, vector<3x324xf32> -> vector<3x324xf32>
    %391 = arith.addf %385, %390 : vector<3x324xf32>
    %c0_347 = arith.constant 0 : index
    %c147_348 = arith.constant 147 : index
    %392 = vector.load %arg16[%c0_347, %c147_348] : memref<32x471xf32, #tpu.memory_space<vmem>>, vector<8x324xf32>
    %c8_349 = arith.constant 8 : index
    %c0_350 = arith.constant 0 : index
    %c0_351 = arith.constant 0 : index
    %393 = vector.load %arg8[%c8_349, %c0_350, %c0_351] : memref<9x3x8xbf16, #tpu.memory_space<vmem>>, vector<1x3x8xbf16>
    %394 = vector.shape_cast %393 : vector<1x3x8xbf16> to vector<3x8xbf16>
    %395 = arith.truncf %392 : vector<8x324xf32> to vector<8x324xbf16>
    %cst_352 = arith.constant dense<0.000000e+00> : vector<3x324xf32>
    %396 = tpu.matmul %394, %395, %cst_352 {dimension_numbers = #tpu.dot_dimension_numbers<[1], [0], [0], [1], [0, 0, 1, 1], [], []>} : vector<3x8xbf16>, vector<8x324xbf16>, vector<3x324xf32> -> vector<3x324xf32>
    %397 = arith.addf %391, %396 : vector<3x324xf32>
    %c0_353 = arith.constant 0 : index
    %c0_354 = arith.constant 0 : index
    %398 = vector.load %arg14[%c0_353, %c0_354] : memref<3x1xf32, #tpu.memory_space<vmem>>, vector<3x1xf32>
    %399 = vector.broadcast %398 : vector<3x1xf32> to vector<3x324xf32>
    %400 = arith.addf %397, %399 : vector<3x324xf32>
    %401 = arith.negf %400 : vector<3x324xf32>
    %402 = math.exp %401 : vector<3x324xf32>
    %cst_355 = arith.constant 1.000000e+00 : f32
    %403 = vector.broadcast %cst_355 : f32 to vector<3x324xf32>
    %404 = arith.addf %403, %402 : vector<3x324xf32>
    %405 = arith.divf %403, %404 : vector<3x324xf32>
    %406 = vector.shape_cast %405 : vector<3x324xf32> to vector<1x3x324xf32>
    %c0_356 = arith.constant 0 : index
    %c0_357 = arith.constant 0 : index
    %c0_358 = arith.constant 0 : index
    %407 = vector.load %arg15[%c0_356, %c0_357, %c0_358] : memref<1x3x324xf32, #tpu.memory_space<vmem>>, vector<1x3x324xf32>
    tpu.vector_store %arg15[%c0_356, %c0_357, %c0_358], %406 {strides = array<i32>} : memref<1x3x324xf32, #tpu.memory_space<vmem>>, vector<1x3x324xf32>,
    return
  }
  func.func @transform_0(%arg0: i32) -> (i32, i32, i32) {
    %c0_i32 = arith.constant 0 : i32
    %c0_i32_0 = arith.constant 0 : i32
    %c0_i32_1 = arith.constant 0 : i32
    return %arg0, %c0_i32, %c0_i32_0 : i32, i32, i32
  }
  func.func @transform_1(%arg0: i32) -> (i32, i32) {
    %c0_i32 = arith.constant 0 : i32
    %c0_i32_0 = arith.constant 0 : i32
    %c0_i32_1 = arith.constant 0 : i32
    return %c0_i32, %c0_i32_0 : i32, i32
  }
  func.func @transform_2(%arg0: i32) -> (i32, i32, i32) {
    %c0_i32 = arith.constant 0 : i32
    %c0_i32_0 = arith.constant 0 : i32
    %c0_i32_1 = arith.constant 0 : i32
    %c0_i32_2 = arith.constant 0 : i32
    return %c0_i32, %c0_i32_0, %c0_i32_1 : i32, i32, i32
  }
  func.func @transform_3(%arg0: i32) -> (i32, i32, i32) {
    %c0_i32 = arith.constant 0 : i32
    %c0_i32_0 = arith.constant 0 : i32
    %c0_i32_1 = arith.constant 0 : i32
    %c0_i32_2 = arith.constant 0 : i32
    return %c0_i32, %c0_i32_0, %c0_i32_1 : i32, i32, i32
  }
  func.func @transform_4(%arg0: i32) -> (i32, i32, i32) {
    %c0_i32 = arith.constant 0 : i32
    %c0_i32_0 = arith.constant 0 : i32
    %c0_i32_1 = arith.constant 0 : i32
    %c0_i32_2 = arith.constant 0 : i32
    return %c0_i32, %c0_i32_0, %c0_i32_1 : i32, i32, i32
  }
  func.func @transform_5(%arg0: i32) -> (i32, i32, i32) {
    %c0_i32 = arith.constant 0 : i32
    %c0_i32_0 = arith.constant 0 : i32
    %c0_i32_1 = arith.constant 0 : i32
    %c0_i32_2 = arith.constant 0 : i32
    return %c0_i32, %c0_i32_0, %c0_i32_1 : i32, i32, i32
  }
  func.func @transform_6(%arg0: i32) -> (i32, i32, i32) {
    %c0_i32 = arith.constant 0 : i32
    %c0_i32_0 = arith.constant 0 : i32
    %c0_i32_1 = arith.constant 0 : i32
    %c0_i32_2 = arith.constant 0 : i32
    return %c0_i32, %c0_i32_0, %c0_i32_1 : i32, i32, i32
  }
  func.func @transform_7(%arg0: i32) -> (i32, i32, i32) {
    %c0_i32 = arith.constant 0 : i32
    %c0_i32_0 = arith.constant 0 : i32
    %c0_i32_1 = arith.constant 0 : i32
    %c0_i32_2 = arith.constant 0 : i32
    return %c0_i32, %c0_i32_0, %c0_i32_1 : i32, i32, i32
  }
  func.func @transform_8(%arg0: i32) -> (i32, i32) {
    %c0_i32 = arith.constant 0 : i32
    %c0_i32_0 = arith.constant 0 : i32
    %c0_i32_1 = arith.constant 0 : i32
    return %c0_i32, %c0_i32_0 : i32, i32
  }
  func.func @transform_9(%arg0: i32) -> (i32, i32) {
    %c0_i32 = arith.constant 0 : i32
    %c0_i32_0 = arith.constant 0 : i32
    %c0_i32_1 = arith.constant 0 : i32
    return %c0_i32, %c0_i32_0 : i32, i32
  }
  func.func @transform_10(%arg0: i32) -> (i32, i32) {
    %c0_i32 = arith.constant 0 : i32
    %c0_i32_0 = arith.constant 0 : i32
    %c0_i32_1 = arith.constant 0 : i32
    return %c0_i32, %c0_i32_0 : i32, i32
  }
  func.func @transform_11(%arg0: i32) -> (i32, i32) {
    %c0_i32 = arith.constant 0 : i32
    %c0_i32_0 = arith.constant 0 : i32
    %c0_i32_1 = arith.constant 0 : i32
    return %c0_i32, %c0_i32_0 : i32, i32
  }
  func.func @transform_12(%arg0: i32) -> (i32, i32) {
    %c0_i32 = arith.constant 0 : i32
    %c0_i32_0 = arith.constant 0 : i32
    %c0_i32_1 = arith.constant 0 : i32
    return %c0_i32, %c0_i32_0 : i32, i32
  }
  func.func @transform_13(%arg0: i32) -> (i32, i32) {
    %c0_i32 = arith.constant 0 : i32
    %c0_i32_0 = arith.constant 0 : i32
    %c0_i32_1 = arith.constant 0 : i32
    return %c0_i32, %c0_i32_0 : i32, i32
  }
  func.func @transform_14(%arg0: i32) -> (i32, i32, i32) {
    %c0_i32 = arith.constant 0 : i32
    %c0_i32_0 = arith.constant 0 : i32
    %c0_i32_1 = arith.constant 0 : i32
    return %arg0, %c0_i32, %c0_i32_0 : i32, i32, i32
  }
}

</mosaic_0001>

<bundles_post_ra>
// kernel: _reveal_net_forward_impl.1
= control target key start
LH: loop header
LB: loop body
LE: loop exit
PB: predicated region body
PF: predicated region fallthrough
CT: control target
= control target key end

     0   :  { %s8311_s29 = smov 0   ;;  %s9769_s0 = inlined_call_operand.vmem [shape: f32[2,8,471], index: 0, kind: input, shape index: {}]   ;;  %s9770_s1 = inlined_call_operand.vmem [shape: f32[1,324], index: 1, kind: input, shape index: {}]   ;;  %s9771_s2 = inlined_call_operand.vmem [shape: bf16[9,8,8], index: 2, kind: input, shape index: {}]   ;;  %s9772_s3 = inlined_call_operand.vmem [shape: bf16[9,16,8], index: 3, kind: input, shape index: {}]   ;;  %s9773_s4 = inlined_call_operand.vmem [shape: bf16[9,32,16], index: 4, kind: input, shape index: {}]   ;;  %s9774_s5 = inlined_call_operand.vmem [shape: bf16[9,16,32], index: 5, kind: input, shape index: {}]   ;;  %s9775_s6 = inlined_call_operand.vmem [shape: bf16[9,8,16], index: 6, kind: input, shape index: {}]   ;;  %s9776_s7 = inlined_call_operand.vmem [shape: bf16[9,3,8], index: 7, kind: input, shape index: {}]   ;;  %s9777_s8 = inlined_call_operand.vmem [shape: f32[8,1], index: 8, kind: input, shape index: {}]   ;;  %s9778_s9 = inlined_call_operand.vmem [shape: f32[16,1], index: 9, kind: input, shape index: {}]   ;;  %s9779_s10 = inlined_call_operand.vmem [shape: f32[32,1], index: 10, kind: input, shape index: {}]   ;;  %s9780_s11 = inlined_call_operand.vmem [shape: f32[16,1], index: 11, kind: input, shape index: {}]   ;;  %s9781_s12 = inlined_call_operand.vmem [shape: f32[8,1], index: 12, kind: input, shape index: {}]   ;;  %s9782_s13 = inlined_call_operand.vmem [shape: f32[3,1], index: 13, kind: input, shape index: {}]   ;;  %s9783_s14 = inlined_call_operand.vmem [shape: f32[2,3,324], index: 14, kind: output, shape index: {}]  }
   0x1 LB: > { %s7201_s30 = sadd.s32 4294967295, %s8222_s29   ;;  %p7205_p0 = scmp.ge.s32.totalorder %s8222_s29, 1  ;;  %s8222_s29 = sphi %s8311_s29, %s24_s29  }
   0x2   : > { %p412_p1 = scmp.lt.s32.totalorder %s8222_s29, 3 }
   0x4   : > { %p413_p2 = pnand %p7205_p0, %p412_p1 }
   0x5   : > { %p458_p3 = scmp.lt.s32.totalorder (!%p413_p2), %s7201_s30, 1  ;;  %p7209_p4 = scmp.ne.s32.totalorder (!%p413_p2), %s7201_s30, 0 }
   0x6   : > { %416 = sbr.rel (%p413_p2) target bundleno = 2657 (0xa61), region = 76 }
   0xd   : > { %s459_s15 = scalar_select %p458_p3, %s7201_s30, 1 }
   0xe   : > { %472 = sbr.rel (%p7209_p4) target bundleno = 21 (0x15), region = 80  ;;  %vm476_vm0 = vcmask (!%p7209_p4), 711680   ;;  %v8224_v0 = vmov (!%p7209_p4), 0.0  }
   0xf   : > { %s7492_s16 = sshll.u32 %s459_s15, 5  ;;  %s8121_s17 = smul.u32 12, %s459_s15  ;;  %473 = vst [vmem:[#allocation2] sm:$0xff] (!%p7209_p4), %v8224_v0  ;;  %478 = vst [vmem:[#allocation2 + $0x20] sm:$0xff] (!%p7209_p4), %v8224_v0 }
  0x10   : > { %s8322_s20 = scalar_lea.vmem %s9769_s0, %s7492_s16  ;;  %482 = vst [vmem:[#allocation2 + $0x40] sm:$0xff] (!%p7209_p4), %v8224_v0  ;;  %486 = vst [vmem:[#allocation2 + $0x60] sm:$0xff] (!%p7209_p4), %v8224_v0 }
  0x11   : > { %s8327_s23 = scalar_lea.vmem %s9783_s14, %s8121_s17  ;;  %490 = vst [vmem:[#allocation3] sm:$0xff] (!%p7209_p4), %v8224_v0  ;;  %494 = vst [vmem:[#allocation3 + $0x20] sm:$0xff] (!%p7209_p4), %v8224_v0 }
  0x12   : > { %477 = vst.msk [vmem:[#allocation2 + $0x18] sm:$0xff] (!%p7209_p4), %vm476_vm0, %v8224_v0  ;;  %481 = vst.msk [vmem:[#allocation2 + $0x38] sm:$0xff] (!%p7209_p4), %vm476_vm0, %v8224_v0 }
  0x13   : > { %485 = vst.msk [vmem:[#allocation2 + $0x58] sm:$0xff] (!%p7209_p4), %vm476_vm0, %v8224_v0  ;;  %489 = vst.msk [vmem:[#allocation2 + $0x78] sm:$0xff] (!%p7209_p4), %vm476_vm0, %v8224_v0 }
  0x14   : > { %493 = vst.msk [vmem:[#allocation3 + $0x18] sm:$0xff] (!%p7209_p4), %vm476_vm0, %v8224_v0  ;;  %497 = vst.msk [vmem:[#allocation3 + $0x38] sm:$0xff] (!%p7209_p4), %vm476_vm0, %v8224_v0 }
  0x15 PF: > { %v510_v1 = vld [vmem:[%s8322_s20 + $0x10] sm:$0xff]  ;;  %v508_v2 = vld [vmem:[%s8322_s20] sm:$0xff]  ;;  %v509_v3 = vld [vmem:[%s8322_s20 + $0x8] sm:$0xff]  ;;  %s8225_s24 = smov 18   ;;  %v8226_v7 = vmov 0   ;;  %s8227_s25 = smov 19  }
  0x16   : > { %v8332_v4 = vpack.c.bf16 %v510_v1, %v510_v1  ;;  %v513_v5 = vpack.c.bf16 %v508_v2, %v508_v2  ;;  %v8337_v6 = vpack.c.bf16 %v509_v3, %v509_v3  ;;  %581 = vmatprep.mubr.bf16.mxu0 %v8226_v7  ;;  %8142 = vset.pattern.permute.xlu0 %v8226_v7  ;;  %s8228_s26 = smov 17   ;;  %s8229_s27 = smov 1   ;;  %v511_v8 = vld [vmem:[%s8322_s20 + $0x18] sm:$0xff]  ;;  %v8231_v10 = vmov 0.0   ;;  %v1481_v11 = vld [vmem:[%s9777_s8] sm:$0xff] }
  0x17   : > { %8143 = vset.pattern.permute.xlu1 %v8226_v7  ;;  %s8230_s28 = smov 127   ;;  %v8364_v9 = vpack.c.bf16 %v511_v8, %v511_v8  ;;  %7619 = vmatprep.subr.bf16.mxu1 %v8231_v10  ;;  %s8232_s30 = smov 111   ;;  %vm9786_vm1 = vmmov 0   ;;  %vm531_vm2 = vcmask 146432   ;;  %vm9785_vm3 = vcmask 1043456  }
  0x18   : > { %527 = vrot.lane.b32.xlu1 %v8332_v4, %s8225_s24  ;;  %523 = vrot.lane.b32.xlu0 %v513_v5, %s8225_s24  ;;  %s8234_s15 = smov 110   ;;  %s8235_s16 = smov 109   ;;  %vm638_vm4 = vcmask 154624   ;;  %v8410_v19 = vld [vmem:[%s9771_s2 + $0x4] sm:$0xf]  ;;  %vm9784_vm5 = vcmask 64512  }
  0x19   : > { %7621 = vmatprep.mubr.msk.bf16.mxu1 %vm9786_vm1, %v8231_v10  ;;  %vm745_vm6 = vcmask 138240   ;;  %v8426_v28 = vld [vmem:[%s9771_s2] sm:$0xf]  ;;  %vm855_vm7 = vcmask 7168   ;;  %v8446_v37 = vld [vmem:[%s9771_s2 + $0x8] sm:$0xf] }
  0x1a   : > { %vm1061_vm8 = vcmask 1039360   ;;  %v8459_v43 = vld [vmem:[%s9771_s2 + $0xc] sm:$0xf]  ;;  %v961_v46 = vsel %vm9785_vm3, %v8337_v6, 0  ;;  %v8475_v51 = vld [vmem:[%s9771_s2 + $0x10] sm:$0xf] }
  0x1b   : > { %vm9791_vm9 = vcmask 908288   ;;  %vm9790_vm10 = vcmask 900096   ;;  %v7229_v61 = vld [vmem:[%s9771_s2 + $0x14] sm:$0xf]  ;;  %vm9788_vm11 = vcmask 891904  }
  0x1c   : > { %630 = vrot.lane.b32.xlu1 %v513_v5, %s8227_s25  ;;  %525 = vrot.lane.b32.xlu0 %v8337_v6, %s8225_s24 }
  0x20   : > { %634 = vrot.lane.b32.xlu1 %v8332_v4, %s8227_s25  ;;  %632 = vrot.lane.b32.xlu0 %v8337_v6, %s8227_s25 }
  0x24   : > { %739 = vrot.lane.b32.xlu1 %v8337_v6, %s8228_s26  ;;  %737 = vrot.lane.b32.xlu0 %v513_v5, %s8228_s26 }
  0x28   : > { %847 = vrot.lane.b32.xlu1 %v513_v5, %s8229_s27  ;;  %741 = vrot.lane.b32.xlu0 %v8332_v4, %s8228_s26 }
  0x2c   : > { %851 = vrot.lane.b32.xlu1 %v8332_v4, %s8229_s27  ;;  %849 = vrot.lane.b32.xlu0 %v8337_v6, %s8229_s27 }
  0x30   : > { %1057 = vrot.lane.b32.xlu1 %v8332_v4, %s8230_s28  ;;  %1055 = vrot.lane.b32.xlu0 %v8337_v6, %s8230_s28 }
  0x34   : > { %1162 = vrot.lane.b32.xlu1 %v8337_v6, %s8232_s30  ;;  %1059 = vrot.lane.b32.xlu0 %v8364_v9, %s8230_s28 }
  0x38   : > { %1166 = vrot.lane.b32.xlu1 %v8364_v9, %s8232_s30  ;;  %1164 = vrot.lane.b32.xlu0 %v8332_v4, %s8232_s30 }
  0x3c   : > { %1271 = vrot.lane.b32.xlu1 %v8332_v4, %s8234_s15  ;;  %1269 = vrot.lane.b32.xlu0 %v8337_v6, %s8234_s15 }
  0x40   : > { %529 = vrot.lane.b32.xlu1 %v8364_v9, %s8225_s24  ;;  %1273 = vrot.lane.b32.xlu0 %v8364_v9, %s8234_s15 }
  0x44   : > { %1378 = vrot.lane.b32.xlu1 %v8332_v4, %s8235_s16  ;;  %1376 = vrot.lane.b32.xlu0 %v8337_v6, %s8235_s16 }
  0x48   : > { %636 = vrot.lane.b32.xlu1 %v8364_v9, %s8227_s25  ;;  %1380 = vrot.lane.b32.xlu0 %v8364_v9, %s8235_s16 }
  0x4c   : > { %853 = vrot.lane.b32.xlu1 %v8364_v9, %s8229_s27  ;;  %743 = vrot.lane.b32.xlu0 %v8364_v9, %s8228_s26 }
  0x50   : > { %1484 = vperm.xlu0 %8142, %v1481_v11   ;;  %v7233_v11 = vld [vmem:[%s9771_s2 + $0x18] sm:$0xf] }
  0x8a   : > { %v8400_v12 = vpop.permute.xlu1 %527  ;;  %v524_v13 = vpop.permute.xlu0 %523 }
  0x8e   : > { %v631_v14 = vpop.permute.xlu1 %630  ;;  %v526_v15 = vpop.permute.xlu0 %525 }
  0x8f   : > { %v533_v16 = vsel %vm531_vm2, %v526_v15, %v8400_v12  ;;  %v532_v17 = vsel %vm531_vm2, %v524_v13, %v526_v15 }
  0x90   : > { %7211 = vmatprep.subr.msk.bf16.mxu0 %vm9785_vm3, %v533_v16  ;;  %v541_v18 = vsel %vm9785_vm3, %v532_v17, 0 }
  0x91   : > { %550 = vmatpush1.bf16.msra.mxu0 %v541_v18  ;;  %v7237_v18 = vld [vmem:[%s9771_s2 + $0x1c] sm:$0xf] }
  0x92   : > { %v8412_v20 = vpop.permute.xlu1 %634  ;;  %v633_v21 = vpop.permute.xlu0 %632 }
  0x93   : > { %v639_v22 = vsel %vm638_vm4, %v631_v14, %v633_v21  ;;  %v640_v23 = vsel %vm638_vm4, %v633_v21, %v8412_v20  ;;  %v7241_v21 = vld [vmem:[%s9771_s2 + $0x20] sm:$0xf] }
  0x94   : > { %7212 = vmatmul.mubr.msk.bf16.vlgmr.msra.gmra.mrb[0].mxu0 %vm9784_vm5, %v8410_v19  ;;  %7214 = vmatprep.subr.msk.bf16.mxu0 %vm9785_vm3, %v640_v23  ;;  %v646_v24 = vsel %vm9785_vm3, %v639_v22, 0 }
  0x95   : > { %655 = vmatpush1.bf16.msra.mxu0 %v646_v24  ;;  %686 = vmatprep.mubr.bf16.mxu0 %v8226_v7 }
  0x96   : > { %v740_v25 = vpop.permute.xlu1 %739  ;;  %v738_v26 = vpop.permute.xlu0 %737 }
  0x97   : > { %v746_v27 = vsel %vm745_vm6, %v738_v26, %v740_v25 }
  0x98   : > { %v753_v29 = vsel %vm9785_vm3, %v746_v27, 0 }
  0x9a   : > { %v848_v30 = vpop.permute.xlu1 %847  ;;  %v8429_v31 = vpop.permute.xlu0 %741 }
  0x9b   : > { %v747_v32 = vsel %vm745_vm6, %v740_v25, %v8429_v31  ;;  %v1522_v25 = vld [vmem:[#allocation2] sm:$0xff] }
  0x9c   : > { %7215 = vmatmul.mubr.msk.bf16.vlgmr.msra.gmra.mrb[4].mxu0 %vm9784_vm5, %v8426_v28  ;;  %7218 = vmatprep.subr.msk.bf16.mxu0 %vm9785_vm3, %v747_v32  ;;  %v8583_v26 = vpack.c.bf16 %v1522_v25, %v1522_v25 }
  0x9d   : > { %762 = vmatpush1.bf16.msra.mxu0 %v753_v29  ;;  %793 = vmatprep.mubr.bf16.mxu0 %v8226_v7 }
  0x9e   : > { %v8437_v33 = vpop.permute.xlu1 %851  ;;  %v850_v34 = vpop.permute.xlu0 %849  ;;  %1544 = vrot.lane.b32.xlu1 %v8583_v26, %s8225_s24 }
  0x9f   : > { %v856_v35 = vsel %vm855_vm7, %v848_v30, %v850_v34  ;;  %v857_v36 = vsel %vm855_vm7, %v850_v34, %v8437_v33 }
  0xa0   : > { %7222 = vmatprep.subr.msk.bf16.mxu0 %vm9785_vm3, %v857_v36  ;;  %v863_v40 = vsel %vm9785_vm3, %v856_v35, 0 }
  0xa2   : > { %v1058_v38 = vpop.permute.xlu1 %1057  ;;  %v1056_v39 = vpop.permute.xlu0 %1055 }
  0xa3   : > { %v1062_v50 = vsel %vm1061_vm8, %v1056_v39, %v1058_v38 }
  0xa4   : > { %7219 = vmatmul.mubr.msk.bf16.vlgmr.msra.gmra.mrb[8].mxu0 %vm9784_vm5, %v8446_v37  ;;  %v1068_v55 = vsel %vm9785_vm3, %v1062_v50, 0 }
  0xa5   : > { %872 = vmatpush1.bf16.msra.mxu0 %v863_v40  ;;  %903 = vmatprep.mubr.bf16.mxu0 %v8226_v7 }
  0xa6   : > { %v1163_v41 = vpop.permute.xlu1 %1162  ;;  %v8452_v42 = vpop.permute.xlu0 %1059  ;;  %7226 = vmatprep.subr.msk.bf16.mxu0 %vm9785_vm3, %v8332_v4 }
  0xa7   : > { %v1063_v47 = vsel %vm1061_vm8, %v1058_v38, %v8452_v42 }
  0xaa   : > { %v8461_v44 = vpop.permute.xlu1 %1166  ;;  %v1165_v45 = vpop.permute.xlu0 %1164 }
  0xab   : > { %v1170_v57 = vsel %vm9791_vm9, %v1165_v45, %v8461_v44  ;;  %v1169_v60 = vsel %vm9791_vm9, %v1163_v41, %v1165_v45  ;;  %v1181_v22 = vsel %vm9785_vm3, %v8461_v44, 0 }
  0xac   : > { %7223 = vmatmul.mubr.msk.bf16.vlgmr.msra.gmra.mrb[12].mxu0 %vm9784_vm5, %v8459_v43  ;;  %v1175_v2 = vsel %vm9785_vm3, %v1169_v60, 0 }
  0xad   : > { %970 = vmatpush1.bf16.msra.mxu0 %v961_v46  ;;  %1001 = vmatprep.mubr.bf16.mxu0 %v8226_v7 }
  0xae   : > { %v1272_v48 = vpop.permute.xlu1 %1271  ;;  %v1270_v49 = vpop.permute.xlu0 %1269  ;;  %7230 = vmatprep.subr.msk.bf16.mxu0 %vm9785_vm3, %v1063_v47 }
  0xaf   : > { %v1276_v8 = vsel %vm9790_vm10, %v1270_v49, %v1272_v48 }
  0xb0   : > { %v1282_v14 = vsel %vm9785_vm3, %v1276_v8, 0 }
  0xb2   : > { %v530_v52 = vpop.permute.xlu1 %529  ;;  %v8477_v53 = vpop.permute.xlu0 %1273 }
  0xb3   : > { %v534_v54 = vsel %vm531_vm2, %v8400_v12, %v530_v52  ;;  %v1277_v3 = vsel %vm9790_vm10, %v1272_v48, %v8477_v53  ;;  %v1288_v23 = vsel %vm9785_vm3, %v8477_v53, 0 }
  0xb4   : > { %7227 = vmatmul.mubr.msk.bf16.vlgmr.msra.gmra.mrb[16].mxu0 %vm9784_vm5, %v8475_v51  ;;  %v547_v56 = vsel %vm9785_vm3, %v534_v54, 0 }
  0xb5   : > { %7620 = vmatpush3.bf16.msra.mxu1 %v547_v56  ;;  %1077 = vmatpush1.bf16.msra.mxu0 %v1068_v55 }
  0xb6   : > { %v1379_v58 = vpop.permute.xlu1 %1378  ;;  %v1377_v59 = vpop.permute.xlu0 %1376  ;;  %1108 = vmatprep.mubr.bf16.mxu0 %v8226_v7  ;;  %7625 = vmatprep.subr.bf16.mxu1 %v8231_v10 }
  0xb7   : > { %7234 = vmatprep.subr.msk.bf16.mxu0 %vm9785_vm3, %v1170_v57  ;;  %v1383_v17 = vsel %vm9788_vm11, %v1377_v59, %v1379_v58 }
  0xb8   : > { %7622 = vmatmul.mubr.msk.bf16.vlgmr.msra.gmra.mrb[0].mxu1 %vm9784_vm5, %v8410_v19  ;;  %v1389_v19 = vsel %vm9785_vm3, %v1383_v17, 0 }
  0xb9   : > { %7627 = vmatprep.mubr.msk.bf16.mxu1 %vm9786_vm1, %v8231_v10 }
  0xba   : > { %v637_v62 = vpop.permute.xlu1 %636  ;;  %v8498_v63 = vpop.permute.xlu0 %1380 }
  0xbb   : > { %v641_v0 = vsel %vm638_vm4, %v8412_v20, %v637_v62  ;;  %v1384_v13 = vsel %vm9788_vm11, %v1379_v58, %v8498_v63  ;;  %v967_v20 = vsel %vm9785_vm3, %v8364_v9, 0  ;;  %v1074_v9 = vsel %vm9785_vm3, %v8452_v42, 0 }
  0xbc   : > { %v652_v1 = vsel %vm9785_vm3, %v641_v0, 0  ;;  %7231 = vmatmul.mubr.msk.bf16.vlgmr.msra.gmra.mrb[20].mxu0 %vm9784_vm5, %v7229_v61  ;;  %v1395_v24 = vsel %vm9785_vm3, %v8498_v63, 0 }
  0xbd   : > { %7626 = vmatpush3.bf16.msra.mxu1 %v652_v1  ;;  %1184 = vmatpush1.bf16.msra.mxu0 %v1175_v2 }
  0xbe   : > { %v744_v4 = vpop.permute.xlu0 %743  ;;  %7631 = vmatprep.subr.bf16.mxu1 %v8231_v10  ;;  %1215 = vmatprep.mubr.bf16.mxu0 %v8226_v7  ;;  %v854_v12 = vpop.permute.xlu1 %853 }
  0xbf   : > { %v748_v5 = vsel %vm745_vm6, %v8429_v31, %v744_v4  ;;  %7238 = vmatprep.subr.msk.bf16.mxu0 %vm9785_vm3, %v1277_v3  ;;  %v858_v15 = vsel %vm855_vm7, %v8437_v33, %v854_v12 }
  0xc0   : > { %v759_v6 = vsel %vm9785_vm3, %v748_v5, 0  ;;  %7628 = vmatmul.mubr.msk.bf16.vlgmr.msra.gmra.mrb[4].mxu1 %vm9784_vm5, %v8426_v28  ;;  %v869_v16 = vsel %vm9785_vm3, %v858_v15, 0 }
  0xc1   : > { %7632 = vmatpush3.bf16.msra.mxu1 %v759_v6  ;;  %7633 = vmatprep.mubr.msk.bf16.mxu1 %vm9786_vm1, %v8231_v10 }
  0xc2   : > { %7637 = vmatprep.subr.bf16.mxu1 %v8231_v10 }
  0xc4   : > { %7235 = vmatmul.mubr.msk.bf16.vlgmr.msra.gmra.mrb[24].mxu0 %vm9784_vm5, %v7233_v11 }
  0xc5   : > { %1291 = vmatpush1.bf16.msra.mxu0 %v1282_v14  ;;  %1322 = vmatprep.mubr.bf16.mxu0 %v8226_v7 }
  0xc6   : > { %7242 = vmatprep.subr.msk.bf16.mxu0 %vm9785_vm3, %v1384_v13 }
  0xc8   : > { %7634 = vmatmul.mubr.msk.bf16.vlgmr.msra.gmra.mrb[8].mxu1 %vm9784_vm5, %v8446_v37 }
  0xc9   : > { %7638 = vmatpush3.bf16.msra.mxu1 %v869_v16  ;;  %7639 = vmatprep.mubr.msk.bf16.mxu1 %vm9786_vm1, %v8231_v10 }
  0xca   : > { %7643 = vmatprep.subr.bf16.mxu1 %v8231_v10 }
  0xcc   : > { %7239 = vmatmul.mubr.msk.bf16.vlgmr.msra.gmra.mrb[28].mxu0 %vm9784_vm5, %v7237_v18 }
  0xcd   : > { %1398 = vmatpush1.bf16.msra.mxu0 %v1389_v19  ;;  %1429 = vmatprep.mubr.bf16.mxu0 %v8226_v7 }
  0xd0   : > { %7640 = vmatmul.mubr.msk.bf16.vlgmr.msra.gmra.mrb[12].mxu1 %vm9784_vm5, %v8459_v43 }
  0xd1   : > { %7644 = vmatpush3.bf16.msra.mxu1 %v967_v20  ;;  %7645 = vmatprep.mubr.msk.bf16.mxu1 %vm9786_vm1, %v8231_v10 }
  0xd2   : > { %7649 = vmatprep.subr.bf16.mxu1 %v8231_v10 }
  0xd4   : > { %7243 = vmatmul.mubr.msk.bf16.vlgmr.msra.gmra.mrb[32].mxu0 %vm9784_vm5, %v7241_v21 }
  0xd5   : > { %1599 = vmatprep.mubr.bf16.mxu0 %v8226_v7 }
  0xd8   : > { %7646 = vmatmul.mubr.msk.bf16.vlgmr.msra.gmra.mrb[16].mxu1 %vm9784_vm5, %v8475_v51 }
  0xd9   : > { %7650 = vmatpush3.bf16.msra.mxu1 %v1074_v9  ;;  %7651 = vmatprep.mubr.msk.bf16.mxu1 %vm9786_vm1, %v8231_v10  ;;  %v506_v9 = vld [vmem:[%s9770_s1] sm:$0x7] }
  0xda   : > { %7655 = vmatprep.subr.bf16.mxu1 %v8231_v10  ;;  %vm507_vm12 = vcmp.ne.f32.partialorder %v506_v9, 0.0 }
  0xe0   : > { %7652 = vmatmul.mubr.msk.bf16.vlgmr.msra.gmra.mrb[20].mxu1 %vm9784_vm5, %v7229_v61 }
  0xe1   : > { %7656 = vmatpush3.bf16.msra.mxu1 %v1181_v22  ;;  %7657 = vmatprep.mubr.msk.bf16.mxu1 %vm9786_vm1, %v8231_v10 }
  0xe2   : > { %7661 = vmatprep.subr.bf16.mxu1 %v8231_v10 }
  0xe8   : > { %7658 = vmatmul.mubr.msk.bf16.vlgmr.msra.gmra.mrb[24].mxu1 %vm9784_vm5, %v7233_v11 }
  0xe9   : > { %7662 = vmatpush3.bf16.msra.mxu1 %v1288_v23  ;;  %7663 = vmatprep.mubr.msk.bf16.mxu1 %vm9786_vm1, %v8231_v10 }
  0xea   : > { %7667 = vmatprep.subr.bf16.mxu1 %v8231_v10 }
  0xf0   : > { %7664 = vmatmul.mubr.msk.bf16.vlgmr.msra.gmra.mrb[28].mxu1 %vm9784_vm5, %v7237_v18  ;;  %v1500_v18 = vlaneseq }
  0xf1   : > { %7668 = vmatpush3.bf16.msra.mxu1 %v1395_v24  ;;  %7669 = vmatprep.mubr.msk.bf16.mxu1 %vm9786_vm1, %v8231_v10 }
  0xf2   : > { %7673 = vmatprep.subr.bf16.mxu1 %v8231_v10  ;;  %v8590_v24 = vshrl.u32 %v1500_v18, 7 }
  0xf8   : > { %7670 = vmatmul.mubr.msk.bf16.vlgmr.msra.gmra.mrb[32].mxu1 %vm9784_vm5, %v7241_v21 }
  0xf9   : > { %7675 = vmatprep.mubr.msk.bf16.mxu1 %vm9786_vm1, %v8231_v10 }
 0x167   : > { %v583_v27 = vpop.f32.mrb[0].mxu0 }
 0x168   : > { %v585_v28 = vpop.f32.mrb[1].mxu0 }
 0x169   : > { %v587_v29 = vpop.f32.mrb[2].mxu0 }
 0x16a   : > { %v588_v30 = vpop.f32.mrb[3].mxu0 }
 0x16f   : > { %v688_v31 = vpop.f32.mrb[4].mxu0 }
 0x170   : > { %v689_v32 = vadd.f32 %v688_v31, %v583_v27  ;;  %v690_v33 = vpop.f32.mrb[5].mxu0 }
 0x171   : > { %v691_v34 = vadd.f32 %v690_v33, %v585_v28  ;;  %v692_v35 = vpop.f32.mrb[6].mxu0 }
 0x172   : > { %v693_v36 = vpop.f32.mrb[7].mxu0  ;;  %v1499_v35 = vsel %vm507_vm12, 1, %v8226_v7 }
 0x177   : > { %v795_v37 = vpop.f32.mrb[8].mxu0 }
 0x178   : > { %v842_v38 = vadd.f32 %v795_v37, %v689_v32  ;;  %v797_v39 = vpop.f32.mrb[9].mxu0  ;;  %v1502_v32 = vsub.s32 0, %v8590_v24 }
 0x179   : > { %v843_v40 = vadd.f32 %v797_v39, %v691_v34  ;;  %v799_v41 = vpop.f32.mrb[10].mxu0  ;;  %v1506_v34 = vsub.s32 1, %v8590_v24 }
 0x17a   : > { %v800_v42 = vpop.f32.mrb[11].mxu0  ;;  %v8595_v41 = vrot.slane %v1499_v35, %v1502_v32 }
 0x17c   : > { %vm1512_vm14 = vcmp.eq.s32.totalorder %v8595_v41, 1 }
 0x17f   : > { %v905_v43 = vpop.f32.mrb[12].mxu0 }
 0x180   : > { %v952_v44 = vadd.f32 %v905_v43, %v842_v38  ;;  %v907_v45 = vpop.f32.mrb[13].mxu0  ;;  %v1485_v38 = vpop.permute.xlu0 %1484 }
 0x181   : > { %v953_v46 = vadd.f32 %v907_v45, %v843_v40  ;;  %v909_v47 = vpop.f32.mrb[14].mxu0 }
 0x182   : > { %v910_v48 = vpop.f32.mrb[15].mxu0 }
 0x187   : > { %v1003_v49 = vpop.f32.mrb[16].mxu0 }
 0x188   : > { %v1050_v50 = vadd.f32 %v1003_v49, %v952_v44  ;;  %v1005_v51 = vpop.f32.mrb[17].mxu0  ;;  %v8597_v44 = vrot.slane %v1499_v35, %v1506_v34 }
 0x189   : > { %v1051_v52 = vadd.f32 %v1005_v51, %v953_v46  ;;  %v1007_v53 = vpop.f32.mrb[18].mxu0 }
 0x18a   : > { %v1008_v54 = vpop.f32.mrb[19].mxu0  ;;  %vm1513_vm0 = vcmp.eq.s32.totalorder %v8597_v44, 1 }
 0x18b   : > { %v624_v55 = vpop.f32.mrb[0].mxu1 }
 0x18c   : > { %v7623_v56 = vpop.f32.mrb[1].mxu1 }
 0x18d   : > { %v627_v57 = vpop.f32.mrb[2].mxu1 }
 0x18e   : > { %v7624_v58 = vpop.f32.mrb[3].mxu1 }
 0x18f   : > { %v1110_v59 = vpop.f32.mrb[20].mxu0 }
 0x190   : > { %v1157_v60 = vadd.f32 %v1110_v59, %v1050_v50  ;;  %v1112_v61 = vpop.f32.mrb[21].mxu0 }
 0x191   : > { %v1158_v62 = vadd.f32 %v1112_v61, %v1051_v52  ;;  %v1114_v63 = vpop.f32.mrb[22].mxu0 }
 0x192   : > { %v1115_v0 = vpop.f32.mrb[23].mxu0 }
 0x193   : > { %v729_v1 = vpop.f32.mrb[4].mxu1 }
 0x194   : > { %v730_v2 = vadd.f32 %v729_v1, %v624_v55  ;;  %v7629_v3 = vpop.f32.mrb[5].mxu1 }
 0x195   : > { %v732_v4 = vpop.f32.mrb[6].mxu1 }
 0x196   : > { %v7630_v5 = vpop.f32.mrb[7].mxu1 }
 0x197   : > { %v1217_v6 = vpop.f32.mrb[24].mxu0 }
 0x198   : > { %v1264_v8 = vadd.f32 %v1217_v6, %v1157_v60  ;;  %v1219_v11 = vpop.f32.mrb[25].mxu0 }
 0x199   : > { %v1265_v12 = vadd.f32 %v1219_v11, %v1158_v62  ;;  %v1221_v13 = vpop.f32.mrb[26].mxu0 }
 0x19a   : > { %v1222_v14 = vpop.f32.mrb[27].mxu0 }
 0x19b   : > { %v836_v15 = vpop.f32.mrb[8].mxu1 }
 0x19c   : > { %v844_v16 = vadd.f32 %v836_v15, %v730_v2  ;;  %v7635_v17 = vpop.f32.mrb[9].mxu1  ;;  %v1510_v15 = vsub.s32 2, %v8590_v24 }
 0x19d   : > { %v839_v19 = vpop.f32.mrb[10].mxu1 }
 0x19e   : > { %v7636_v20 = vpop.f32.mrb[11].mxu1  ;;  %v8636_v17 = vrot.slane %v1499_v35, %v1510_v15  ;;  %v8685_v35 = vld [vmem:[%s9772_s3 + $0x8] sm:$0xff]  }
 0x19f   : > { %v1324_v21 = vpop.f32.mrb[28].mxu0 }
 0x1a0   : > { %v1371_v22 = vadd.f32 %v1324_v21, %v1264_v8  ;;  %v1326_v23 = vpop.f32.mrb[29].mxu0 }
 0x1a1   : > { %v1372_v25 = vadd.f32 %v1326_v23, %v1265_v12  ;;  %v1328_v27 = vpop.f32.mrb[30].mxu0 }
 0x1a2   : > { %v1329_v28 = vpop.f32.mrb[31].mxu0  ;;  %v2587_v27 = vld [vmem:[%s9778_s9] sm:$0xff] }
 0x1a3   : > { %v946_v29 = vpop.f32.mrb[12].mxu1  ;;  %v1545_v28 = vpop.permute.xlu1 %1544 }
 0x1a4   : > { %v954_v30 = vadd.f32 %v946_v29, %v844_v16  ;;  %v7641_v31 = vpop.f32.mrb[13].mxu1  ;;  %v2588_v29 = vld [vmem:[%s9778_s9 + $0x8] sm:$0xff] }
 0x1a5   : > { %v949_v33 = vpop.f32.mrb[14].mxu1 }
 0x1a6   : > { %v7642_v36 = vpop.f32.mrb[15].mxu1 }
 0x1a7   : > { %v1431_v37 = vpop.f32.mrb[32].mxu0 }
 0x1a8   : > { %v1478_v39 = vadd.f32 %v1431_v37, %v1371_v22  ;;  %v1433_v40 = vpop.f32.mrb[33].mxu0 }
 0x1a9   : > { %v1479_v42 = vadd.f32 %v1433_v40, %v1372_v25  ;;  %v1435_v43 = vpop.f32.mrb[34].mxu0 }
 0x1aa   : > { %v1487_v45 = vadd.f32 %v1485_v38, %v1478_v39  ;;  %v1436_v46 = vpop.f32.mrb[35].mxu0 }
 0x1ab   : > { %v1488_v47 = vadd.f32 %v1485_v38, %v1479_v42  ;;  %v1044_v48 = vpop.f32.mrb[16].mxu1 }
 0x1ac   : > { %vm1490_vm13 = vcmp.ge.f32.partialorder %v1487_v45, 0.0  ;;  %v1493_v49 = vmul.f32 0.01, %v1487_v45  ;;  %v1052_v50 = vadd.f32 %v1044_v48, %v954_v30  ;;  %v7647_v51 = vpop.f32.mrb[17].mxu1  ;;  %v8145_v48 = vld [vmem:[%s9772_s3] sm:$0xff]  }
 0x1ad   : > { %vm1491_vm15 = vcmp.ge.f32.partialorder %v1488_v47, 0.0  ;;  %v1494_v52 = vmul.f32 0.01, %v1488_v47  ;;  %v1047_v53 = vpop.f32.mrb[18].mxu1 }
 0x1ae   : > { %v1496_v54 = vsel %vm1490_vm13, %v1487_v45, %v1493_v49  ;;  %v7648_v55 = vpop.f32.mrb[19].mxu1  ;;  %vm1514_vm13 = vcmp.eq.s32.totalorder %v8636_v17, 1  ;;  %v7112_v17 = vld [vmem:[%s9782_s13] sm:$0x7] }
 0x1af   : > { %v1497_v56 = vsel %vm1491_vm15, %v1488_v47, %v1494_v52  ;;  %v1515_v57 = vsel %vm1512_vm14, %v1496_v54, 0.0  ;;  %vm1520_vm15 = vcmask 556032   ;;  %v8711_v55 = vld [vmem:[%s9772_s3 + $0x10] sm:$0xff]  }
 0x1b0   : > { %v1516_v58 = vsel %vm1513_vm0, %v1497_v56, 0.0  ;;  %v8605_v59 = vpack.c.bf16 %v1515_v57, %v1515_v57 }
 0x1b1   : > { %v8607_v60 = vpack.c.bf16 %v1516_v58, %v1516_v58 }
 0x1b2   : > { %1546 = vrot.lane.b32.xlu1 %v8605_v59, %s8225_s24 }
 0x1b3   : > { %v1151_v61 = vpop.f32.mrb[20].mxu1  ;;  %1548 = vrot.lane.b32.xlu0 %v8607_v60, %s8225_s24 }
 0x1b4   : > { %v1159_v62 = vadd.f32 %v1151_v61, %v1052_v50  ;;  %v7653_v63 = vpop.f32.mrb[21].mxu1  ;;  %v8723_v61 = vld [vmem:[%s9772_s3 + $0x18] sm:$0xff]  }
 0x1b5   : > { %v1154_v0 = vpop.f32.mrb[22].mxu1 }
 0x1b6   : > { %v7654_v1 = vpop.f32.mrb[23].mxu1  ;;  %1656 = vrot.lane.b32.xlu1 %v8583_v26, %s8227_s25  ;;  %v2017_v0 = vsel %vm9785_vm3, %v8605_v59, 0 }
 0x1b7   : > { %1658 = vrot.lane.b32.xlu0 %v8605_v59, %s8227_s25 }
 0x1ba   : > { %1660 = vrot.lane.b32.xlu1 %v8607_v60, %s8227_s25 }
 0x1bb   : > { %v1258_v2 = vpop.f32.mrb[24].mxu1  ;;  %1771 = vrot.lane.b32.xlu0 %v8583_v26, %s8228_s26 }
 0x1bc   : > { %v1266_v3 = vadd.f32 %v1258_v2, %v1159_v62  ;;  %v7659_v4 = vpop.f32.mrb[25].mxu1 }
 0x1bd   : > { %v1261_v5 = vpop.f32.mrb[26].mxu1 }
 0x1be   : > { %v7660_v6 = vpop.f32.mrb[27].mxu1  ;;  %1773 = vrot.lane.b32.xlu1 %v8605_v59, %s8228_s26  ;;  %v8740_v5 = vld [vmem:[%s9772_s3 + $0x20] sm:$0xff]  }
 0x1bf   : > { %1775 = vrot.lane.b32.xlu0 %v8607_v60, %s8228_s26 }
 0x1c2   : > { %1892 = vrot.lane.b32.xlu1 %v8583_v26, %s8229_s27 }
 0x1c3   : > { %v1365_v8 = vpop.f32.mrb[28].mxu1  ;;  %1894 = vrot.lane.b32.xlu0 %v8605_v59, %s8229_s27 }
 0x1c4   : > { %v1373_v11 = vadd.f32 %v1365_v8, %v1266_v3  ;;  %v7665_v12 = vpop.f32.mrb[29].mxu1 }
 0x1c5   : > { %v1368_v13 = vpop.f32.mrb[30].mxu1 }
 0x1c6   : > { %v7666_v14 = vpop.f32.mrb[31].mxu1  ;;  %1896 = vrot.lane.b32.xlu1 %v8607_v60, %s8229_s27 }
 0x1c7   : > { %2123 = vrot.lane.b32.xlu0 %v8605_v59, %s8230_s28 }
 0x1ca   : > { %2125 = vrot.lane.b32.xlu1 %v8607_v60, %s8230_s28 }
 0x1cb   : > { %v1472_v26 = vpop.f32.mrb[32].mxu1 }
 0x1cc   : > { %v1480_v16 = vadd.f32 %v1472_v26, %v1373_v11  ;;  %v7671_v18 = vpop.f32.mrb[33].mxu1 }
 0x1cd   : > { %v1475_v19 = vpop.f32.mrb[34].mxu1 }
 0x1ce   : > { %v1489_v20 = vadd.f32 %v1485_v38, %v1480_v16  ;;  %2241 = vrot.lane.b32.xlu1 %v8605_v59, %s8232_s30  ;;  %v7672_v21 = vpop.f32.mrb[35].mxu1 }
 0x1cf   : > { %v8149_v21 = vld [vmem:[%s9772_s3 + $0x28] sm:$0xff]  }
 0x1d0   : > { %vm1492_vm12 = vcmp.ge.f32.partialorder %v1489_v20, 0.0  ;;  %v1495_v9 = vmul.f32 0.01, %v1489_v20 }
 0x1d2   : > { %v1498_v22 = vsel %vm1492_vm12, %v1489_v20, %v1495_v9 }
 0x1d3   : > { %v1517_v23 = vsel %vm1514_vm13, %v1498_v22, 0.0 }
 0x1d4   : > { %1521 = vst.msk [vmem:[#allocation2 + $0x18] sm:$0xff] %vm1520_vm15, %v1517_v23 }
 0x1db   : > { %v1525_v24 = vld [vmem:[#allocation2 + $0x18] sm:$0xff] }
 0x1dc   : > { %v8644_v25 = vpack.c.bf16 %v1525_v24, %v1525_v24 }
 0x1de   : > { %2127 = vrot.lane.b32.xlu0 %v8644_v25, %s8230_s28  ;;  %2245 = vrot.lane.b32.xlu1 %v8644_v25, %s8232_s30 }
 0x1e2   : > { %2243 = vrot.lane.b32.xlu0 %v8607_v60, %s8232_s30  ;;  %1662 = vrot.lane.b32.xlu1 %v8644_v25, %s8227_s25 }
 0x1e6   : > { %1550 = vrot.lane.b32.xlu0 %v8644_v25, %s8225_s24  ;;  %2361 = vrot.lane.b32.xlu1 %v8607_v60, %s8234_s15 }
 0x1ea   : > { %2359 = vrot.lane.b32.xlu0 %v8605_v59, %s8234_s15  ;;  %1777 = vrot.lane.b32.xlu1 %v8644_v25, %s8228_s26 }
 0x1ee   : > { %2363 = vrot.lane.b32.xlu0 %v8644_v25, %s8234_s15  ;;  %2479 = vrot.lane.b32.xlu1 %v8607_v60, %s8235_s16 }
 0x1f2   : > { %2477 = vrot.lane.b32.xlu0 %v8605_v59, %s8235_s16  ;;  %1898 = vrot.lane.b32.xlu1 %v8644_v25, %s8229_s27 }
 0x1f6   : > { %2481 = vrot.lane.b32.xlu0 %v8644_v25, %s8235_s16  ;;  %2596 = vperm.xlu1 %8143, %v2588_v29  }
 0x1fa   : > { %2591 = vperm.xlu0 %8142, %v2587_v27  }
 0x224   : > { %v1547_v30 = vpop.permute.xlu1 %1546 }
 0x225   : > { %v1552_v31 = vsel %vm531_vm2, %v1545_v28, %v1547_v30  ;;  %v1549_v32 = vpop.permute.xlu0 %1548 }
 0x226   : > { %v1553_v33 = vsel %vm531_vm2, %v1547_v30, %v1549_v32  ;;  %v1559_v34 = vsel %vm9785_vm3, %v1552_v31, 0 }
 0x227   : > { %7248 = vmatprep.subr.msk.bf16.mxu0 %vm9785_vm3, %v1553_v33 }
 0x228   : > { %1568 = vmatpush1.bf16.msra.mxu0 %v1559_v34  ;;  %v1657_v36 = vpop.permute.xlu1 %1656 }
 0x229   : > { %v1659_v37 = vpop.permute.xlu0 %1658 }
 0x22a   : > { %v1664_v38 = vsel %vm638_vm4, %v1657_v36, %v1659_v37 }
 0x22b   : > { %7249 = vmatmul.mubr.msk.bf16.vlgmr.msra.gmra.mrb[36].mxu0 %vm9784_vm5, %v8685_v35  ;;  %v1671_v43 = vsel %vm9785_vm3, %v1664_v38, 0  ;;  %v8151_v38 = vld [vmem:[%s9772_s3 + $0x38] sm:$0xff]  }
 0x22c   : > { %v1661_v39 = vpop.permute.xlu1 %1660  ;;  %1711 = vmatprep.mubr.bf16.mxu0 %v8226_v7 }
 0x22d   : > { %v1772_v40 = vpop.permute.xlu0 %1771  ;;  %v1665_v42 = vsel %vm638_vm4, %v1659_v37, %v1661_v39  ;;  %v2023_v37 = vsel %vm9785_vm3, %v8644_v25, 0 }
 0x22e   : > { %7252 = vmatprep.subr.msk.bf16.mxu0 %vm9785_vm3, %v1665_v42 }
 0x22f   : > { %1680 = vmatpush1.bf16.msra.mxu0 %v1671_v43  ;;  %v8152_v43 = vld [vmem:[%s9772_s3 + $0x40] sm:$0xff]  }
 0x230   : > { %v1774_v45 = vpop.permute.xlu1 %1773 }
 0x231   : > { %v1776_v46 = vpop.permute.xlu0 %1775  ;;  %v1779_v49 = vsel %vm745_vm6, %v1772_v40, %v1774_v45 }
 0x232   : > { %v1780_v47 = vsel %vm745_vm6, %v1774_v45, %v1776_v46  ;;  %v1786_v51 = vsel %vm9785_vm3, %v1779_v49, 0 }
 0x233   : > { %7258 = vmatprep.subr.msk.bf16.mxu0 %vm9785_vm3, %v1780_v47 }
 0x234   : > { %v1893_v50 = vpop.permute.xlu1 %1892 }
 0x235   : > { %v1895_v52 = vpop.permute.xlu0 %1894 }
 0x236   : > { %v1900_v56 = vsel %vm855_vm7, %v1893_v50, %v1895_v52 }
 0x237   : > { %7253 = vmatmul.mubr.msk.bf16.vlgmr.msra.gmra.mrb[36].mxu0 %vm9784_vm5, %v8145_v48  ;;  %v1907_v57 = vsel %vm9785_vm3, %v1900_v56, 0 }
 0x238   : > { %1795 = vmatpush1.bf16.msra.mxu0 %v1786_v51  ;;  %v8702_v53 = vpop.permute.xlu1 %1896  ;;  %1826 = vmatprep.mubr.bf16.mxu0 %v8226_v7 }
 0x239   : > { %v1901_v54 = vsel %vm855_vm7, %v1895_v52, %v8702_v53  ;;  %v2124_v62 = vpop.permute.xlu0 %2123 }
 0x23a   : > { %7264 = vmatprep.subr.msk.bf16.mxu0 %vm9785_vm3, %v1901_v54 }
 0x23c   : > { %v2126_v58 = vpop.permute.xlu1 %2125 }
 0x23d   : > { %v2129_v59 = vsel %vm1061_vm8, %v2124_v62, %v2126_v58 }
 0x23e   : > { %v2135_v14 = vsel %vm9785_vm3, %v2129_v59, 0 }
 0x240   : > { %v2242_v63 = vpop.permute.xlu1 %2241 }
 0x243   : > { %7259 = vmatmul.mubr.msk.bf16.vlgmr.msra.gmra.mrb[36].mxu0 %vm9784_vm5, %v8711_v55 }
 0x244   : > { %1916 = vmatpush1.bf16.msra.mxu0 %v1907_v57  ;;  %1947 = vmatprep.mubr.bf16.mxu0 %v8226_v7 }
 0x245   : > { %7270 = vmatprep.subr.msk.bf16.mxu0 %vm9785_vm3, %v8607_v60 }
 0x24f   : > { %7265 = vmatmul.mubr.msk.bf16.vlgmr.msra.gmra.mrb[36].mxu0 %vm9784_vm5, %v8723_v61 }
 0x250   : > { %v8729_v1 = vpop.permute.xlu0 %2127  ;;  %v8731_v2 = vpop.permute.xlu1 %2245  ;;  %2026 = vmatpush1.bf16.msra.mxu0 %v2017_v0  ;;  %2057 = vmatprep.mubr.bf16.mxu0 %v8226_v7 }
 0x251   : > { %v2130_v60 = vsel %vm1061_vm8, %v2126_v58, %v8729_v1  ;;  %v2141_v25 = vsel %vm9785_vm3, %v8729_v1, 0  ;;  %v2259_v42 = vsel %vm9785_vm3, %v8731_v2, 0 }
 0x252   : > { %7276 = vmatprep.subr.msk.bf16.mxu0 %vm9785_vm3, %v2130_v60 }
 0x254   : > { %v2244_v3 = vpop.permute.xlu0 %2243  ;;  %v1663_v4 = vpop.permute.xlu1 %1662 }
 0x255   : > { %v1666_v13 = vsel %vm638_vm4, %v1661_v39, %v1663_v4  ;;  %v2248_v26 = vsel %vm9791_vm9, %v2244_v3, %v8731_v2  ;;  %v2247_v9 = vsel %vm9791_vm9, %v2242_v63, %v2244_v3 }
 0x256   : > { %v1677_v16 = vsel %vm9785_vm3, %v1666_v13, 0  ;;  %v2253_v27 = vsel %vm9785_vm3, %v2247_v9, 0 }
 0x258   : > { %v1551_v6 = vpop.permute.xlu0 %1550  ;;  %v2362_v8 = vpop.permute.xlu1 %2361 }
 0x259   : > { %v1554_v11 = vsel %vm531_vm2, %v1549_v32, %v1551_v6  ;;  %v8150_v32 = vld [vmem:[%s9772_s3 + $0x30] sm:$0xff]  }
 0x25a   : > { %v1565_v12 = vsel %vm9785_vm3, %v1554_v11, 0 }
 0x25b   : > { %7674 = vmatpush3.bf16.msra.mxu1 %v1565_v12  ;;  %7271 = vmatmul.mubr.msk.bf16.vlgmr.msra.gmra.mrb[36].mxu0 %vm9784_vm5, %v8740_v5 }
 0x25c   : > { %v1778_v15 = vpop.permute.xlu1 %1777  ;;  %7679 = vmatprep.subr.bf16.mxu1 %v8231_v10  ;;  %2144 = vmatpush1.bf16.msra.mxu0 %v2135_v14  ;;  %v2360_v18 = vpop.permute.xlu0 %2359 }
 0x25d   : > { %7282 = vmatprep.subr.msk.bf16.mxu0 %vm9785_vm3, %v2248_v26  ;;  %2175 = vmatprep.mubr.bf16.mxu0 %v8226_v7  ;;  %v1781_v20 = vsel %vm745_vm6, %v1776_v46, %v1778_v15  ;;  %v2365_v33 = vsel %vm9790_vm10, %v2360_v18, %v2362_v8 }
 0x25e   : > { %7676 = vmatmul.mubr.msk.bf16.vlgmr.msra.gmra.mrb[36].mxu1 %vm9784_vm5, %v8685_v35  ;;  %v1792_v22 = vsel %vm9785_vm3, %v1781_v20, 0  ;;  %v2371_v35 = vsel %vm9785_vm3, %v2365_v33, 0 }
 0x25f   : > { %7680 = vmatpush3.bf16.msra.mxu1 %v1677_v16  ;;  %7681 = vmatprep.mubr.msk.bf16.mxu1 %vm9786_vm1, %v8231_v10 }
 0x260   : > { %7685 = vmatprep.subr.bf16.mxu1 %v8231_v10  ;;  %v2480_v19 = vpop.permute.xlu1 %2479  ;;  %v2364_v23 = vpop.permute.xlu0 %2363 }
 0x261   : > { %v2366_v28 = vsel %vm9790_vm10, %v2362_v8, %v2364_v23  ;;  %v2377_v45 = vsel %vm9785_vm3, %v2364_v23, 0 }
 0x264   : > { %v1899_v24 = vpop.permute.xlu1 %1898  ;;  %v2478_v30 = vpop.permute.xlu0 %2477 }
 0x265   : > { %v1902_v29 = vsel %vm855_vm7, %v8702_v53, %v1899_v24  ;;  %v2483_v39 = vsel %vm9788_vm11, %v2478_v30, %v2480_v19 }
 0x266   : > { %7682 = vmatmul.mubr.msk.bf16.vlgmr.msra.gmra.mrb[40].mxu1 %vm9784_vm5, %v8145_v48  ;;  %v1913_v31 = vsel %vm9785_vm3, %v1902_v29, 0  ;;  %v2489_v40 = vsel %vm9785_vm3, %v2483_v39, 0 }
 0x267   : > { %7686 = vmatpush3.bf16.msra.mxu1 %v1792_v22  ;;  %7687 = vmatprep.mubr.msk.bf16.mxu1 %vm9786_vm1, %v8231_v10 }
 0x268   : > { %7691 = vmatprep.subr.bf16.mxu1 %v8231_v10  ;;  %7277 = vmatmul.mubr.msk.bf16.vlgmr.msra.gmra.mrb[36].mxu0 %vm9784_vm5, %v8149_v21  ;;  %v2482_v34 = vpop.permute.xlu0 %2481 }
 0x269   : > { %2262 = vmatpush1.bf16.msra.mxu0 %v2253_v27  ;;  %2293 = vmatprep.mubr.bf16.mxu0 %v8226_v7  ;;  %v2484_v36 = vsel %vm9788_vm11, %v2480_v19, %v2482_v34  ;;  %v2495_v46 = vsel %vm9785_vm3, %v2482_v34, 0  ;;  %vm9789_vm11 = vcmask 130048  }
 0x26a   : > { %7288 = vmatprep.subr.msk.bf16.mxu0 %vm9785_vm3, %v2366_v28 }
 0x26e   : > { %7688 = vmatmul.mubr.msk.bf16.vlgmr.msra.gmra.mrb[44].mxu1 %vm9784_vm5, %v8711_v55 }
 0x26f   : > { %7692 = vmatpush3.bf16.msra.mxu1 %v1913_v31  ;;  %7693 = vmatprep.mubr.msk.bf16.mxu1 %vm9786_vm1, %v8231_v10 }
 0x270   : > { %7697 = vmatprep.subr.bf16.mxu1 %v8231_v10 }
 0x274   : > { %7283 = vmatmul.mubr.msk.bf16.vlgmr.msra.gmra.mrb[36].mxu0 %vm9784_vm5, %v8150_v32 }
 0x275   : > { %2380 = vmatpush1.bf16.msra.mxu0 %v2371_v35  ;;  %2411 = vmatprep.mubr.bf16.mxu0 %v8226_v7  ;;  %v2597_v9 = vpop.permute.xlu1 %2596 }
 0x276   : > { %7694 = vmatmul.mubr.msk.bf16.vlgmr.msra.gmra.mrb[48].mxu1 %vm9784_vm5, %v8723_v61  ;;  %7294 = vmatprep.subr.msk.bf16.mxu0 %vm9785_vm3, %v2484_v36 }
 0x277   : > { %7698 = vmatpush3.bf16.msra.mxu1 %v2023_v37  ;;  %7699 = vmatprep.mubr.msk.bf16.mxu1 %vm9786_vm1, %v8231_v10 }
 0x278   : > { %7703 = vmatprep.subr.bf16.mxu1 %v8231_v10 }
 0x279   : > { %v2592_v20 = vpop.permute.xlu0 %2591 }
 0x27e   : > { %7700 = vmatmul.mubr.msk.bf16.vlgmr.msra.gmra.mrb[52].mxu1 %vm9784_vm5, %v8740_v5 }
 0x27f   : > { %7704 = vmatpush3.bf16.msra.mxu1 %v2141_v25  ;;  %7705 = vmatprep.mubr.msk.bf16.mxu1 %vm9786_vm1, %v8231_v10 }
 0x280   : > { %7709 = vmatprep.subr.bf16.mxu1 %v8231_v10  ;;  %7289 = vmatmul.mubr.msk.bf16.vlgmr.msra.gmra.mrb[36].mxu0 %vm9784_vm5, %v8151_v38 }
 0x281   : > { %2498 = vmatpush1.bf16.msra.mxu0 %v2489_v40  ;;  %2529 = vmatprep.mubr.bf16.mxu0 %v8226_v7 }
 0x286   : > { %7706 = vmatmul.mubr.msk.bf16.vlgmr.msra.gmra.mrb[56].mxu1 %vm9784_vm5, %v8149_v21 }
 0x287   : > { %7710 = vmatpush3.bf16.msra.mxu1 %v2259_v42  ;;  %7711 = vmatprep.mubr.msk.bf16.mxu1 %vm9786_vm1, %v8231_v10 }
 0x288   : > { %7715 = vmatprep.subr.bf16.mxu1 %v8231_v10 }
 0x28c   : > { %7295 = vmatmul.mubr.msk.bf16.vlgmr.msra.gmra.mrb[36].mxu0 %vm9784_vm5, %v8152_v43 }
 0x28d   : > { %2723 = vmatprep.mubr.bf16.mxu0 %v8226_v7 }
 0x28e   : > { %7712 = vmatmul.mubr.msk.bf16.vlgmr.msra.gmra.mrb[60].mxu1 %vm9784_vm5, %v8150_v32 }
 0x28f   : > { %7716 = vmatpush3.bf16.msra.mxu1 %v2377_v45  ;;  %7717 = vmatprep.mubr.msk.bf16.mxu1 %vm9786_vm1, %v8231_v10 }
 0x290   : > { %7721 = vmatprep.subr.bf16.mxu1 %v8231_v10 }
 0x296   : > { %7718 = vmatmul.mubr.msk.bf16.vlgmr.msra.gmra.mrb[64].mxu1 %vm9784_vm5, %v8151_v38 }
 0x297   : > { %7722 = vmatpush3.bf16.msra.mxu1 %v2495_v46  ;;  %7723 = vmatprep.mubr.msk.bf16.mxu1 %vm9786_vm1, %v8231_v10 }
 0x29e   : > { %7724 = vmatmul.mubr.msk.bf16.vlgmr.msra.gmra.mrb[68].mxu1 %vm9784_vm5, %v8152_v43  ;;  %v8841_v43 = vld [vmem:[%s9773_s4 + $0x10] sm:$0xff]  }
 0x29f   : > { %7729 = vmatprep.mubr.msk.bf16.mxu1 %vm9789_vm11, %v8841_v43 }
 0x331   : > { %v1644_v47 = vpop.f32.mrb[36].mxu1 }
 0x332   : > { %v7677_v48 = vpop.f32.mrb[37].mxu1 }
 0x333   : > { %v1647_v49 = vpop.f32.mrb[38].mxu1 }
 0x334   : > { %v7678_v50 = vpop.f32.mrb[39].mxu1 }
 0x335   : > { %v2639_v50 = vld [vmem:[#allocation3 + $0x20] sm:$0xff] }
 0x339   : > { %v1756_v51 = vpop.f32.mrb[40].mxu1 }
 0x33a   : > { %v1757_v52 = vadd.f32 %v1756_v51, %v1644_v47  ;;  %v7683_v53 = vpop.f32.mrb[41].mxu1 }
 0x33b   : > { %v1759_v54 = vpop.f32.mrb[42].mxu1 }
 0x33c   : > { %v1760_v55 = vadd.f32 %v1759_v54, %v1647_v49  ;;  %v7684_v56 = vpop.f32.mrb[43].mxu1  ;;  %v2635_v49 = vld [vmem:[#allocation3] sm:$0xff] }
 0x341   : > { %v1871_v57 = vpop.f32.mrb[44].mxu1 }
 0x342   : > { %v1880_v58 = vadd.f32 %v1871_v57, %v1757_v52  ;;  %v7689_v61 = vpop.f32.mrb[45].mxu1 }
 0x343   : > { %v1874_v62 = vpop.f32.mrb[46].mxu1 }
 0x344   : > { %v1883_v63 = vadd.f32 %v1874_v62, %v1760_v55  ;;  %v7690_v0 = vpop.f32.mrb[47].mxu1 }
 0x349   : > { %v1992_v1 = vpop.f32.mrb[48].mxu1 }
 0x34a   : > { %v2001_v2 = vadd.f32 %v1992_v1, %v1880_v58  ;;  %v7695_v60 = vpop.f32.mrb[49].mxu1  ;;  %v2647_v58 = vpack.c.bf16 %v2639_v50, %v2635_v49 }
 0x34b   : > { %v1995_v3 = vpop.f32.mrb[50].mxu1 }
 0x34c   : > { %v2004_v4 = vadd.f32 %v1995_v3, %v1883_v63  ;;  %v7696_v5 = vpop.f32.mrb[51].mxu1 }
 0x351   : > { %v2102_v59 = vpop.f32.mrb[52].mxu1 }
 0x352   : > { %v2111_v6 = vadd.f32 %v2102_v59, %v2001_v2  ;;  %v7701_v8 = vpop.f32.mrb[53].mxu1 }
 0x353   : > { %v2105_v11 = vpop.f32.mrb[54].mxu1 }
 0x354   : > { %v2114_v12 = vadd.f32 %v2105_v11, %v2004_v4  ;;  %v7702_v13 = vpop.f32.mrb[55].mxu1 }
 0x359   : > { %v2220_v14 = vpop.f32.mrb[56].mxu1 }
 0x35a   : > { %v2229_v15 = vadd.f32 %v2220_v14, %v2111_v6  ;;  %v7707_v26 = vpop.f32.mrb[57].mxu1 }
 0x35b   : > { %v2223_v16 = vpop.f32.mrb[58].mxu1 }
 0x35c   : > { %v2232_v18 = vadd.f32 %v2223_v16, %v2114_v12  ;;  %v7708_v19 = vpop.f32.mrb[59].mxu1 }
 0x35d   : > { %v3944_v19 = vld [vmem:[%s9779_s10 + $0x10] sm:$0xff] }
 0x35f   : > { %v2531_v21 = vpop.f32.mrb[36].mxu0 }
 0x360   : > { %v2599_v22 = vadd.f32 %v2592_v20, %v2531_v21  ;;  %v2533_v23 = vpop.f32.mrb[37].mxu0  ;;  %v3945_v21 = vld [vmem:[%s9779_s10 + $0x18] sm:$0xff] }
 0x361   : > { %v2338_v24 = vpop.f32.mrb[60].mxu1  ;;  %v2600_v27 = vadd.f32 %v2592_v20, %v2533_v23  ;;  %v2535_v28 = vpop.f32.mrb[38].mxu0 }
 0x362   : > { %v2347_v29 = vadd.f32 %v2338_v24, %v2229_v15  ;;  %v7713_v30 = vpop.f32.mrb[61].mxu1  ;;  %vm2605_vm12 = vcmp.ge.f32.partialorder %v2599_v22, 0.0  ;;  %v2611_v31 = vmul.f32 0.01, %v2599_v22  ;;  %v2602_v32 = vadd.f32 %v2597_v9, %v2535_v28  ;;  %v2537_v33 = vpop.f32.mrb[39].mxu0 }
 0x363   : > { %v2341_v34 = vpop.f32.mrb[62].mxu1  ;;  %vm2606_vm5 = vcmp.ge.f32.partialorder %v2600_v27, 0.0  ;;  %v2612_v35 = vmul.f32 0.01, %v2600_v27  ;;  %v2603_v36 = vadd.f32 %v2597_v9, %v2537_v33 }
 0x364   : > { %v2350_v37 = vadd.f32 %v2341_v34, %v2232_v18  ;;  %v8834_v38 = vsel %vm2605_vm12, %v2599_v22, %v2611_v31  ;;  %v7714_v39 = vpop.f32.mrb[63].mxu1  ;;  %vm2608_vm3 = vcmp.ge.f32.partialorder %v2602_v32, 0.0  ;;  %v2614_v25 = vmul.f32 0.01, %v2602_v32  ;;  %v3942_v18 = vld [vmem:[%s9779_s10] sm:$0xff]  ;;  %vm8980_vm12 = vmpackc.low %vm1512_vm14, %vm1512_vm14 }
 0x365   : > { %v8836_v40 = vsel %vm2606_vm5, %v2600_v27, %v2612_v35  ;;  %vm2609_vm1 = vcmp.ge.f32.partialorder %v2603_v36, 0.0  ;;  %v2615_v42 = vmul.f32 0.01, %v2603_v36  ;;  %v2623_v46 = vsel %vm1512_vm14, %v8834_v38, 0.0  ;;  %v8154_v35 = vld [vmem:[%s9773_s4 + $0x18] sm:$0xff]   ;;  %v8155_v39 = vld [vmem:[%s9773_s4] sm:$0xff]   ;;  %vm8956_vm5 = vmpackc.low %vm1513_vm0, %vm1513_vm0 }
 0x366   : > { %v8843_v45 = vsel %vm2608_vm3, %v2602_v32, %v2614_v25  ;;  %v2624_v51 = vsel %vm1513_vm0, %v8836_v40, 0.0 }
 0x367   : > { %v2626_v47 = vsel %vm1512_vm14, %v8843_v45, 0.0  ;;  %v8851_v48 = vsel %vm2609_vm1, %v2603_v36, %v2615_v42 }
 0x368   : > { %v2648_v52 = vpack.c.bf16 %v2626_v47, %v2623_v46  ;;  %v2627_v53 = vsel %vm1513_vm0, %v8851_v48, 0.0  ;;  %v8156_v47 = vld [vmem:[%s9773_s4 + $0x8] sm:$0xff]  }
 0x369   : > { %v2456_v54 = vpop.f32.mrb[64].mxu1  ;;  %v2649_v55 = vpack.c.bf16 %v2627_v53, %v2624_v51 }
 0x36a   : > { %v2465_v56 = vadd.f32 %v2456_v54, %v2347_v29  ;;  %v7719_v57 = vpop.f32.mrb[65].mxu1  ;;  %2672 = vrot.lane.b32.xlu0 %v2648_v52, %s8225_s24 }
 0x36b   : > { %v2459_v61 = vpop.f32.mrb[66].mxu1  ;;  %2674 = vrot.lane.b32.xlu1 %v2649_v55, %s8225_s24 }
 0x36c   : > { %v2468_v62 = vadd.f32 %v2459_v61, %v2350_v37  ;;  %v7720_v63 = vpop.f32.mrb[67].mxu1 }
 0x36e   : > { %2670 = vrot.lane.b32.xlu0 %v2647_v58, %s8225_s24 }
 0x36f   : > { %2805 = vrot.lane.b32.xlu1 %v2648_v52, %s8227_s25 }
 0x371   : > { %v2574_v0 = vpop.f32.mrb[68].mxu1 }
 0x372   : > { %v2583_v1 = vadd.f32 %v2574_v0, %v2465_v56  ;;  %v7725_v2 = vpop.f32.mrb[69].mxu1  ;;  %2807 = vrot.lane.b32.xlu0 %v2649_v55, %s8227_s25 }
 0x373   : > { %v2577_v60 = vpop.f32.mrb[70].mxu1  ;;  %2803 = vrot.lane.b32.xlu1 %v2647_v58, %s8227_s25 }
 0x374   : > { %v2601_v3 = vadd.f32 %v2592_v20, %v2583_v1  ;;  %v2586_v4 = vadd.f32 %v2577_v60, %v2468_v62  ;;  %v7726_v5 = vpop.f32.mrb[71].mxu1  ;;  %v3943_v20 = vld [vmem:[%s9779_s10 + $0x8] sm:$0xff]  ;;  %v8193_v62 = vpack.c.bf16 %v8851_v48, %v8836_v40  ;;  %v8159_v40 = vld [vmem:[%s9773_s4 + $0x30] sm:$0xff]   ;;  %v8196_v60 = vpack.c.bf16 %v8843_v45, %v8834_v38  ;;  %v8161_v45 = vld [vmem:[%s9773_s4 + $0x40] sm:$0xff]  }
 0x375   : > { %v8158_v1 = vld [vmem:[%s9773_s4 + $0x28] sm:$0xff]  }
 0x376   : > { %vm2607_vm1 = vcmp.ge.f32.partialorder %v2601_v3, 0.0  ;;  %v2613_v59 = vmul.f32 0.01, %v2601_v3  ;;  %v2604_v6 = vadd.f32 %v2597_v9, %v2586_v4  ;;  %2942 = vrot.lane.b32.xlu0 %v2648_v52, %s8228_s26  ;;  %v8160_v4 = vld [vmem:[%s9773_s4 + $0x38] sm:$0xff]  }
 0x377   : > { %2944 = vrot.lane.b32.xlu1 %v2649_v55, %s8228_s26 }
 0x378   : > { %v2619_v8 = vsel %vm2607_vm1, %v2601_v3, %v2613_v59  ;;  %vm2610_vm3 = vcmp.ge.f32.partialorder %v2604_v6, 0.0  ;;  %v2616_v11 = vmul.f32 0.01, %v2604_v6  ;;  %vm9796_vm1 = vcmask 891904  }
 0x379   : > { %v2625_v12 = vsel %vm1514_vm13, %v2619_v8, 0.0 }
 0x37a   : > { %2631 = vst.msk [vmem:[#allocation3 + $0x18] sm:$0xff] %vm1520_vm15, %v2625_v12  ;;  %v2622_v13 = vsel %vm2610_vm3, %v2604_v6, %v2616_v11  ;;  %2940 = vrot.lane.b32.xlu0 %v2647_v58, %s8228_s26  ;;  %v8162_v11 = vld [vmem:[%s9773_s4 + $0x48] sm:$0xff]   ;;  %vm9797_vm3 = vmmov %vm9796_vm1 }
 0x37b   : > { %v2628_v14 = vsel %vm1514_vm13, %v2622_v13, 0.0  ;;  %v8163_v13 = vld [vmem:[%s9773_s4 + $0x50] sm:$0xff]  }
 0x37c   : > { %2634 = vst.msk [vmem:[#allocation3 + $0x38] sm:$0xff] %vm1520_vm15, %v2628_v14 }
 0x37e   : > { %3091 = vrot.lane.b32.xlu0 %v2648_v52, %s8229_s27 }
 0x381   : > { %v2638_v15 = vld [vmem:[#allocation3 + $0x18] sm:$0xff] }
 0x382   : > { %3089 = vrot.lane.b32.xlu0 %v2647_v58, %s8229_s27 }
 0x383   : > { %v2642_v26 = vld [vmem:[#allocation3 + $0x38] sm:$0xff] }
 0x384   : > { %v8878_v16 = vpack.c.bf16 %v2642_v26, %v2638_v15 }
 0x386   : > { %2676 = vrot.lane.b32.xlu1 %v8878_v16, %s8225_s24  ;;  %2946 = vrot.lane.b32.xlu0 %v8878_v16, %s8228_s26 }
 0x38a   : > { %3093 = vrot.lane.b32.xlu1 %v2649_v55, %s8229_s27  ;;  %3377 = vrot.lane.b32.xlu0 %v8878_v16, %s8230_s28 }
 0x38e   : > { %2809 = vrot.lane.b32.xlu1 %v8878_v16, %s8227_s25  ;;  %3373 = vrot.lane.b32.xlu0 %v2648_v52, %s8230_s28 }
 0x392   : > { %3375 = vrot.lane.b32.xlu1 %v2649_v55, %s8230_s28  ;;  %3523 = vrot.lane.b32.xlu0 %v8878_v16, %s8232_s30 }
 0x396   : > { %3095 = vrot.lane.b32.xlu1 %v8878_v16, %s8229_s27  ;;  %3667 = vrot.lane.b32.xlu0 %v2649_v55, %s8234_s15 }
 0x39a   : > { %3521 = vrot.lane.b32.xlu1 %v2649_v55, %s8232_s30  ;;  %3665 = vrot.lane.b32.xlu0 %v2648_v52, %s8234_s15 }
 0x39e   : > { %3519 = vrot.lane.b32.xlu1 %v2648_v52, %s8232_s30  ;;  %3815 = vrot.lane.b32.xlu0 %v8878_v16, %s8235_s16 }
 0x3a2   : > { %3669 = vrot.lane.b32.xlu1 %v8878_v16, %s8234_s15  ;;  %3948 = vperm.xlu0 %8142, %v3942_v18  }
 0x3a6   : > { %3813 = vrot.lane.b32.xlu1 %v2649_v55, %s8235_s16  ;;  %3958 = vperm.xlu0 %8142, %v3944_v19   ;;  %v8157_v55 = vld [vmem:[%s9773_s4 + $0x20] sm:$0xff]  }
 0x3a7   : > { %v8165_v19 = vld [vmem:[%s9773_s4 + $0x60] sm:$0xff]  }
 0x3aa   : > { %3811 = vrot.lane.b32.xlu1 %v2648_v52, %s8235_s16 }
 0x3ae   : > { %3953 = vperm.xlu1 %8143, %v3943_v20  }
 0x3b2   : > { %3963 = vperm.xlu1 %8143, %v3945_v21   ;;  %v8166_v21 = vld [vmem:[%s9773_s4 + $0x68] sm:$0xff]  }
 0x3dc   : > { %v2673_v9 = vpop.permute.xlu0 %2672 }
 0x3dd   : > { %v2675_v22 = vpop.permute.xlu1 %2674 }
 0x3de   : > { %v2679_v23 = vsel %vm531_vm2, %v2673_v9, %v2675_v22 }
 0x3df   : > { %2691 = vmatprep.subr.bf16.mxu0 %v2679_v23 }
 0x3e0   : > { %v2671_v24 = vpop.permute.xlu0 %2670 }
 0x3e1   : > { %v2678_v27 = vsel %vm531_vm2, %v2671_v24, %v2673_v9  ;;  %v2806_v28 = vpop.permute.xlu1 %2805  ;;  %v8167_v9 = vld [vmem:[%s9773_s4 + $0x70] sm:$0xff]  }
 0x3e2   : > { %2692 = vmatpush1.bf16.msra.mxu0 %v2678_v27 }
 0x3e4   : > { %v2808_v29 = vpop.permute.xlu0 %2807 }
 0x3e5   : > { %7303 = vmatmul.mubr.msk.bf16.vlgmr.msra.gmra.mrb[40].mxu0 %vm9789_vm11, %v8841_v43  ;;  %v2804_v30 = vpop.permute.xlu1 %2803  ;;  %v2812_v31 = vsel %vm638_vm4, %v2806_v28, %v2808_v29 }
 0x3e6   : > { %v2811_v32 = vsel %vm638_vm4, %v2804_v30, %v2806_v28  ;;  %2823 = vmatprep.subr.bf16.mxu0 %v2812_v31  ;;  %2733 = vmatprep.mubr.bf16.mxu0 %v8226_v7  ;;  %v8168_v28 = vld [vmem:[%s9773_s4 + $0x78] sm:$0xff]  }
 0x3e7   : > { %2824 = vmatpush1.bf16.msra.mxu0 %v2811_v32  ;;  %v8170_v32 = vld [vmem:[%s9773_s4 + $0x88] sm:$0xff]  }
 0x3e8   : > { %v2943_v33 = vpop.permute.xlu0 %2942 }
 0x3e9   : > { %v2945_v34 = vpop.permute.xlu1 %2944 }
 0x3ea   : > { %v2949_v36 = vsel %vm745_vm6, %v2943_v33, %v2945_v34 }
 0x3eb   : > { %2960 = vmatprep.subr.bf16.mxu0 %v2949_v36 }
 0x3ec   : > { %v2941_v37 = vpop.permute.xlu0 %2940 }
 0x3ed   : > { %7304 = vmatmul.mubr.msk.bf16.gmra.mrb[44].mxu0 %vm9789_vm11, %v8154_v35  ;;  %v2948_v42 = vsel %vm745_vm6, %v2941_v37, %v2943_v33  ;;  %v4038_v33 = vld [vmem:[#allocation2] sm:$0xff] }
 0x3ee   : > { %2855 = vmatprep.mubr.bf16.mxu0 %v8226_v7 }
 0x3f0   : > { %v3092_v25 = vpop.permute.xlu0 %3091 }
 0x3f4   : > { %v3090_v49 = vpop.permute.xlu0 %3089 }
 0x3f5   : > { %7309 = vmatmul.mubr.msk.bf16.vlgmr.msra.gmra.mrb[40].mxu0 %vm9789_vm11, %v8155_v39  ;;  %v3097_v58 = vsel %vm855_vm7, %v3090_v49, %v3092_v25 }
 0x3f6   : > { %2961 = vmatpush1.bf16.msra.mxu0 %v2948_v42  ;;  %2865 = vmatprep.mubr.bf16.mxu0 %v8226_v7 }
 0x3f8   : > { %v2677_v43 = vpop.permute.xlu1 %2676  ;;  %v2947_v53 = vpop.permute.xlu0 %2946 }
 0x3f9   : > { %v2680_v46 = vsel %vm531_vm2, %v2675_v22, %v2677_v43  ;;  %v2950_v56 = vsel %vm745_vm6, %v2945_v34, %v2947_v53  ;;  %v4042_v34 = vld [vmem:[#allocation2 + $0x20] sm:$0xff] }
 0x3fa   : > { %7727 = vmatprep.subr.bf16.mxu1 %v2680_v46 }
 0x3fb   : > { %7728 = vmatpush3.bf16.msra.mxu1 %v2680_v46 }
 0x3fc   : > { %v3094_v50 = vpop.permute.xlu1 %3093  ;;  %v3378_v48 = vpop.permute.xlu0 %3377 }
 0x3fd   : > { %v3098_v51 = vsel %vm855_vm7, %v3092_v25, %v3094_v50  ;;  %7310 = vmatmul.mubr.msk.bf16.gmra.mrb[44].mxu0 %vm9789_vm11, %v8156_v47 }
 0x3fe   : > { %7730 = vmatmul.mubr.msk.bf16.vlgmr.msra.gmra.mrb[72].mxu1 %vm9789_vm11, %v8154_v35  ;;  %3109 = vmatprep.subr.bf16.mxu0 %v3098_v51  ;;  %v9069_v35 = vpack.c.bf16 %v4042_v34, %v4038_v33 }
 0x3ff   : > { %7735 = vmatprep.mubr.msk.bf16.mxu1 %vm9789_vm11, %v8155_v39  ;;  %2992 = vmatprep.mubr.bf16.mxu0 %v8226_v7 }
 0x400   : > { %v2810_v52 = vpop.permute.xlu1 %2809  ;;  %v3374_v38 = vpop.permute.xlu0 %3373  ;;  %4080 = vrot.lane.b32.xlu0 %v9069_v35, %s8225_s24 }
 0x401   : > { %v2813_v54 = vsel %vm638_vm4, %v2808_v29, %v2810_v52  ;;  %v8169_v29 = vld [vmem:[%s9773_s4 + $0x80] sm:$0xff]  }
 0x402   : > { %7733 = vmatprep.subr.bf16.mxu1 %v2813_v54 }
 0x403   : > { %7734 = vmatpush3.bf16.msra.mxu1 %v2813_v54 }
 0x404   : > { %v3376_v57 = vpop.permute.xlu1 %3375  ;;  %7739 = vmatprep.subr.bf16.mxu1 %v2950_v56  ;;  %v3524_v6 = vpop.permute.xlu0 %3523 }
 0x405   : > { %7319 = vmatmul.mubr.msk.bf16.vlgmr.msra.gmra.mrb[40].mxu0 %vm9789_vm11, %v8157_v55  ;;  %v3380_v3 = vsel %vm1061_vm8, %v3376_v57, %v3378_v48  ;;  %v3379_v59 = vsel %vm1061_vm8, %v3374_v38, %v3376_v57 }
 0x406   : > { %3110 = vmatpush1.bf16.msra.mxu0 %v3097_v58  ;;  %3002 = vmatprep.mubr.bf16.mxu0 %v8226_v7 }
 0x407   : > { %8194 = vmatprep.subr.msk.bf16.mxu0 %vm8956_vm5, %v8193_v62 }
 0x408   : > { %v3096_v63 = vpop.permute.xlu1 %3095  ;;  %v3668_v26 = vpop.permute.xlu0 %3667 }
 0x409   : > { %v3099_v0 = vsel %vm855_vm7, %v3094_v50, %v3096_v63 }
 0x40a   : > { %7736 = vmatmul.mubr.msk.bf16.vlgmr.msra.gmra.mrb[72].mxu1 %vm9789_vm11, %v8156_v47 }
 0x40b   : > { %7740 = vmatpush3.bf16.msra.mxu1 %v2950_v56  ;;  %7741 = vmatprep.mubr.msk.bf16.mxu1 %vm9789_vm11, %v8157_v55 }
 0x40c   : > { %7745 = vmatprep.subr.bf16.mxu1 %v3099_v0  ;;  %v3522_v5 = vpop.permute.xlu1 %3521  ;;  %v3666_v20 = vpop.permute.xlu0 %3665 }
 0x40d   : > { %7320 = vmatmul.mubr.msk.bf16.gmra.mrb[44].mxu0 %vm9789_vm11, %v8158_v1  ;;  %v3526_v8 = vsel %vm9791_vm9, %v3522_v5, %v3524_v6  ;;  %v3671_v23 = vsel %vm9790_vm10, %v3666_v20, %v3668_v26 }
 0x40e   : > { %3141 = vmatprep.mubr.bf16.mxu0 %v8226_v7 }
 0x410   : > { %v3520_v12 = vpop.permute.xlu1 %3519  ;;  %v3816_v24 = vpop.permute.xlu0 %3815 }
 0x411   : > { %v3525_v15 = vsel %vm9791_vm9, %v3520_v12, %v3522_v5 }
 0x414   : > { %v3670_v14 = vpop.permute.xlu1 %3669 }
 0x415   : > { %7329 = vmatmul.mubr.msk.bf16.vlgmr.msra.gmra.mrb[40].mxu0 %vm9789_vm11, %v8159_v40  ;;  %v3672_v18 = vsel %vm9790_vm10, %v3668_v26, %v3670_v14 }
 0x416   : > { %7742 = vmatmul.mubr.msk.bf16.vlgmr.msra.gmra.mrb[72].mxu1 %vm9789_vm11, %v8158_v1  ;;  %8197 = vmatpush1.bf16.msk.msra.mxu0 %vm8980_vm12, %v8196_v60 }
 0x417   : > { %7746 = vmatpush3.bf16.msra.mxu1 %v3099_v0  ;;  %7747 = vmatprep.mubr.msk.bf16.mxu1 %vm9789_vm11, %v8159_v40 }
 0x418   : > { %7751 = vmatprep.subr.bf16.mxu1 %v8878_v16  ;;  %3390 = vmatprep.subr.bf16.mxu0 %v3380_v3  ;;  %v3814_v22 = vpop.permute.xlu1 %3813 }
 0x419   : > { %3151 = vmatprep.mubr.bf16.mxu0 %v8226_v7  ;;  %v3818_v27 = vsel %vm9796_vm1, %v3814_v22, %v3816_v24  ;;  %vm9798_vm1 = vmmov 0  }
 0x41c   : > { %v3812_v30 = vpop.permute.xlu1 %3811 }
 0x41d   : > { %7330 = vmatmul.mubr.msk.bf16.gmra.mrb[44].mxu0 %vm9789_vm11, %v8160_v4  ;;  %v3817_v31 = vsel %vm9797_vm3, %v3812_v30, %v3814_v22 }
 0x41e   : > { %3276 = vmatprep.mubr.bf16.mxu0 %v8226_v7 }
 0x421   : > { %v3949_v36 = vpop.permute.xlu0 %3948 }
 0x422   : > { %7748 = vmatmul.mubr.msk.bf16.vlgmr.msra.gmra.mrb[72].mxu1 %vm9789_vm11, %v8160_v4 }
 0x423   : > { %7752 = vmatpush3.bf16.msra.mxu1 %v8878_v16  ;;  %7753 = vmatprep.mubr.msk.bf16.mxu1 %vm9789_vm11, %v8161_v45  ;;  %v8164_v16 = vld [vmem:[%s9773_s4 + $0x58] sm:$0xff]  }
 0x424   : > { %7757 = vmatprep.subr.bf16.mxu1 %v3378_v48 }
 0x425   : > { %7339 = vmatmul.mubr.msk.bf16.vlgmr.msra.gmra.mrb[40].mxu0 %vm9789_vm11, %v8161_v45  ;;  %v3959_v39 = vpop.permute.xlu0 %3958 }
 0x426   : > { %3391 = vmatpush1.bf16.msra.mxu0 %v3379_v59  ;;  %3286 = vmatprep.mubr.bf16.mxu0 %v8226_v7 }
 0x427   : > { %3536 = vmatprep.subr.bf16.mxu0 %v3526_v8 }
 0x42d   : > { %7340 = vmatmul.mubr.msk.bf16.gmra.mrb[44].mxu0 %vm9789_vm11, %v8162_v11  ;;  %v3954_v37 = vpop.permute.xlu1 %3953 }
 0x42e   : > { %7754 = vmatmul.mubr.msk.bf16.vlgmr.msra.gmra.mrb[72].mxu1 %vm9789_vm11, %v8162_v11  ;;  %3422 = vmatprep.mubr.bf16.mxu0 %v8226_v7 }
 0x42f   : > { %7758 = vmatpush3.bf16.msra.mxu1 %v3378_v48  ;;  %7759 = vmatprep.mubr.msk.bf16.mxu1 %vm9789_vm11, %v8163_v13 }
 0x430   : > { %7763 = vmatprep.subr.bf16.mxu1 %v3524_v6 }
 0x431   : > { %v9073_v46 = vpop.permute.xlu1 %3963 }
 0x435   : > { %7349 = vmatmul.mubr.msk.bf16.vlgmr.msra.gmra.mrb[40].mxu0 %vm9789_vm11, %v8163_v13 }
 0x436   : > { %3537 = vmatpush1.bf16.msra.mxu0 %v3525_v15  ;;  %3432 = vmatprep.mubr.bf16.mxu0 %v8226_v7 }
 0x437   : > { %3682 = vmatprep.subr.bf16.mxu0 %v3672_v18 }
 0x43a   : > { %7760 = vmatmul.mubr.msk.bf16.vlgmr.msra.gmra.mrb[72].mxu1 %vm9789_vm11, %v8164_v16 }
 0x43b   : > { %7764 = vmatpush3.bf16.msra.mxu1 %v3524_v6  ;;  %7765 = vmatprep.mubr.msk.bf16.mxu1 %vm9789_vm11, %v8165_v19 }
 0x43c   : > { %7769 = vmatprep.subr.bf16.mxu1 %v3670_v14 }
 0x43d   : > { %7350 = vmatmul.mubr.msk.bf16.gmra.mrb[44].mxu0 %vm9789_vm11, %v8164_v16 }
 0x43e   : > { %3568 = vmatprep.mubr.bf16.mxu0 %v8226_v7 }
 0x445   : > { %7359 = vmatmul.mubr.msk.bf16.vlgmr.msra.gmra.mrb[40].mxu0 %vm9789_vm11, %v8165_v19 }
 0x446   : > { %7766 = vmatmul.mubr.msk.bf16.vlgmr.msra.gmra.mrb[72].mxu1 %vm9789_vm11, %v8166_v21  ;;  %3683 = vmatpush1.bf16.msra.mxu0 %v3671_v23 }
 0x447   : > { %7770 = vmatpush3.bf16.msra.mxu1 %v3670_v14  ;;  %7771 = vmatprep.mubr.msk.bf16.mxu1 %vm9789_vm11, %v8167_v9 }
 0x448   : > { %7775 = vmatprep.subr.bf16.mxu1 %v3816_v24  ;;  %3828 = vmatprep.subr.bf16.mxu0 %v3818_v27 }
 0x449   : > { %3578 = vmatprep.mubr.bf16.mxu0 %v8226_v7 }
 0x44d   : > { %7360 = vmatmul.mubr.msk.bf16.gmra.mrb[44].mxu0 %vm9789_vm11, %v8166_v21 }
 0x44e   : > { %3714 = vmatprep.mubr.bf16.mxu0 %v8226_v7 }
 0x452   : > { %7772 = vmatmul.mubr.msk.bf16.vlgmr.msra.gmra.mrb[72].mxu1 %vm9789_vm11, %v8168_v28 }
 0x453   : > { %7776 = vmatpush3.bf16.msra.mxu1 %v3816_v24  ;;  %7777 = vmatprep.mubr.msk.bf16.mxu1 %vm9789_vm11, %v8169_v29 }
 0x455   : > { %7369 = vmatmul.mubr.msk.bf16.vlgmr.msra.gmra.mrb[40].mxu0 %vm9789_vm11, %v8167_v9 }
 0x456   : > { %3829 = vmatpush1.bf16.msra.mxu0 %v3817_v31  ;;  %3724 = vmatprep.mubr.bf16.mxu0 %v8226_v7 }
 0x457   : > { %7813 = vmatprep.subr.bf16.mxu0 %v8231_v10 }
 0x45d   : > { %7370 = vmatmul.mubr.msk.bf16.gmra.mrb[44].mxu0 %vm9789_vm11, %v8168_v28 }
 0x45e   : > { %7778 = vmatmul.mubr.msk.bf16.vlgmr.msra.gmra.mrb[72].mxu1 %vm9789_vm11, %v8170_v32  ;;  %3860 = vmatprep.mubr.bf16.mxu0 %v8226_v7 }
 0x45f   : > { %4144 = vmatprep.mubr.bf16.mxu1 %v8226_v7 }
 0x465   : > { %7379 = vmatmul.mubr.msk.bf16.vlgmr.msra.gmra.mrb[40].mxu0 %vm9789_vm11, %v8169_v29 }
 0x466   : > { %3870 = vmatprep.mubr.bf16.mxu0 %v8226_v7 }
 0x46d   : > { %7380 = vmatmul.mubr.msk.bf16.gmra.mrb[44].mxu0 %vm9789_vm11, %v8170_v32 }
 0x46e   : > { %7817 = vmatprep.mubr.msk.bf16.mxu0 %vm9798_vm1, %v8231_v10 }
 0x531   : > { %v7779_v25 = vpop.f32.mrb[72].mxu1 }
 0x532   : > { %v3974_v42 = vadd.f32 %v7779_v25, %v3959_v39  ;;  %v3915_v43 = vpop.f32.mrb[73].mxu1 }
 0x533   : > { %v3968_v47 = vadd.f32 %v3949_v36, %v3915_v43  ;;  %v7780_v49 = vpop.f32.mrb[74].mxu1 }
 0x534   : > { %vm3986_vm3 = vcmp.ge.f32.partialorder %v3974_v42, 0.0  ;;  %v3998_v50 = vmul.f32 0.01, %v3974_v42  ;;  %v3977_v51 = vadd.f32 %v7780_v49, %v9073_v46  ;;  %v3918_v52 = vpop.f32.mrb[75].mxu1 }
 0x535   : > { %vm3980_vm11 = vcmp.ge.f32.partialorder %v3968_v47, 0.0  ;;  %v3992_v53 = vmul.f32 0.01, %v3968_v47  ;;  %v3971_v54 = vadd.f32 %v3954_v37, %v3918_v52 }
 0x536   : > { %v4010_v55 = vsel %vm3986_vm3, %v3974_v42, %v3998_v50  ;;  %vm3989_vm10 = vcmp.ge.f32.partialorder %v3977_v51, 0.0  ;;  %v4001_v56 = vmul.f32 0.01, %v3977_v51 }
 0x537   : > { %v4022_v57 = vsel %vm1514_vm13, %v4010_v55, 0.0  ;;  %v4004_v58 = vsel %vm3980_vm11, %v3968_v47, %v3992_v53  ;;  %vm3983_vm9 = vcmp.ge.f32.partialorder %v3971_v54, 0.0  ;;  %v3995_v62 = vmul.f32 0.01, %v3971_v54 }
 0x538   : > { %4034 = vst.msk [vmem:[#allocation2 + $0x58] sm:$0xff] %vm1520_vm15, %v4022_v57  ;;  %v4016_v63 = vsel %vm1514_vm13, %v4004_v58, 0.0  ;;  %v4013_v0 = vsel %vm3989_vm10, %v3977_v51, %v4001_v56  ;;  %v3862_v1 = vpop.f32.mrb[40].mxu0  ;;  %v4046_v56 = vld [vmem:[#allocation2 + $0x40] sm:$0xff] }
 0x539   : > { %4028 = vst.msk [vmem:[#allocation2 + $0x18] sm:$0xff] %vm1520_vm15, %v4016_v63  ;;  %v4025_v40 = vsel %vm1514_vm13, %v4013_v0, 0.0  ;;  %v4007_v48 = vsel %vm3983_vm9, %v3971_v54, %v3995_v62  ;;  %v3966_v60 = vadd.f32 %v3949_v36, %v3862_v1  ;;  %v3864_v3 = vpop.f32.mrb[41].mxu0  ;;  %v4050_v57 = vld [vmem:[#allocation2 + $0x60] sm:$0xff] }
 0x53a   : > { %4037 = vst.msk [vmem:[#allocation2 + $0x78] sm:$0xff] %vm1520_vm15, %v4025_v40  ;;  %v4019_v4 = vsel %vm1514_vm13, %v4007_v48, 0.0  ;;  %v3967_v38 = vadd.f32 %v3949_v36, %v3864_v3  ;;  %v3866_v45 = vpop.f32.mrb[42].mxu0  ;;  %v4060_v0 = vpack.c.bf16 %v4050_v57, %v4046_v56  ;;  %v9188_v1 = vld [vmem:[%s9774_s5 + $0x20] sm:$0xff]   ;;  %v5168_v48 = vld [vmem:[%s9780_s11 + $0x8] sm:$0xff]  ;;  %v8173_v57 = vld [vmem:[%s9774_s5 + $0x10] sm:$0xff]  }
 0x53b   : > { %4031 = vst.msk [vmem:[#allocation2 + $0x38] sm:$0xff] %vm1520_vm15, %v4019_v4  ;;  %vm3978_vm11 = vcmp.ge.f32.partialorder %v3966_v60, 0.0  ;;  %v3990_v5 = vmul.f32 0.01, %v3966_v60  ;;  %v3969_v59 = vadd.f32 %v3954_v37, %v3866_v45  ;;  %v3868_v6 = vpop.f32.mrb[43].mxu0  ;;  %v5167_v40 = vld [vmem:[%s9780_s11] sm:$0xff] }
 0x53c   : > { %vm3979_vm10 = vcmp.ge.f32.partialorder %v3967_v38, 0.0  ;;  %v3991_v8 = vmul.f32 0.01, %v3967_v38  ;;  %v3970_v11 = vadd.f32 %v3954_v37, %v3868_v6 }
 0x53d   : > { %v9088_v12 = vsel %vm3978_vm11, %v3966_v60, %v3990_v5  ;;  %vm3981_vm9 = vcmp.ge.f32.partialorder %v3969_v59, 0.0  ;;  %v3993_v13 = vmul.f32 0.01, %v3969_v59 }
 0x53e   : > { %v9090_v14 = vsel %vm3979_vm10, %v3967_v38, %v3991_v8  ;;  %vm3982_vm3 = vcmp.ge.f32.partialorder %v3970_v11, 0.0  ;;  %v3994_v15 = vmul.f32 0.01, %v3970_v11  ;;  %v4014_v16 = vsel %vm1512_vm14, %v9088_v12, 0.0 }
 0x53f   : > { %v9092_v26 = vsel %vm3981_vm9, %v3969_v59, %v3993_v13  ;;  %v4015_v21 = vsel %vm1513_vm0, %v9090_v14, 0.0  ;;  %v4049_v47 = vld [vmem:[#allocation2 + $0x58] sm:$0xff]  ;;  %v8171_v13 = vld [vmem:[%s9774_s5 + $0x8] sm:$0xff]  }
 0x540   : > { %v4017_v18 = vsel %vm1512_vm14, %v9092_v26, 0.0  ;;  %v9100_v19 = vsel %vm3982_vm3, %v3970_v11, %v3994_v15  ;;  %v3872_v20 = vpop.f32.mrb[44].mxu0  ;;  %v4041_v28 = vld [vmem:[#allocation2 + $0x18] sm:$0xff] }
 0x541   : > { %v9105_v9 = vpack.c.bf16 %v4017_v18, %v4014_v16  ;;  %v4018_v22 = vsel %vm1513_vm0, %v9100_v19, 0.0  ;;  %v3972_v23 = vadd.f32 %v3959_v39, %v3872_v20  ;;  %v3874_v24 = vpop.f32.mrb[45].mxu0  ;;  %v4053_v37 = vld [vmem:[#allocation2 + $0x78] sm:$0xff] }
 0x542   : > { %v4045_v27 = vld [vmem:[#allocation2 + $0x38] sm:$0xff]  ;;  %v9110_v29 = vpack.c.bf16 %v4018_v22, %v4015_v21  ;;  %v3973_v30 = vadd.f32 %v3959_v39, %v3874_v24  ;;  %v3876_v31 = vpop.f32.mrb[46].mxu0  ;;  %v9129_v51 = vpack.c.bf16 %v4053_v37, %v4049_v47 }
 0x543   : > { %v9112_v32 = vpack.c.bf16 %v4045_v27, %v4041_v28  ;;  %vm3984_vm11 = vcmp.ge.f32.partialorder %v3972_v23, 0.0  ;;  %v3996_v33 = vmul.f32 0.01, %v3972_v23  ;;  %v3975_v34 = vadd.f32 %v9073_v46, %v3876_v31  ;;  %v3878_v36 = vpop.f32.mrb[47].mxu0  ;;  %4082 = vrot.lane.b32.xlu0 %v9105_v9, %s8225_s24 }
 0x544   : > { %vm3985_vm10 = vcmp.ge.f32.partialorder %v3973_v30, 0.0  ;;  %v3997_v25 = vmul.f32 0.01, %v3973_v30  ;;  %v3976_v42 = vadd.f32 %v9073_v46, %v3878_v36  ;;  %4084 = vrot.lane.b32.xlu1 %v9110_v29, %s8225_s24 }
 0x545   : > { %7814 = vmatpush3.bf16.msra.mxu0 %v9112_v32  ;;  %v9121_v39 = vsel %vm3984_vm11, %v3972_v23, %v3996_v33  ;;  %vm3987_vm9 = vcmp.ge.f32.partialorder %v3975_v34, 0.0  ;;  %v3999_v43 = vmul.f32 0.01, %v3975_v34  ;;  %vm4108_vm11 = vcmask 261120  }
 0x546   : > { %7815 = vmatprep.subr.bf16.mxu0 %v8231_v10  ;;  %v4020_v49 = vsel %vm1512_vm14, %v9121_v39, 0.0  ;;  %v9127_v50 = vsel %vm3985_vm10, %v3973_v30, %v3997_v25  ;;  %vm3988_vm3 = vcmp.ge.f32.partialorder %v3976_v42, 0.0  ;;  %v4000_v46 = vmul.f32 0.01, %v3976_v42 }
 0x547   : > { %v4021_v52 = vsel %vm1513_vm0, %v9127_v50, 0.0  ;;  %v9134_v53 = vsel %vm3987_vm9, %v3975_v34, %v3999_v43  ;;  %vm9799_vm10 = vcmask 908288  }
 0x548   : > { %v4023_v54 = vsel %vm1512_vm14, %v9134_v53, 0.0  ;;  %v9139_v55 = vsel %vm3988_vm3, %v3976_v42, %v4000_v46  ;;  %vm9800_vm9 = vmmov %vm9799_vm10 }
 0x549   : > { %7816 = vmatpush3.bf16.msra.mxu0 %v9129_v51  ;;  %v4061_v58 = vpack.c.bf16 %v4023_v54, %v4020_v49  ;;  %v4024_v62 = vsel %vm1513_vm0, %v9139_v55, 0.0  ;;  %vm9801_vm3 = vmmov %vm9800_vm9 }
 0x54a   : > { %v4062_v63 = vpack.c.bf16 %v4024_v62, %v4021_v52  ;;  %7821 = vmatprep.subr.bf16.mxu0 %v8231_v10 }
 0x54b   : > { %4090 = vrot.lane.b32.xlu1 %v4061_v58, %s8225_s24 }
 0x54c   : > { %4092 = vrot.lane.b32.xlu0 %v4062_v63, %s8225_s24  ;;  %7818 = vmatmul.mubr.msk.bf16.vlgmr.msra.gmra.mrb[48].mxu0 %vm4108_vm11, %v9188_v1 }
 0x54d   : > { %7825 = vmatprep.mubr.msk.bf16.mxu0 %vm9798_vm1, %v8231_v10 }
 0x54f   : > { %4088 = vrot.lane.b32.xlu1 %v4060_v0, %s8225_s24 }
 0x550   : > { %4086 = vrot.lane.b32.xlu0 %v9112_v32, %s8225_s24 }
 0x553   : > { %4094 = vrot.lane.b32.xlu1 %v9129_v51, %s8225_s24 }
 0x554   : > { %4203 = vrot.lane.b32.xlu0 %v9105_v9, %s8227_s25 }
 0x557   : > { %4205 = vrot.lane.b32.xlu1 %v9110_v29, %s8227_s25 }
 0x558   : > { %4201 = vrot.lane.b32.xlu0 %v9069_v35, %s8227_s25 }
 0x55b   : > { %4211 = vrot.lane.b32.xlu1 %v4061_v58, %s8227_s25 }
 0x55c   : > { %4213 = vrot.lane.b32.xlu0 %v4062_v63, %s8227_s25 }
 0x55f   : > { %4209 = vrot.lane.b32.xlu1 %v4060_v0, %s8227_s25 }
 0x560   : > { %4207 = vrot.lane.b32.xlu0 %v9112_v32, %s8227_s25 }
 0x563   : > { %4215 = vrot.lane.b32.xlu1 %v9129_v51, %s8227_s25 }
 0x564   : > { %4326 = vrot.lane.b32.xlu0 %v9105_v9, %s8228_s26 }
 0x567   : > { %4328 = vrot.lane.b32.xlu1 %v9110_v29, %s8228_s26 }
 0x568   : > { %4324 = vrot.lane.b32.xlu0 %v9069_v35, %s8228_s26 }
 0x56b   : > { %4334 = vrot.lane.b32.xlu1 %v4061_v58, %s8228_s26 }
 0x56c   : > { %4336 = vrot.lane.b32.xlu0 %v4062_v63, %s8228_s26 }
 0x56f   : > { %4332 = vrot.lane.b32.xlu1 %v4060_v0, %s8228_s26 }
 0x570   : > { %4330 = vrot.lane.b32.xlu0 %v9112_v32, %s8228_s26 }
 0x573   : > { %4338 = vrot.lane.b32.xlu1 %v9129_v51, %s8228_s26 }
 0x574   : > { %4455 = vrot.lane.b32.xlu0 %v9105_v9, %s8229_s27 }
 0x577   : > { %4457 = vrot.lane.b32.xlu1 %v9110_v29, %s8229_s27 }
 0x578   : > { %4453 = vrot.lane.b32.xlu0 %v9069_v35, %s8229_s27  ;;  %v4081_v35 = vpop.permute.xlu0 %4080 }
 0x57b   : > { %4463 = vrot.lane.b32.xlu1 %v4061_v58, %s8229_s27 }
 0x57c   : > { %4465 = vrot.lane.b32.xlu0 %v4062_v63, %s8229_s27 }
 0x57f   : > { %4461 = vrot.lane.b32.xlu1 %v4060_v0, %s8229_s27 }
 0x580   : > { %4459 = vrot.lane.b32.xlu0 %v9112_v32, %s8229_s27 }
 0x583   : > { %4467 = vrot.lane.b32.xlu1 %v9129_v51, %s8229_s27 }
 0x584   : > { %4685 = vrot.lane.b32.xlu0 %v9110_v29, %s8230_s28 }
 0x587   : > { %4687 = vrot.lane.b32.xlu1 %v9112_v32, %s8230_s28 }
 0x588   : > { %4683 = vrot.lane.b32.xlu0 %v9105_v9, %s8230_s28 }
 0x58b   : > { %4691 = vrot.lane.b32.xlu1 %v4062_v63, %s8230_s28 }
 0x58c   : > { %4693 = vrot.lane.b32.xlu0 %v9129_v51, %s8230_s28 }
 0x58f   : > { %4689 = vrot.lane.b32.xlu1 %v4061_v58, %s8230_s28 }
 0x590   : > { %4808 = vrot.lane.b32.xlu0 %v9110_v29, %s8232_s30 }
 0x593   : > { %4810 = vrot.lane.b32.xlu1 %v9112_v32, %s8232_s30 }
 0x594   : > { %4806 = vrot.lane.b32.xlu0 %v9105_v9, %s8232_s30 }
 0x597   : > { %4814 = vrot.lane.b32.xlu1 %v4062_v63, %s8232_s30 }
 0x598   : > { %4816 = vrot.lane.b32.xlu0 %v9129_v51, %s8232_s30 }
 0x59b   : > { %4812 = vrot.lane.b32.xlu1 %v4061_v58, %s8232_s30 }
 0x59c   : > { %4931 = vrot.lane.b32.xlu0 %v9110_v29, %s8234_s15 }
 0x59f   : > { %4933 = vrot.lane.b32.xlu1 %v9112_v32, %s8234_s15 }
 0x5a0   : > { %4929 = vrot.lane.b32.xlu0 %v9105_v9, %s8234_s15 }
 0x5a3   : > { %4937 = vrot.lane.b32.xlu1 %v4062_v63, %s8234_s15 }
 0x5a4   : > { %4939 = vrot.lane.b32.xlu0 %v9129_v51, %s8234_s15 }
 0x5a7   : > { %4935 = vrot.lane.b32.xlu1 %v4061_v58, %s8234_s15 }
 0x5a8   : > { %5054 = vrot.lane.b32.xlu0 %v9110_v29, %s8235_s16 }
 0x5ab   : > { %5056 = vrot.lane.b32.xlu1 %v9112_v32, %s8235_s16  ;;  %v8172_v32 = vld [vmem:[%s9774_s5] sm:$0xff]  }
 0x5ac   : > { %5052 = vrot.lane.b32.xlu0 %v9105_v9, %s8235_s16 }
 0x5af   : > { %5060 = vrot.lane.b32.xlu1 %v4062_v63, %s8235_s16 }
 0x5b0   : > { %5062 = vrot.lane.b32.xlu0 %v9129_v51, %s8235_s16 }
 0x5b3   : > { %5058 = vrot.lane.b32.xlu1 %v4061_v58, %s8235_s16 }
 0x5b4   : > { %5171 = vperm.xlu0 %8142, %v5167_v40  }
 0x5b5   : > { %v4083_v60 = vpop.permute.xlu0 %4082 }
 0x5b6   : > { %v4085_v3 = vpop.permute.xlu1 %4084  ;;  %v4096_v38 = vsel %vm531_vm2, %v4081_v35, %v4083_v60 }
 0x5b7   : > { %5176 = vperm.xlu1 %8143, %v5168_v48   ;;  %v4097_v4 = vsel %vm531_vm2, %v4083_v60, %v4085_v3 }
 0x5b8   : > { %4112 = vmatprep.subr.bf16.mxu1 %v4097_v4 }
 0x5b9   : > { %4113 = vmatpush1.bf16.msra.mxu1 %v4096_v38 }
 0x5bd   : > { %v4091_v45 = vpop.permute.xlu1 %4090 }
 0x5be   : > { %v4093_v5 = vpop.permute.xlu0 %4092 }
 0x5bf   : > { %v4100_v59 = vsel %vm531_vm2, %v4091_v45, %v4093_v5 }
 0x5c0   : > { %4114 = vmatprep.subr.bf16.mxu1 %v4100_v59 }
 0x5c1   : > { %v4089_v6 = vpop.permute.xlu1 %4088 }
 0x5c2   : > { %v4099_v8 = vsel %vm531_vm2, %v4089_v6, %v4091_v45  ;;  %v4087_v11 = vpop.permute.xlu0 %4086  ;;  %v8174_v6 = vld [vmem:[%s9774_s5 + $0x18] sm:$0xff]  }
 0x5c3   : > { %4115 = vmatpush1.bf16.msra.mxu1 %v4099_v8  ;;  %v4098_v16 = vsel %vm531_vm2, %v4085_v3, %v4087_v11 }
 0x5c4   : > { %7781 = vmatprep.subr.bf16.mxu1 %v8231_v10 }
 0x5c5   : > { %v4095_v15 = vpop.permute.xlu1 %4094 }
 0x5c6   : > { %v4204_v18 = vpop.permute.xlu0 %4203  ;;  %7386 = vmatmul.mubr.msk.bf16.vlgmr.msra.gmra.mrb[76].mxu1 %vm4108_vm11, %v8171_v13  ;;  %v4101_v21 = vsel %vm531_vm2, %v4093_v5, %v4095_v15 }
 0x5c7   : > { %7782 = vmatpush3.bf16.msra.mxu1 %v4098_v16  ;;  %7785 = vmatprep.mubr.msk.bf16.mxu1 %vm9798_vm1, %v8231_v10 }
 0x5c8   : > { %7783 = vmatprep.subr.bf16.mxu1 %v8231_v10 }
 0x5c9   : > { %v4206_v20 = vpop.permute.xlu1 %4205 }
 0x5ca   : > { %v4202_v9 = vpop.permute.xlu0 %4201  ;;  %v4218_v22 = vsel %vm638_vm4, %v4204_v18, %v4206_v20 }
 0x5cb   : > { %7784 = vmatpush3.bf16.msra.mxu1 %v4101_v21  ;;  %v4217_v24 = vsel %vm638_vm4, %v4202_v9, %v4204_v18 }
 0x5cc   : > { %4232 = vmatprep.subr.bf16.mxu1 %v4218_v22  ;;  %v8176_v22 = vld [vmem:[%s9774_s5 + $0x28] sm:$0xff]  }
 0x5cd   : > { %v4212_v23 = vpop.permute.xlu1 %4211 }
 0x5ce   : > { %v4214_v27 = vpop.permute.xlu0 %4213  ;;  %7786 = vmatmul.mubr.msk.bf16.vlgmr.msra.gmra.mrb[80].mxu1 %vm4108_vm11, %v8171_v13 }
 0x5cf   : > { %4233 = vmatpush1.bf16.msra.mxu1 %v4217_v24  ;;  %v4221_v28 = vsel %vm638_vm4, %v4212_v23, %v4214_v27  ;;  %4264 = vmatprep.mubr.bf16.mxu1 %v8226_v7 }
 0x5d0   : > { %4234 = vmatprep.subr.bf16.mxu1 %v4221_v28 }
 0x5d1   : > { %v4210_v29 = vpop.permute.xlu1 %4209 }
 0x5d2   : > { %v4220_v30 = vsel %vm638_vm4, %v4210_v29, %v4212_v23  ;;  %v4208_v31 = vpop.permute.xlu0 %4207  ;;  %v8202_v23 = vpack.c.bf16 %v9092_v26, %v9088_v12  ;;  %v8208_v12 = vpack.c.bf16 %v9134_v53, %v9121_v39 }
 0x5d3   : > { %4235 = vmatpush1.bf16.msra.mxu1 %v4220_v30  ;;  %v4219_v34 = vsel %vm638_vm4, %v4206_v20, %v4208_v31  ;;  %v8199_v20 = vpack.c.bf16 %v9100_v19, %v9090_v14  ;;  %v8205_v14 = vpack.c.bf16 %v9139_v55, %v9127_v50  ;;  %v8177_v30 = vld [vmem:[%s9774_s5 + $0x30] sm:$0xff]  }
 0x5d4   : > { %7789 = vmatprep.subr.bf16.mxu1 %v8231_v10 }
 0x5d5   : > { %v4216_v33 = vpop.permute.xlu1 %4215 }
 0x5d6   : > { %v4327_v36 = vpop.permute.xlu0 %4326  ;;  %7389 = vmatmul.mubr.msk.bf16.vlgmr.msra.gmra.mrb[76].mxu1 %vm4108_vm11, %v8172_v32  ;;  %v4222_v25 = vsel %vm638_vm4, %v4214_v27, %v4216_v33 }
 0x5d7   : > { %7790 = vmatpush3.bf16.msra.mxu1 %v4219_v34  ;;  %7793 = vmatprep.mubr.msk.bf16.mxu1 %vm9798_vm1, %v8231_v10 }
 0x5d8   : > { %7791 = vmatprep.subr.bf16.mxu1 %v8231_v10 }
 0x5d9   : > { %v4329_v37 = vpop.permute.xlu1 %4328 }
 0x5da   : > { %v4325_v42 = vpop.permute.xlu0 %4324  ;;  %v4341_v43 = vsel %vm745_vm6, %v4327_v36, %v4329_v37 }
 0x5db   : > { %7792 = vmatpush3.bf16.msra.mxu1 %v4222_v25  ;;  %v4340_v49 = vsel %vm745_vm6, %v4325_v42, %v4327_v36 }
 0x5dc   : > { %4355 = vmatprep.subr.bf16.mxu1 %v4341_v43 }
 0x5dd   : > { %v4335_v47 = vpop.permute.xlu1 %4334 }
 0x5de   : > { %v4337_v46 = vpop.permute.xlu0 %4336  ;;  %7794 = vmatmul.mubr.msk.bf16.vlgmr.msra.gmra.mrb[84].mxu1 %vm4108_vm11, %v8172_v32 }
 0x5df   : > { %4356 = vmatpush1.bf16.msra.mxu1 %v4340_v49  ;;  %v4344_v51 = vsel %vm745_vm6, %v4335_v47, %v4337_v46  ;;  %4387 = vmatprep.mubr.bf16.mxu1 %v8226_v7 }
 0x5e0   : > { %4357 = vmatprep.subr.bf16.mxu1 %v4344_v51 }
 0x5e1   : > { %v4333_v52 = vpop.permute.xlu1 %4332 }
 0x5e2   : > { %v4343_v54 = vsel %vm745_vm6, %v4333_v52, %v4335_v47  ;;  %v4331_v56 = vpop.permute.xlu0 %4330  ;;  %v8178_v47 = vld [vmem:[%s9774_s5 + $0x38] sm:$0xff]  }
 0x5e3   : > { %4358 = vmatpush1.bf16.msra.mxu1 %v4343_v54  ;;  %v4342_v62 = vsel %vm745_vm6, %v4329_v37, %v4331_v56 }
 0x5e4   : > { %7797 = vmatprep.subr.bf16.mxu1 %v8231_v10 }
 0x5e5   : > { %v4339_v58 = vpop.permute.xlu1 %4338 }
 0x5e6   : > { %v4456_v63 = vpop.permute.xlu0 %4455  ;;  %7394 = vmatmul.mubr.msk.bf16.vlgmr.msra.gmra.mrb[76].mxu1 %vm4108_vm11, %v8173_v57  ;;  %v4345_v35 = vsel %vm745_vm6, %v4337_v46, %v4339_v58 }
 0x5e7   : > { %7798 = vmatpush3.bf16.msra.mxu1 %v4342_v62  ;;  %7801 = vmatprep.mubr.msk.bf16.mxu1 %vm9798_vm1, %v8231_v10 }
 0x5e8   : > { %7799 = vmatprep.subr.bf16.mxu1 %v8231_v10 }
 0x5e9   : > { %v4458_v0 = vpop.permute.xlu1 %4457 }
 0x5ea   : > { %v4454_v40 = vpop.permute.xlu0 %4453  ;;  %v4470_v48 = vsel %vm855_vm7, %v4456_v63, %v4458_v0 }
 0x5eb   : > { %7800 = vmatpush3.bf16.msra.mxu1 %v4345_v35  ;;  %v4469_v3 = vsel %vm855_vm7, %v4454_v40, %v4456_v63  ;;  %v8179_v63 = vld [vmem:[%s9774_s5 + $0x40] sm:$0xff]  }
 0x5ec   : > { %4484 = vmatprep.subr.bf16.mxu1 %v4470_v48 }
 0x5ed   : > { %v4464_v60 = vpop.permute.xlu1 %4463 }
 0x5ee   : > { %v4466_v4 = vpop.permute.xlu0 %4465  ;;  %7802 = vmatmul.mubr.msk.bf16.vlgmr.msra.gmra.mrb[88].mxu1 %vm4108_vm11, %v8173_v57 }
 0x5ef   : > { %4485 = vmatpush1.bf16.msra.mxu1 %v4469_v3  ;;  %v4473_v38 = vsel %vm855_vm7, %v4464_v60, %v4466_v4  ;;  %4516 = vmatprep.mubr.bf16.mxu1 %v8226_v7 }
 0x5f0   : > { %4486 = vmatprep.subr.bf16.mxu1 %v4473_v38 }
 0x5f1   : > { %v4462_v45 = vpop.permute.xlu1 %4461 }
 0x5f2   : > { %v4472_v5 = vsel %vm855_vm7, %v4462_v45, %v4464_v60  ;;  %v4460_v59 = vpop.permute.xlu0 %4459 }
 0x5f3   : > { %4487 = vmatpush1.bf16.msra.mxu1 %v4472_v5  ;;  %v4471_v11 = vsel %vm855_vm7, %v4458_v0, %v4460_v59 }
 0x5f4   : > { %7805 = vmatprep.subr.bf16.mxu1 %v8231_v10 }
 0x5f5   : > { %v4468_v8 = vpop.permute.xlu1 %4467 }
 0x5f6   : > { %v4686_v13 = vpop.permute.xlu0 %4685  ;;  %7399 = vmatmul.mubr.msk.bf16.vlgmr.msra.gmra.mrb[76].mxu1 %vm4108_vm11, %v8174_v6  ;;  %v4474_v16 = vsel %vm855_vm7, %v4466_v4, %v4468_v8 }
 0x5f7   : > { %7806 = vmatpush3.bf16.msra.mxu1 %v4471_v11  ;;  %7809 = vmatprep.mubr.msk.bf16.mxu1 %vm9798_vm1, %v8231_v10 }
 0x5f8   : > { %7807 = vmatprep.subr.bf16.mxu1 %v8231_v10 }
 0x5f9   : > { %v4688_v15 = vpop.permute.xlu1 %4687 }
 0x5fa   : > { %v4684_v18 = vpop.permute.xlu0 %4683  ;;  %7822 = vmatpush3.bf16.msra.mxu0 %v4688_v15  ;;  %v4696_v26 = vsel %vm1061_vm8, %v4686_v13, %v4688_v15 }
 0x5fb   : > { %7808 = vmatpush3.bf16.msra.mxu1 %v4474_v16  ;;  %7823 = vmatprep.subr.bf16.mxu0 %v8231_v10  ;;  %v4695_v55 = vsel %vm1061_vm8, %v4684_v18, %v4686_v13 }
 0x5fc   : > { %8200 = vmatprep.subr.msk.bf16.mxu1 %vm8956_vm5, %v8199_v20 }
 0x5fd   : > { %v4692_v21 = vpop.permute.xlu1 %4691 }
 0x5fe   : > { %v4694_v9 = vpop.permute.xlu0 %4693  ;;  %7810 = vmatmul.mubr.msk.bf16.vlgmr.msra.gmra.mrb[92].mxu1 %vm4108_vm11, %v8174_v6 }
 0x5ff   : > { %8203 = vmatpush1.bf16.msk.msra.mxu1 %vm8980_vm12, %v8202_v23  ;;  %7824 = vmatpush3.bf16.msra.mxu0 %v4694_v9  ;;  %v4698_v39 = vsel %vm1061_vm8, %v4692_v21, %v4694_v9 }
 0x600   : > { %8206 = vmatprep.subr.msk.bf16.mxu1 %vm8956_vm5, %v8205_v14  ;;  %4617 = vmatprep.mubr.bf16.mxu1 %v8226_v7 }
 0x601   : > { %v4690_v19 = vpop.permute.xlu1 %4689  ;;  %7829 = vmatprep.subr.bf16.mxu0 %v8231_v10 }
 0x602   : > { %v4809_v24 = vpop.permute.xlu0 %4808  ;;  %7826 = vmatmul.mubr.msk.bf16.vlgmr.msra.gmra.mrb[52].mxu0 %vm4108_vm11, %v8176_v22  ;;  %v4697_v28 = vsel %vm1061_vm8, %v4690_v19, %v4692_v21 }
 0x603   : > { %8209 = vmatpush1.bf16.msk.msra.mxu1 %vm8980_vm12, %v8208_v12  ;;  %7833 = vmatprep.mubr.msk.bf16.mxu0 %vm9798_vm1, %v8231_v10 }
 0x604   : > { %4708 = vmatprep.subr.bf16.mxu1 %v4696_v26 }
 0x605   : > { %v4811_v50 = vpop.permute.xlu1 %4810 }
 0x606   : > { %v4807_v27 = vpop.permute.xlu0 %4806  ;;  %7404 = vmatmul.mubr.msk.bf16.vlgmr.msra.gmra.mrb[76].mxu1 %vm4108_vm11, %v9188_v1  ;;  %7830 = vmatpush3.bf16.msra.mxu0 %v4811_v50  ;;  %v4819_v1 = vsel %vm9799_vm10, %v4809_v24, %v4811_v50  ;;  %vm9802_vm10 = vmmov %vm9801_vm3 }
 0x607   : > { %4709 = vmatpush1.bf16.msra.mxu1 %v4695_v55  ;;  %7831 = vmatprep.subr.bf16.mxu0 %v8231_v10  ;;  %v4818_v34 = vsel %vm9800_vm9, %v4807_v27, %v4809_v24  ;;  %vm9803_vm9 = vcmask 900096  }
 0x608   : > { %4710 = vmatprep.subr.bf16.mxu1 %v4698_v39  ;;  %4740 = vmatprep.mubr.bf16.mxu1 %v8226_v7 }
 0x609   : > { %v4815_v53 = vpop.permute.xlu1 %4814 }
 0x60a   : > { %v4817_v29 = vpop.permute.xlu0 %4816 }
 0x60b   : > { %4711 = vmatpush1.bf16.msra.mxu1 %v4697_v28  ;;  %7832 = vmatpush3.bf16.msra.mxu0 %v4817_v29  ;;  %v4821_v37 = vsel %vm9801_vm3, %v4815_v53, %v4817_v29  ;;  %vm9804_vm3 = vmmov %vm9803_vm9 }
 0x60c   : > { %4831 = vmatprep.subr.bf16.mxu1 %v4819_v1  ;;  %7837 = vmatprep.subr.bf16.mxu0 %v8231_v10 }
 0x60d   : > { %v4813_v31 = vpop.permute.xlu1 %4812 }
 0x60e   : > { %v4932_v32 = vpop.permute.xlu0 %4931  ;;  %7834 = vmatmul.mubr.msk.bf16.vlgmr.msra.gmra.mrb[56].mxu0 %vm4108_vm11, %v8177_v30  ;;  %v4820_v42 = vsel %vm9802_vm10, %v4813_v31, %v4815_v53  ;;  %vm9805_vm10 = vmmov %vm9804_vm3 }
 0x60f   : > { %7841 = vmatprep.mubr.msk.bf16.mxu0 %vm9798_vm1, %v8231_v10 }
 0x611   : > { %v4934_v33 = vpop.permute.xlu1 %4933 }
 0x612   : > { %v4930_v36 = vpop.permute.xlu0 %4929  ;;  %7409 = vmatmul.mubr.msk.bf16.vlgmr.msra.gmra.mrb[76].mxu1 %vm4108_vm11, %v8176_v22  ;;  %7838 = vmatpush3.bf16.msra.mxu0 %v4934_v33  ;;  %v4942_v49 = vsel %vm9803_vm9, %v4932_v32, %v4934_v33  ;;  %vm9806_vm9 = vmmov %vm9804_vm3 }
 0x613   : > { %4832 = vmatpush1.bf16.msra.mxu1 %v4818_v34  ;;  %7839 = vmatprep.subr.bf16.mxu0 %v8231_v10  ;;  %v4941_v54 = vsel %vm9804_vm3, %v4930_v36, %v4932_v32  ;;  %vm9807_vm3 = vcmask 891904  }
 0x614   : > { %4833 = vmatprep.subr.bf16.mxu1 %v4821_v37  ;;  %4863 = vmatprep.mubr.bf16.mxu1 %v8226_v7 }
 0x615   : > { %v4938_v25 = vpop.permute.xlu1 %4937 }
 0x616   : > { %v4940_v43 = vpop.permute.xlu0 %4939 }
 0x617   : > { %4834 = vmatpush1.bf16.msra.mxu1 %v4820_v42  ;;  %7840 = vmatpush3.bf16.msra.mxu0 %v4940_v43  ;;  %v4944_v57 = vsel %vm9805_vm10, %v4938_v25, %v4940_v43  ;;  %vm9808_vm10 = vmmov %vm9807_vm3 }
 0x618   : > { %4954 = vmatprep.subr.bf16.mxu1 %v4942_v49  ;;  %7845 = vmatprep.subr.bf16.mxu0 %v8231_v10 }
 0x619   : > { %v4936_v46 = vpop.permute.xlu1 %4935 }
 0x61a   : > { %v5055_v51 = vpop.permute.xlu0 %5054  ;;  %7842 = vmatmul.mubr.msk.bf16.vlgmr.msra.gmra.mrb[60].mxu0 %vm4108_vm11, %v8178_v47  ;;  %v4943_v58 = vsel %vm9806_vm9, %v4936_v46, %v4938_v25  ;;  %vm9809_vm9 = vmmov %vm9807_vm3 }
 0x61b   : > { %7849 = vmatprep.mubr.msk.bf16.mxu0 %vm9798_vm1, %v8231_v10 }
 0x61d   : > { %v5057_v52 = vpop.permute.xlu1 %5056 }
 0x61e   : > { %v5053_v56 = vpop.permute.xlu0 %5052  ;;  %7414 = vmatmul.mubr.msk.bf16.vlgmr.msra.gmra.mrb[76].mxu1 %vm4108_vm11, %v8177_v30  ;;  %7846 = vmatpush3.bf16.msra.mxu0 %v5057_v52  ;;  %v5065_v0 = vsel %vm9807_vm3, %v5055_v51, %v5057_v52 }
 0x61f   : > { %4955 = vmatpush1.bf16.msra.mxu1 %v4941_v54  ;;  %7847 = vmatprep.subr.bf16.mxu0 %v8231_v10  ;;  %v5064_v40 = vsel %vm9808_vm10, %v5053_v56, %v5055_v51  ;;  %v4662_v4 = vpop.f32.mrb[48].mxu0 }
 0x620   : > { %4956 = vmatprep.subr.bf16.mxu1 %v4944_v57  ;;  %4986 = vmatprep.mubr.bf16.mxu1 %v8226_v7  ;;  %v7819_v38 = vpop.f32.mrb[49].mxu0 }
 0x621   : > { %v5061_v35 = vpop.permute.xlu1 %5060  ;;  %v4665_v45 = vpop.f32.mrb[50].mxu0 }
 0x622   : > { %v5063_v62 = vpop.permute.xlu0 %5062  ;;  %v7820_v5 = vpop.f32.mrb[51].mxu0 }
 0x623   : > { %4957 = vmatpush1.bf16.msra.mxu1 %v4943_v58  ;;  %7848 = vmatpush3.bf16.msra.mxu0 %v5063_v62  ;;  %v5067_v60 = vsel %vm9809_vm9, %v5061_v35, %v5063_v62 }
 0x624   : > { %5077 = vmatprep.subr.bf16.mxu1 %v5065_v0  ;;  %7853 = vmatprep.subr.bf16.mxu0 %v8231_v10 }
 0x625   : > { %v5059_v48 = vpop.permute.xlu1 %5058 }
 0x626   : > { %7850 = vmatmul.mubr.msk.bf16.vlgmr.msra.gmra.mrb[64].mxu0 %vm4108_vm11, %v8179_v63  ;;  %v5066_v3 = vsel %vm9807_vm3, %v5059_v48, %v5061_v35 }
 0x627   : > { %7855 = vmatprep.mubr.msk.bf16.mxu0 %vm9798_vm1, %v8231_v10 }
 0x62a   : > { %7419 = vmatmul.mubr.msk.bf16.vlgmr.msra.gmra.mrb[76].mxu1 %vm4108_vm11, %v8178_v47 }
 0x62b   : > { %5078 = vmatpush1.bf16.msra.mxu1 %v5064_v40  ;;  %5109 = vmatprep.mubr.bf16.mxu1 %v8226_v7 }
 0x62c   : > { %5079 = vmatprep.subr.bf16.mxu1 %v5067_v60 }
 0x62f   : > { %5080 = vmatpush1.bf16.msra.mxu1 %v5066_v3 }
 0x633   : > { %v5172_v62 = vpop.permute.xlu0 %5171 }
 0x636   : > { %7424 = vmatmul.mubr.msk.bf16.vlgmr.msra.gmra.mrb[76].mxu1 %vm4108_vm11, %v8179_v63  ;;  %v5177_v48 = vpop.permute.xlu1 %5176 }
 0x637   : > { %5283 = vmatprep.mubr.bf16.mxu1 %v8226_v7 }
 0x6a1   : > { %v4189_v59 = vpop.f32.mrb[80].mxu1 }
 0x6a2   : > { %v7787_v6 = vpop.f32.mrb[81].mxu1 }
 0x6a3   : > { %v4192_v8 = vpop.f32.mrb[82].mxu1 }
 0x6a4   : > { %v7788_v11 = vpop.f32.mrb[83].mxu1 }
 0x6b1   : > { %v4309_v13 = vpop.f32.mrb[84].mxu1 }
 0x6b2   : > { %v4310_v15 = vadd.f32 %v4309_v13, %v4189_v59  ;;  %v7795_v16 = vpop.f32.mrb[85].mxu1 }
 0x6b3   : > { %v4312_v18 = vpop.f32.mrb[86].mxu1 }
 0x6b4   : > { %v4313_v20 = vadd.f32 %v4312_v18, %v4192_v8  ;;  %v7796_v21 = vpop.f32.mrb[87].mxu1 }
 0x6c1   : > { %v4432_v9 = vpop.f32.mrb[88].mxu1 }
 0x6c2   : > { %v4441_v22 = vadd.f32 %v4432_v9, %v4310_v15  ;;  %v7803_v23 = vpop.f32.mrb[89].mxu1 }
 0x6c3   : > { %v4435_v14 = vpop.f32.mrb[90].mxu1 }
 0x6c4   : > { %v4444_v19 = vadd.f32 %v4435_v14, %v4313_v20  ;;  %v7804_v24 = vpop.f32.mrb[91].mxu1 }
 0x6d1   : > { %v4561_v12 = vpop.f32.mrb[92].mxu1 }
 0x6d2   : > { %v4570_v26 = vadd.f32 %v4561_v12, %v4441_v22  ;;  %v7811_v50 = vpop.f32.mrb[93].mxu1 }
 0x6d3   : > { %v4564_v55 = vpop.f32.mrb[94].mxu1 }
 0x6d4   : > { %v4671_v27 = vadd.f32 %v4662_v4, %v4570_v26  ;;  %v4573_v39 = vadd.f32 %v4564_v55, %v4444_v19  ;;  %v7812_v53 = vpop.f32.mrb[95].mxu1 }
 0x6d5   : > { %v4785_v28 = vpop.f32.mrb[52].mxu0 }
 0x6d6   : > { %v4674_v29 = vadd.f32 %v4665_v45, %v4573_v39  ;;  %v4794_v30 = vadd.f32 %v4785_v28, %v4671_v27  ;;  %v7827_v1 = vpop.f32.mrb[53].mxu0  ;;  %v5215_v27 = vld [vmem:[#allocation3] sm:$0xff] }
 0x6d7   : > { %v4788_v31 = vpop.f32.mrb[54].mxu0  ;;  %v5219_v39 = vld [vmem:[#allocation3 + $0x20] sm:$0xff] }
 0x6d8   : > { %v4797_v32 = vadd.f32 %v4788_v31, %v4674_v29  ;;  %v7828_v33 = vpop.f32.mrb[55].mxu0 }
 0x6d9   : > { %v6125_v33 = vld [vmem:[%s9781_s12] sm:$0xff] }
 0x6e1   : > { %v4908_v34 = vpop.f32.mrb[56].mxu0 }
 0x6e2   : > { %v4917_v36 = vadd.f32 %v4908_v34, %v4794_v30  ;;  %v7835_v37 = vpop.f32.mrb[57].mxu0  ;;  %v5224_v30 = vpack.c.bf16 %v5219_v39, %v5215_v27  ;;  %v7443_v39 = vld [vmem:[%s9775_s6 + $0x18] sm:$0xf] }
 0x6e3   : > { %v4911_v25 = vpop.f32.mrb[58].mxu0 }
 0x6e4   : > { %v4920_v42 = vadd.f32 %v4911_v25, %v4797_v32  ;;  %v7836_v43 = vpop.f32.mrb[59].mxu0 }
 0x6ed   : > { %v5031_v47 = vpop.f32.mrb[60].mxu0 }
 0x6ee   : > { %v5040_v49 = vadd.f32 %v5031_v47, %v4917_v36  ;;  %v7843_v46 = vpop.f32.mrb[61].mxu0 }
 0x6ef   : > { %v5034_v51 = vpop.f32.mrb[62].mxu0 }
 0x6f0   : > { %v5043_v52 = vadd.f32 %v5034_v51, %v4920_v42  ;;  %v7844_v54 = vpop.f32.mrb[63].mxu0 }
 0x6f9   : > { %v5154_v56 = vpop.f32.mrb[64].mxu0 }
 0x6fa   : > { %v5163_v57 = vadd.f32 %v5154_v56, %v5040_v49  ;;  %v7851_v58 = vpop.f32.mrb[65].mxu0  ;;  %v7426_v49 = vld [vmem:[%s9775_s6 + $0x4] sm:$0xf] }
 0x6fb   : > { %v5157_v63 = vpop.f32.mrb[66].mxu0 }
 0x6fc   : > { %v5181_v0 = vadd.f32 %v5172_v62, %v5163_v57  ;;  %v5166_v35 = vadd.f32 %v5157_v63, %v5043_v52  ;;  %v7852_v40 = vpop.f32.mrb[67].mxu0 }
 0x6fe   : > { %vm5187_vm11 = vcmp.ge.f32.partialorder %v5181_v0, 0.0  ;;  %v5193_v60 = vmul.f32 0.01, %v5181_v0  ;;  %v5184_v3 = vadd.f32 %v5177_v48, %v5166_v35 }
 0x700   : > { %v5199_v4 = vsel %vm5187_vm11, %v5181_v0, %v5193_v60  ;;  %vm5190_vm10 = vcmp.ge.f32.partialorder %v5184_v3, 0.0  ;;  %v5196_v38 = vmul.f32 0.01, %v5184_v3 }
 0x701   : > { %v5205_v45 = vsel %vm1514_vm13, %v5199_v4, 0.0  ;;  %v7431_v4 = vld [vmem:[%s9775_s6 + $0x8] sm:$0xf] }
 0x702   : > { %5211 = vst.msk [vmem:[#allocation3 + $0x18] sm:$0xff] %vm1520_vm15, %v5205_v45  ;;  %v5202_v5 = vsel %vm5190_vm10, %v5184_v3, %v5196_v38 }
 0x703   : > { %v5208_v59 = vsel %vm1514_vm13, %v5202_v5, 0.0 }
 0x704   : > { %5214 = vst.msk [vmem:[#allocation3 + $0x38] sm:$0xff] %vm1520_vm15, %v5208_v59 }
 0x709   : > { %v5111_v6 = vpop.f32.mrb[76].mxu1  ;;  %v5218_v31 = vld [vmem:[#allocation3 + $0x18] sm:$0xff] }
 0x70a   : > { %v5179_v8 = vadd.f32 %v5172_v62, %v5111_v6  ;;  %v5113_v11 = vpop.f32.mrb[77].mxu1 }
 0x70b   : > { %v5180_v13 = vadd.f32 %v5172_v62, %v5113_v11  ;;  %v5115_v15 = vpop.f32.mrb[78].mxu1  ;;  %v5222_v1 = vld [vmem:[#allocation3 + $0x38] sm:$0xff]  ;;  %v5223_v62 = vld [vmem:[%s9775_s6] sm:$0xf] }
 0x70c   : > { %vm5185_vm9 = vcmp.ge.f32.partialorder %v5179_v8, 0.0  ;;  %v5191_v16 = vmul.f32 0.01, %v5179_v8  ;;  %v5182_v18 = vadd.f32 %v5177_v48, %v5115_v15  ;;  %v5117_v20 = vpop.f32.mrb[79].mxu1  ;;  %v9414_v32 = vpack.c.bf16 %v5222_v1, %v5218_v31  ;;  %v7446_v31 = vld [vmem:[%s9775_s6 + $0x1c] sm:$0xf] }
 0x70d   : > { %vm5186_vm3 = vcmp.ge.f32.partialorder %v5180_v13, 0.0  ;;  %v5192_v21 = vmul.f32 0.01, %v5180_v13  ;;  %v5183_v9 = vadd.f32 %v5177_v48, %v5117_v20 }
 0x70e   : > { %v9392_v22 = vsel %vm5185_vm9, %v5179_v8, %v5191_v16  ;;  %vm5188_vm11 = vcmp.ge.f32.partialorder %v5182_v18, 0.0  ;;  %v5194_v23 = vmul.f32 0.01, %v5182_v18  ;;  %vm9810_vm9 = vcmask 130048  }
 0x70f   : > { %v5203_v14 = vsel %vm1512_vm14, %v9392_v22, 0.0  ;;  %v9397_v19 = vsel %vm5186_vm3, %v5180_v13, %v5192_v21  ;;  %vm5189_vm10 = vcmp.ge.f32.partialorder %v5183_v9, 0.0  ;;  %v5195_v24 = vmul.f32 0.01, %v5183_v9  ;;  %vm9811_vm3 = vmmov %vm9810_vm9  ;;  %v7434_v13 = vld [vmem:[%s9775_s6 + $0xc] sm:$0xf] }
 0x710   : > { %v5204_v12 = vsel %vm1513_vm0, %v9397_v19, 0.0  ;;  %v9402_v26 = vsel %vm5188_vm11, %v5182_v18, %v5194_v23  ;;  %vm9812_vm11 = vmmov %vm9811_vm3 }
 0x711   : > { %v5206_v50 = vsel %vm1512_vm14, %v9402_v26, 0.0  ;;  %v9407_v55 = vsel %vm5189_vm10, %v5183_v9, %v5195_v24  ;;  %vm9813_vm10 = vmmov %vm9811_vm3  ;;  %v8214_v20 = vpack.c.bf16 %v9402_v26, %v9392_v22  ;;  %v7437_v22 = vld [vmem:[%s9775_s6 + $0x10] sm:$0xf] }
 0x712   : > { %v5207_v53 = vsel %vm1513_vm0, %v9407_v55, 0.0  ;;  %v5225_v28 = vpack.c.bf16 %v5206_v50, %v5203_v14  ;;  %v8211_v15 = vpack.c.bf16 %v9407_v55, %v9397_v19 }
 0x713   : > { %v5226_v29 = vpack.c.bf16 %v5207_v53, %v5204_v12  ;;  %v7440_v12 = vld [vmem:[%s9775_s6 + $0x14] sm:$0xf] }
 0x714   : > { %5236 = vrot.lane.b32.xlu0 %v5225_v28, %s8225_s24 }
 0x715   : > { %5238 = vrot.lane.b32.xlu1 %v5226_v29, %s8225_s24 }
 0x718   : > { %5234 = vrot.lane.b32.xlu0 %v5224_v30, %s8225_s24 }
 0x719   : > { %5240 = vrot.lane.b32.xlu1 %v9414_v32, %s8225_s24 }
 0x71c   : > { %5334 = vrot.lane.b32.xlu0 %v5225_v28, %s8227_s25 }
 0x71d   : > { %5336 = vrot.lane.b32.xlu1 %v5226_v29, %s8227_s25 }
 0x720   : > { %5332 = vrot.lane.b32.xlu0 %v5224_v30, %s8227_s25 }
 0x721   : > { %5338 = vrot.lane.b32.xlu1 %v9414_v32, %s8227_s25 }
 0x724   : > { %5434 = vrot.lane.b32.xlu0 %v5225_v28, %s8228_s26 }
 0x725   : > { %5436 = vrot.lane.b32.xlu1 %v5226_v29, %s8228_s26 }
 0x728   : > { %5432 = vrot.lane.b32.xlu0 %v5224_v30, %s8228_s26 }
 0x729   : > { %5438 = vrot.lane.b32.xlu1 %v9414_v32, %s8228_s26 }
 0x72c   : > { %5537 = vrot.lane.b32.xlu0 %v5225_v28, %s8229_s27 }
 0x72d   : > { %5539 = vrot.lane.b32.xlu1 %v5226_v29, %s8229_s27 }
 0x730   : > { %5535 = vrot.lane.b32.xlu0 %v5224_v30, %s8229_s27 }
 0x731   : > { %5541 = vrot.lane.b32.xlu1 %v9414_v32, %s8229_s27 }
 0x734   : > { %5729 = vrot.lane.b32.xlu0 %v5226_v29, %s8230_s28 }
 0x735   : > { %5731 = vrot.lane.b32.xlu1 %v9414_v32, %s8230_s28 }
 0x738   : > { %5727 = vrot.lane.b32.xlu0 %v5225_v28, %s8230_s28 }
 0x739   : > { %5829 = vrot.lane.b32.xlu1 %v5226_v29, %s8232_s30 }
 0x73c   : > { %5831 = vrot.lane.b32.xlu0 %v9414_v32, %s8232_s30 }
 0x73d   : > { %5827 = vrot.lane.b32.xlu1 %v5225_v28, %s8232_s30 }
 0x740   : > { %5929 = vrot.lane.b32.xlu0 %v5226_v29, %s8234_s15 }
 0x741   : > { %5931 = vrot.lane.b32.xlu1 %v9414_v32, %s8234_s15 }
 0x744   : > { %5927 = vrot.lane.b32.xlu0 %v5225_v28, %s8234_s15 }
 0x745   : > { %6029 = vrot.lane.b32.xlu1 %v5226_v29, %s8235_s16 }
 0x748   : > { %6031 = vrot.lane.b32.xlu0 %v9414_v32, %s8235_s16 }
 0x749   : > { %6027 = vrot.lane.b32.xlu1 %v5225_v28, %s8235_s16 }
 0x74c   : > { %6128 = vperm.xlu0 %8142, %v6125_v33   ;;  %v7449_v33 = vld [vmem:[%s9775_s6 + $0x20] sm:$0xf] }
 0x786   : > { %v5237_v34 = vpop.permute.xlu0 %5236 }
 0x787   : > { %v5239_v36 = vpop.permute.xlu1 %5238 }
 0x788   : > { %v5243_v37 = vsel %vm531_vm2, %v5237_v34, %v5239_v36 }
 0x789   : > { %5251 = vmatprep.subr.bf16.mxu1 %v5243_v37 }
 0x78a   : > { %v5235_v25 = vpop.permute.xlu0 %5234 }
 0x78b   : > { %v5242_v42 = vsel %vm531_vm2, %v5235_v25, %v5237_v34  ;;  %v5241_v43 = vpop.permute.xlu1 %5240  ;;  %v6149_v34 = vld [vmem:[#allocation2] sm:$0xff] }
 0x78c   : > { %v5244_v47 = vsel %vm531_vm2, %v5239_v36, %v5241_v43  ;;  %5252 = vmatpush1.bf16.msra.mxu1 %v5242_v42  ;;  %v9563_v36 = vpack.c.bf16 %v6149_v34, %v6149_v34 }
 0x78d   : > { %7854 = vmatpush3.bf16.msra.mxu0 %v5244_v47 }
 0x78e   : > { %v5335_v46 = vpop.permute.xlu0 %5334  ;;  %7859 = vmatprep.subr.bf16.mxu0 %v8231_v10  ;;  %6164 = vrot.lane.b32.xlu1 %v9563_v36, %s8225_s24 }
 0x78f   : > { %v5337_v51 = vpop.permute.xlu1 %5336  ;;  %7427 = vmatmul.mubr.msk.bf16.vlgmr.msra.gmra.mrb[96].mxu1 %vm9810_vm9, %v7426_v49  ;;  %vm9814_vm9 = vmmov %vm9811_vm3 }
 0x790   : > { %7856 = vmatmul.mubr.msk.bf16.vlgmr.msra.gmra.mrb[68].mxu0 %vm9811_vm3, %v7426_v49  ;;  %v5341_v52 = vsel %vm638_vm4, %v5335_v46, %v5337_v51  ;;  %5381 = vmatprep.mubr.bf16.mxu1 %v8226_v7 }
 0x791   : > { %5349 = vmatprep.subr.bf16.mxu1 %v5341_v52  ;;  %7861 = vmatprep.mubr.msk.bf16.mxu0 %vm9798_vm1, %v8231_v10 }
 0x792   : > { %v5333_v54 = vpop.permute.xlu0 %5332 }
 0x793   : > { %v5340_v56 = vsel %vm638_vm4, %v5333_v54, %v5335_v46  ;;  %v5339_v57 = vpop.permute.xlu1 %5338 }
 0x794   : > { %v5342_v58 = vsel %vm638_vm4, %v5337_v51, %v5339_v57  ;;  %5350 = vmatpush1.bf16.msra.mxu1 %v5340_v56 }
 0x795   : > { %7860 = vmatpush3.bf16.msra.mxu0 %v5342_v58 }
 0x796   : > { %v5435_v63 = vpop.permute.xlu0 %5434  ;;  %7865 = vmatprep.subr.bf16.mxu0 %v8231_v10 }
 0x797   : > { %v5437_v0 = vpop.permute.xlu1 %5436  ;;  %7429 = vmatmul.mubr.msk.bf16.vlgmr.msra.gmra.mrb[100].mxu1 %vm9812_vm11, %v5223_v62  ;;  %vm9815_vm11 = vmmov %vm9811_vm3 }
 0x798   : > { %7862 = vmatmul.mubr.msk.bf16.vlgmr.msra.gmra.mrb[72].mxu0 %vm9813_vm10, %v5223_v62  ;;  %v5441_v35 = vsel %vm745_vm6, %v5435_v63, %v5437_v0  ;;  %5481 = vmatprep.mubr.bf16.mxu1 %v8226_v7  ;;  %vm9816_vm10 = vmmov %vm9811_vm3 }
 0x799   : > { %5449 = vmatprep.subr.bf16.mxu1 %v5441_v35  ;;  %7867 = vmatprep.mubr.msk.bf16.mxu0 %vm9798_vm1, %v8231_v10 }
 0x79a   : > { %v5433_v40 = vpop.permute.xlu0 %5432 }
 0x79b   : > { %v5440_v48 = vsel %vm745_vm6, %v5433_v40, %v5435_v63  ;;  %v5439_v60 = vpop.permute.xlu1 %5438 }
 0x79c   : > { %v5442_v3 = vsel %vm745_vm6, %v5437_v0, %v5439_v60  ;;  %5450 = vmatpush1.bf16.msra.mxu1 %v5440_v48 }
 0x79d   : > { %7866 = vmatpush3.bf16.msra.mxu0 %v5442_v3 }
 0x79e   : > { %v5538_v38 = vpop.permute.xlu0 %5537  ;;  %7871 = vmatprep.subr.bf16.mxu0 %v8231_v10 }
 0x79f   : > { %v5540_v45 = vpop.permute.xlu1 %5539  ;;  %7432 = vmatmul.mubr.msk.bf16.vlgmr.msra.gmra.mrb[104].mxu1 %vm9814_vm9, %v7431_v4  ;;  %vm9819_vm9 = vmmov %vm9811_vm3 }
 0x7a0   : > { %7868 = vmatmul.mubr.msk.bf16.vlgmr.msra.gmra.mrb[76].mxu0 %vm9811_vm3, %v7431_v4  ;;  %v5544_v5 = vsel %vm855_vm7, %v5538_v38, %v5540_v45  ;;  %5584 = vmatprep.mubr.bf16.mxu1 %v8226_v7 }
 0x7a1   : > { %5552 = vmatprep.subr.bf16.mxu1 %v5544_v5  ;;  %7873 = vmatprep.mubr.msk.bf16.mxu0 %vm9798_vm1, %v8231_v10 }
 0x7a2   : > { %v5536_v59 = vpop.permute.xlu0 %5535 }
 0x7a3   : > { %v5543_v6 = vsel %vm855_vm7, %v5536_v59, %v5538_v38  ;;  %v5542_v8 = vpop.permute.xlu1 %5541 }
 0x7a4   : > { %v5545_v11 = vsel %vm855_vm7, %v5540_v45, %v5542_v8  ;;  %5553 = vmatpush1.bf16.msra.mxu1 %v5543_v6 }
 0x7a5   : > { %7872 = vmatpush3.bf16.msra.mxu0 %v5545_v11  ;;  %8212 = vmatprep.subr.msk.bf16.mxu1 %vm8956_vm5, %v8211_v15  ;;  %vm9817_vm5 = vmmov %vm9811_vm3 }
 0x7a6   : > { %v5730_v16 = vpop.permute.xlu0 %5729  ;;  %7877 = vmatprep.subr.bf16.mxu0 %v8231_v10 }
 0x7a7   : > { %v5732_v18 = vpop.permute.xlu1 %5731  ;;  %7435 = vmatmul.mubr.msk.bf16.vlgmr.msra.gmra.mrb[108].mxu1 %vm9815_vm11, %v7434_v13  ;;  %vm9821_vm11 = vmmov %vm9817_vm5 }
 0x7a8   : > { %7874 = vmatmul.mubr.msk.bf16.vlgmr.msra.gmra.mrb[80].mxu0 %vm9816_vm10, %v7434_v13  ;;  %8215 = vmatpush1.bf16.msk.msra.mxu1 %vm8980_vm12, %v8214_v20  ;;  %v5734_v21 = vsel %vm1061_vm8, %v5730_v16, %v5732_v18  ;;  %vm9818_vm12 = vcmask 908288   ;;  %vm9822_vm10 = vmmov %vm9817_vm5 }
 0x7a9   : > { %7878 = vmatpush3.bf16.msra.mxu0 %v9414_v32  ;;  %5741 = vmatprep.subr.bf16.mxu1 %v5734_v21  ;;  %vm9820_vm3 = vmmov %vm9818_vm12 }
 0x7aa   : > { %v5728_v61 = vpop.permute.xlu0 %5727  ;;  %5673 = vmatprep.mubr.bf16.mxu1 %v8226_v7  ;;  %7879 = vmatprep.mubr.msk.bf16.mxu0 %vm9798_vm1, %v8231_v10 }
 0x7ab   : > { %v5830_v9 = vpop.permute.xlu1 %5829  ;;  %7883 = vmatprep.subr.bf16.mxu0 %v8231_v10  ;;  %v5733_v23 = vsel %vm1061_vm8, %v5728_v61, %v5730_v16 }
 0x7ae   : > { %v5832_v2 = vpop.permute.xlu0 %5831 }
 0x7af   : > { %v5828_v14 = vpop.permute.xlu1 %5827  ;;  %7438 = vmatmul.mubr.msk.bf16.vlgmr.msra.gmra.mrb[112].mxu1 %vm9817_vm5, %v7437_v22  ;;  %v5834_v19 = vsel %vm9818_vm12, %v5830_v9, %v5832_v2  ;;  %vm9823_vm5 = vcmask 900096  }
 0x7b0   : > { %5742 = vmatpush1.bf16.msra.mxu1 %v5733_v23  ;;  %7880 = vmatmul.mubr.msk.bf16.vlgmr.msra.gmra.mrb[84].mxu0 %vm9819_vm9, %v7437_v22  ;;  %v5833_v50 = vsel %vm9820_vm3, %v5828_v14, %v5830_v9  ;;  %vm9824_vm12 = vmmov %vm9823_vm5 }
 0x7b1   : > { %7884 = vmatpush3.bf16.msra.mxu0 %v5732_v18  ;;  %5841 = vmatprep.subr.bf16.mxu1 %v5834_v19  ;;  %vm9825_vm3 = vmmov %vm9819_vm9 }
 0x7b2   : > { %v5930_v24 = vpop.permute.xlu0 %5929  ;;  %5773 = vmatprep.mubr.bf16.mxu1 %v8226_v7  ;;  %7885 = vmatprep.mubr.msk.bf16.mxu0 %vm9798_vm1, %v8231_v10 }
 0x7b3   : > { %7889 = vmatprep.subr.bf16.mxu0 %v8231_v10  ;;  %v5932_v26 = vpop.permute.xlu1 %5931 }
 0x7b4   : > { %v5934_v27 = vsel %vm9823_vm5, %v5930_v24, %v5932_v26  ;;  %vm9828_vm5 = vmmov %vm9825_vm3 }
 0x7b6   : > { %v5928_v55 = vpop.permute.xlu0 %5927 }
 0x7b7   : > { %7441 = vmatmul.mubr.msk.bf16.vlgmr.msra.gmra.mrb[116].mxu1 %vm9821_vm11, %v7440_v12  ;;  %v6030_v28 = vpop.permute.xlu1 %6029  ;;  %v5933_v29 = vsel %vm9824_vm12, %v5928_v55, %v5930_v24  ;;  %vm9826_vm11 = vcmask 891904   ;;  %vm9829_vm12 = vmmov %vm9825_vm3 }
 0x7b8   : > { %5842 = vmatpush1.bf16.msra.mxu1 %v5833_v50  ;;  %7886 = vmatmul.mubr.msk.bf16.vlgmr.msra.gmra.mrb[88].mxu0 %vm9822_vm10, %v7440_v12  ;;  %vm9827_vm10 = vmmov %vm9826_vm11 }
 0x7b9   : > { %7890 = vmatpush3.bf16.msra.mxu0 %v5832_v2  ;;  %5941 = vmatprep.subr.bf16.mxu1 %v5934_v27 }
 0x7ba   : > { %5873 = vmatprep.mubr.bf16.mxu1 %v8226_v7  ;;  %7891 = vmatprep.mubr.msk.bf16.mxu0 %vm9798_vm1, %v8231_v10  ;;  %v6032_v53 = vpop.permute.xlu0 %6031 }
 0x7bb   : > { %7895 = vmatprep.subr.bf16.mxu0 %v8231_v10  ;;  %v6034_v30 = vsel %vm9826_vm11, %v6030_v28, %v6032_v53  ;;  %v6028_v1 = vpop.permute.xlu1 %6027 }
 0x7bc   : > { %v6033_v32 = vsel %vm9827_vm10, %v6028_v1, %v6030_v28 }
 0x7bf   : > { %7444 = vmatmul.mubr.msk.bf16.vlgmr.msra.gmra.mrb[120].mxu1 %vm9819_vm9, %v7443_v39  ;;  %vm9830_vm9 = vmmov %vm9825_vm3 }
 0x7c0   : > { %5942 = vmatpush1.bf16.msra.mxu1 %v5933_v29  ;;  %7892 = vmatmul.mubr.msk.bf16.vlgmr.msra.gmra.mrb[92].mxu0 %vm9825_vm3, %v7443_v39 }
 0x7c1   : > { %7896 = vmatpush3.bf16.msra.mxu0 %v5932_v26  ;;  %6041 = vmatprep.subr.bf16.mxu1 %v6034_v30 }
 0x7c2   : > { %5973 = vmatprep.mubr.bf16.mxu1 %v8226_v7  ;;  %7897 = vmatprep.mubr.msk.bf16.mxu0 %vm9798_vm1, %v8231_v10 }
 0x7c3   : > { %7901 = vmatprep.subr.bf16.mxu0 %v8231_v10 }
 0x7c7   : > { %7447 = vmatmul.mubr.msk.bf16.vlgmr.msra.gmra.mrb[124].mxu1 %vm9828_vm5, %v7446_v31 }
 0x7c8   : > { %6042 = vmatpush1.bf16.msra.mxu1 %v6033_v32  ;;  %7898 = vmatmul.mubr.msk.bf16.vlgmr.msra.gmra.mrb[96].mxu0 %vm9829_vm12, %v7446_v31 }
 0x7c9   : > { %7902 = vmatpush3.bf16.msra.mxu0 %v6032_v53  ;;  %6073 = vmatprep.mubr.bf16.mxu1 %v8226_v7 }
 0x7ca   : > { %7903 = vmatprep.mubr.msk.bf16.mxu0 %vm9798_vm1, %v8231_v10  ;;  %7907 = vmatprep.subr.bf16.mxu0 %v8231_v10 }
 0x7cf   : > { %7450 = vmatmul.mubr.msk.bf16.vlgmr.msra.gmra.mrb[128].mxu1 %vm9830_vm9, %v7449_v33 }
 0x7d0   : > { %7904 = vmatmul.mubr.msk.bf16.vlgmr.msra.gmra.mrb[100].mxu0 %vm9825_vm3, %v7449_v33  ;;  %6219 = vmatprep.mubr.bf16.mxu1 %v8226_v7 }
 0x7d1   : > { %7909 = vmatprep.mubr.msk.bf16.mxu0 %vm9798_vm1, %v8231_v10 }
 0x862   : > { %v5285_v37 = vpop.f32.mrb[96].mxu1 }
 0x863   : > { %v5287_v25 = vpop.f32.mrb[97].mxu1  ;;  %v5326_v42 = vpop.f32.mrb[68].mxu0 }
 0x864   : > { %v5289_v43 = vpop.f32.mrb[98].mxu1  ;;  %v7857_v47 = vpop.f32.mrb[69].mxu0 }
 0x865   : > { %v5290_v49 = vpop.f32.mrb[99].mxu1  ;;  %v5329_v46 = vpop.f32.mrb[70].mxu0 }
 0x866   : > { %v7858_v51 = vpop.f32.mrb[71].mxu0 }
 0x86a   : > { %v5383_v52 = vpop.f32.mrb[100].mxu1 }
 0x86b   : > { %v5384_v54 = vadd.f32 %v5383_v52, %v5285_v37  ;;  %v5385_v56 = vpop.f32.mrb[101].mxu1  ;;  %v5424_v57 = vpop.f32.mrb[72].mxu0 }
 0x86c   : > { %v5386_v58 = vadd.f32 %v5385_v56, %v5287_v25  ;;  %v5425_v62 = vadd.f32 %v5424_v57, %v5326_v42  ;;  %v5387_v63 = vpop.f32.mrb[102].mxu1  ;;  %v7863_v0 = vpop.f32.mrb[73].mxu0 }
 0x86d   : > { %v5388_v35 = vpop.f32.mrb[103].mxu1  ;;  %v5427_v40 = vpop.f32.mrb[74].mxu0 }
 0x86e   : > { %v7864_v48 = vpop.f32.mrb[75].mxu0 }
 0x872   : > { %v5483_v60 = vpop.f32.mrb[104].mxu1 }
 0x873   : > { %v5530_v3 = vadd.f32 %v5483_v60, %v5384_v54  ;;  %v5485_v4 = vpop.f32.mrb[105].mxu1  ;;  %v5524_v38 = vpop.f32.mrb[76].mxu0 }
 0x874   : > { %v5531_v45 = vadd.f32 %v5485_v4, %v5386_v58  ;;  %v5532_v5 = vadd.f32 %v5524_v38, %v5425_v62  ;;  %v5487_v59 = vpop.f32.mrb[106].mxu1  ;;  %v7869_v6 = vpop.f32.mrb[77].mxu0 }
 0x875   : > { %v5488_v8 = vpop.f32.mrb[107].mxu1  ;;  %v5527_v11 = vpop.f32.mrb[78].mxu0 }
 0x876   : > { %v7870_v13 = vpop.f32.mrb[79].mxu0  ;;  %v6129_v8 = vpop.permute.xlu0 %6128 }
 0x87a   : > { %v5586_v15 = vpop.f32.mrb[108].mxu1 }
 0x87b   : > { %v5633_v16 = vadd.f32 %v5586_v15, %v5530_v3  ;;  %v5588_v18 = vpop.f32.mrb[109].mxu1  ;;  %v5627_v20 = vpop.f32.mrb[80].mxu0 }
 0x87c   : > { %v5634_v21 = vadd.f32 %v5588_v18, %v5531_v45  ;;  %v5635_v61 = vadd.f32 %v5627_v20, %v5532_v5  ;;  %v5590_v9 = vpop.f32.mrb[110].mxu1  ;;  %v7875_v22 = vpop.f32.mrb[81].mxu0 }
 0x87d   : > { %v5591_v2 = vpop.f32.mrb[111].mxu1  ;;  %v5630_v23 = vpop.f32.mrb[82].mxu0 }
 0x87e   : > { %v7876_v14 = vpop.f32.mrb[83].mxu0 }
 0x882   : > { %v5675_v19 = vpop.f32.mrb[112].mxu1 }
 0x883   : > { %v5722_v24 = vadd.f32 %v5675_v19, %v5633_v16  ;;  %v5677_v12 = vpop.f32.mrb[113].mxu1  ;;  %v5716_v26 = vpop.f32.mrb[84].mxu0 }
 0x884   : > { %v5723_v50 = vadd.f32 %v5677_v12, %v5634_v21  ;;  %v5724_v55 = vadd.f32 %v5716_v26, %v5635_v61  ;;  %v5679_v27 = vpop.f32.mrb[114].mxu1  ;;  %v7881_v39 = vpop.f32.mrb[85].mxu0 }
 0x885   : > { %v5680_v53 = vpop.f32.mrb[115].mxu1  ;;  %v5719_v28 = vpop.f32.mrb[86].mxu0 }
 0x886   : > { %v7882_v29 = vpop.f32.mrb[87].mxu0 }
 0x88a   : > { %v5775_v30 = vpop.f32.mrb[116].mxu1 }
 0x88b   : > { %v5822_v1 = vadd.f32 %v5775_v30, %v5722_v24  ;;  %v5777_v31 = vpop.f32.mrb[117].mxu1  ;;  %v5816_v32 = vpop.f32.mrb[88].mxu0 }
 0x88c   : > { %v5823_v33 = vadd.f32 %v5777_v31, %v5723_v50  ;;  %v5824_v34 = vadd.f32 %v5816_v32, %v5724_v55  ;;  %v5779_v37 = vpop.f32.mrb[118].mxu1  ;;  %v7887_v25 = vpop.f32.mrb[89].mxu0 }
 0x88d   : > { %v5780_v42 = vpop.f32.mrb[119].mxu1  ;;  %v5819_v43 = vpop.f32.mrb[90].mxu0  ;;  %v7452_v37 = vld [vmem:[%s9776_s7 + $0x2] sm:$0x3] }
 0x88e   : > { %v7888_v47 = vpop.f32.mrb[91].mxu0 }
 0x892   : > { %v5875_v49 = vpop.f32.mrb[120].mxu1 }
 0x893   : > { %v5922_v46 = vadd.f32 %v5875_v49, %v5822_v1  ;;  %v5877_v51 = vpop.f32.mrb[121].mxu1  ;;  %v5916_v52 = vpop.f32.mrb[92].mxu0 }
 0x894   : > { %v5923_v54 = vadd.f32 %v5877_v51, %v5823_v33  ;;  %v5924_v56 = vadd.f32 %v5916_v52, %v5824_v34  ;;  %v5879_v57 = vpop.f32.mrb[122].mxu1  ;;  %v7893_v58 = vpop.f32.mrb[93].mxu0 }
 0x895   : > { %v5880_v62 = vpop.f32.mrb[123].mxu1  ;;  %v5919_v63 = vpop.f32.mrb[94].mxu0  ;;  %v6153_v57 = vld [vmem:[%s9776_s7] sm:$0x3] }
 0x896   : > { %v7894_v0 = vpop.f32.mrb[95].mxu0 }
 0x89a   : > { %v5975_v35 = vpop.f32.mrb[124].mxu1 }
 0x89b   : > { %v6022_v40 = vadd.f32 %v5975_v35, %v5922_v46  ;;  %v5977_v48 = vpop.f32.mrb[125].mxu1  ;;  %v6016_v60 = vpop.f32.mrb[96].mxu0 }
 0x89c   : > { %v6023_v3 = vadd.f32 %v5977_v48, %v5923_v54  ;;  %v6024_v4 = vadd.f32 %v6016_v60, %v5924_v56  ;;  %v5979_v38 = vpop.f32.mrb[126].mxu1  ;;  %v7899_v45 = vpop.f32.mrb[97].mxu0 }
 0x89d   : > { %v5980_v5 = vpop.f32.mrb[127].mxu1  ;;  %v6019_v59 = vpop.f32.mrb[98].mxu0 }
 0x89e   : > { %v7900_v6 = vpop.f32.mrb[99].mxu0 }
 0x8a2   : > { %v6075_v11 = vpop.f32.mrb[128].mxu1 }
 0x8a3   : > { %v6122_v13 = vadd.f32 %v6075_v11, %v6022_v40  ;;  %v6077_v15 = vpop.f32.mrb[129].mxu1  ;;  %v6116_v16 = vpop.f32.mrb[100].mxu0 }
 0x8a4   : > { %v6123_v18 = vadd.f32 %v6077_v15, %v6023_v3  ;;  %v6124_v20 = vadd.f32 %v6116_v16, %v6024_v4  ;;  %v6079_v21 = vpop.f32.mrb[130].mxu1  ;;  %v7905_v61 = vpop.f32.mrb[101].mxu0  ;;  %v7459_v4 = vld [vmem:[%s9776_s7 + $0x4] sm:$0x3]  ;;  %v7463_v16 = vld [vmem:[%s9776_s7 + $0x6] sm:$0x3] }
 0x8a5   : > { %v6131_v9 = vadd.f32 %v6129_v8, %v6122_v13  ;;  %v6080_v22 = vpop.f32.mrb[131].mxu1  ;;  %v6119_v2 = vpop.f32.mrb[102].mxu0 }
 0x8a6   : > { %v6132_v23 = vadd.f32 %v6129_v8, %v6123_v18  ;;  %v6133_v14 = vadd.f32 %v6129_v8, %v6124_v20  ;;  %v7906_v19 = vpop.f32.mrb[103].mxu0 }
 0x8a7   : > { %vm6134_vm11 = vcmp.ge.f32.partialorder %v6131_v9, 0.0  ;;  %v6137_v24 = vmul.f32 0.01, %v6131_v9 }
 0x8a8   : > { %vm6135_vm10 = vcmp.ge.f32.partialorder %v6132_v23, 0.0  ;;  %v6138_v12 = vmul.f32 0.01, %v6132_v23  ;;  %vm6136_vm5 = vcmp.ge.f32.partialorder %v6133_v14, 0.0  ;;  %v6139_v26 = vmul.f32 0.01, %v6133_v14 }
 0x8a9   : > { %v6140_v50 = vsel %vm6134_vm11, %v6131_v9, %v6137_v24  ;;  %v7467_v24 = vld [vmem:[%s9776_s7 + $0x8] sm:$0x3] }
 0x8aa   : > { %v6143_v55 = vsel %vm1512_vm14, %v6140_v50, 0.0  ;;  %v6141_v27 = vsel %vm6135_vm10, %v6132_v23, %v6138_v12  ;;  %v6142_v39 = vsel %vm6136_vm5, %v6133_v14, %v6139_v26  ;;  %vm9831_vm14 = vcmask 1043456  }
 0x8ab   : > { %v6144_v53 = vsel %vm1513_vm0, %v6141_v27, 0.0  ;;  %v6145_v28 = vsel %vm1514_vm13, %v6142_v39, 0.0  ;;  %v9573_v29 = vpack.c.bf16 %v6143_v55, %v6143_v55  ;;  %vm9832_vm0 = vmmov %vm9831_vm14  ;;  %vm9833_vm13 = vcmask 64512  }
 0x8ac   : > { %6148 = vst.msk [vmem:[#allocation2 + $0x18] sm:$0xff] %vm1520_vm15, %v6145_v28  ;;  %v9576_v30 = vpack.c.bf16 %v6144_v53, %v6144_v53  ;;  %vm9834_vm15 = vmmov %vm9832_vm0  ;;  %v7471_v28 = vld [vmem:[%s9776_s7 + $0xa] sm:$0x3] }
 0x8ad   : > { %6166 = vrot.lane.b32.xlu0 %v9573_v29, %s8225_s24  ;;  %vm9835_vm12 = vmmov %vm9832_vm0 }
 0x8ae   : > { %6168 = vrot.lane.b32.xlu1 %v9576_v30, %s8225_s24  ;;  %vm9836_vm9 = vmmov %vm9833_vm13 }
 0x8af   : > { %vm9837_vm3 = vmmov %vm9832_vm0 }
 0x8b0   : > { %vm9839_vm11 = vmmov %vm9836_vm9 }
 0x8b1   : > { %vm9840_vm10 = vmmov %vm9832_vm0 }
 0x8b2   : > { %6268 = vrot.lane.b32.xlu1 %v9563_v36, %s8227_s25  ;;  %vm9841_vm5 = vmmov %vm9836_vm9 }
 0x8b3   : > { %v6152_v41 = vld [vmem:[#allocation2 + $0x18] sm:$0xff] }
 0x8b4   : > { %v9584_v44 = vpack.c.bf16 %v6152_v41, %v6152_v41 }
 0x8b6   : > { %6170 = vrot.lane.b32.xlu0 %v9584_v44, %s8225_s24  ;;  %6272 = vrot.lane.b32.xlu1 %v9576_v30, %s8227_s25 }
 0x8ba   : > { %6270 = vrot.lane.b32.xlu0 %v9573_v29, %s8227_s25  ;;  %6374 = vrot.lane.b32.xlu1 %v9563_v36, %s8228_s26 }
 0x8be   : > { %6274 = vrot.lane.b32.xlu0 %v9584_v44, %s8227_s25  ;;  %6378 = vrot.lane.b32.xlu1 %v9576_v30, %s8228_s26 }
 0x8c2   : > { %6376 = vrot.lane.b32.xlu0 %v9573_v29, %s8228_s26  ;;  %6483 = vrot.lane.b32.xlu1 %v9563_v36, %s8229_s27  ;;  %v6165_v36 = vpop.permute.xlu1 %6164 }
 0x8c6   : > { %6380 = vrot.lane.b32.xlu0 %v9584_v44, %s8228_s26  ;;  %6487 = vrot.lane.b32.xlu1 %v9576_v30, %s8229_s27 }
 0x8ca   : > { %6485 = vrot.lane.b32.xlu0 %v9573_v29, %s8229_s27  ;;  %6690 = vrot.lane.b32.xlu1 %v9573_v29, %s8230_s28 }
 0x8ce   : > { %6489 = vrot.lane.b32.xlu0 %v9584_v44, %s8229_s27  ;;  %6694 = vrot.lane.b32.xlu1 %v9584_v44, %s8230_s28 }
 0x8d2   : > { %6692 = vrot.lane.b32.xlu0 %v9576_v30, %s8230_s28  ;;  %6798 = vrot.lane.b32.xlu1 %v9576_v30, %s8232_s30 }
 0x8d6   : > { %6796 = vrot.lane.b32.xlu0 %v9573_v29, %s8232_s30  ;;  %6902 = vrot.lane.b32.xlu1 %v9573_v29, %s8234_s15 }
 0x8da   : > { %6800 = vrot.lane.b32.xlu0 %v9584_v44, %s8232_s30  ;;  %6906 = vrot.lane.b32.xlu1 %v9584_v44, %s8234_s15 }
 0x8de   : > { %6904 = vrot.lane.b32.xlu0 %v9576_v30, %s8234_s15  ;;  %7010 = vrot.lane.b32.xlu1 %v9576_v30, %s8235_s16 }
 0x8e2   : > { %7008 = vrot.lane.b32.xlu0 %v9573_v29, %s8235_s16  ;;  %7115 = vperm.xlu1 %8143, %v7112_v17  }
 0x8e6   : > { %7012 = vrot.lane.b32.xlu0 %v9584_v44, %s8235_s16 }
 0x91f   : > { %v6167_v1 = vpop.permute.xlu0 %6166 }
 0x920   : > { %v6172_v31 = vsel %vm531_vm2, %v6165_v36, %v6167_v1  ;;  %v6169_v32 = vpop.permute.xlu1 %6168 }
 0x921   : > { %v6179_v33 = vsel %vm9831_vm14, %v6172_v31, 0  ;;  %v6173_v34 = vsel %vm531_vm2, %v6167_v1, %v6169_v32  ;;  %vm9843_vm14 = vmmov %vm9832_vm0  ;;  %v7475_v31 = vld [vmem:[%s9776_s7 + $0xc] sm:$0x3] }
 0x922   : > { %7453 = vmatprep.subr.msk.bf16.mxu1 %vm9832_vm0, %v6173_v34 }
 0x923   : > { %6188 = vmatpush1.bf16.msra.mxu1 %v6179_v33 }
 0x924   : > { %v6269_v25 = vpop.permute.xlu1 %6268 }
 0x926   : > { %7454 = vmatmul.mubr.msk.bf16.vlgmr.msra.gmra.mrb[132].mxu1 %vm9833_vm13, %v7452_v37 }
 0x927   : > { %6323 = vmatprep.mubr.bf16.mxu1 %v8226_v7 }
 0x928   : > { %v6171_v42 = vpop.permute.xlu0 %6170  ;;  %v6273_v43 = vpop.permute.xlu1 %6272 }
 0x929   : > { %v6174_v47 = vsel %vm531_vm2, %v6169_v32, %v6171_v42  ;;  %vm9838_vm2 = vmmov %vm9832_vm0 }
 0x92a   : > { %v6185_v49 = vsel %vm9834_vm15, %v6174_v47, 0  ;;  %vm9845_vm13 = vmmov %vm9838_vm2  ;;  %v6596_v9 = vsel %vm9838_vm2, %v9573_v29, 0 }
 0x92b   : > { %7908 = vmatpush3.bf16.msra.mxu0 %v6185_v49 }
 0x92c   : > { %v6271_v46 = vpop.permute.xlu0 %6270  ;;  %v6375_v51 = vpop.permute.xlu1 %6374  ;;  %7913 = vmatprep.subr.bf16.mxu0 %v8231_v10 }
 0x92d   : > { %v6276_v52 = vsel %vm638_vm4, %v6269_v25, %v6271_v46  ;;  %v6277_v54 = vsel %vm638_vm4, %v6271_v46, %v6273_v43  ;;  %v7483_v46 = vld [vmem:[%s9776_s7 + $0x10] sm:$0x3] }
 0x92e   : > { %v6283_v56 = vsel %vm9835_vm12, %v6276_v52, 0  ;;  %7910 = vmatmul.mubr.msk.bf16.vlgmr.msra.gmra.mrb[104].mxu0 %vm9836_vm9, %v7452_v37  ;;  %7456 = vmatprep.subr.msk.bf16.mxu1 %vm9837_vm3, %v6277_v54  ;;  %vm9848_vm12 = vmmov %vm9838_vm2 }
 0x92f   : > { %6292 = vmatpush1.bf16.msra.mxu1 %v6283_v56  ;;  %7915 = vmatprep.mubr.msk.bf16.mxu0 %vm9798_vm1, %v8231_v10  ;;  %vm9849_vm9 = vmmov %vm9838_vm2 }
 0x930   : > { %v6275_v58 = vpop.permute.xlu0 %6274  ;;  %v6379_v62 = vpop.permute.xlu1 %6378 }
 0x931   : > { %v6278_v63 = vsel %vm638_vm4, %v6273_v43, %v6275_v58  ;;  %vm9842_vm4 = vmmov %vm9832_vm0  ;;  %v7479_v43 = vld [vmem:[%s9776_s7 + $0xe] sm:$0x3] }
 0x932   : > { %v6289_v0 = vsel %vm9838_vm2, %v6278_v63, 0  ;;  %7457 = vmatmul.mubr.msk.bf16.vlgmr.msra.gmra.mrb[136].mxu1 %vm9839_vm11, %v6153_v57  ;;  %vm9844_vm0 = vmmov %vm9841_vm5 }
 0x933   : > { %7914 = vmatpush3.bf16.msra.mxu0 %v6289_v0  ;;  %6429 = vmatprep.mubr.bf16.mxu1 %v8226_v7  ;;  %vm9846_vm15 = vmmov %vm9844_vm0 }
 0x934   : > { %v6377_v35 = vpop.permute.xlu0 %6376  ;;  %v6484_v40 = vpop.permute.xlu1 %6483  ;;  %7919 = vmatprep.subr.bf16.mxu0 %v8231_v10  ;;  %vm9850_vm3 = vmmov %vm9844_vm0 }
 0x935   : > { %v6382_v48 = vsel %vm745_vm6, %v6375_v51, %v6377_v35  ;;  %v6383_v60 = vsel %vm745_vm6, %v6377_v35, %v6379_v62  ;;  %vm9851_vm11 = vmmov %vm9844_vm0 }
 0x936   : > { %v6389_v3 = vsel %vm9840_vm10, %v6382_v48, 0  ;;  %7916 = vmatmul.mubr.msk.bf16.vlgmr.msra.gmra.mrb[108].mxu0 %vm9841_vm5, %v6153_v57  ;;  %7460 = vmatprep.subr.msk.bf16.mxu1 %vm9842_vm4, %v6383_v60  ;;  %vm9853_vm10 = vmmov %vm9838_vm2 }
 0x937   : > { %6398 = vmatpush1.bf16.msra.mxu1 %v6389_v3  ;;  %7921 = vmatprep.mubr.msk.bf16.mxu0 %vm9798_vm1, %v8231_v10  ;;  %vm9854_vm5 = vmmov %vm9838_vm2 }
 0x938   : > { %v6381_v38 = vpop.permute.xlu0 %6380  ;;  %v6488_v45 = vpop.permute.xlu1 %6487  ;;  %vm9855_vm4 = vmmov %vm9844_vm0 }
 0x939   : > { %v6384_v5 = vsel %vm745_vm6, %v6379_v62, %v6381_v38  ;;  %vm9847_vm6 = vmmov %vm9838_vm2 }
 0x93a   : > { %v6395_v59 = vsel %vm9843_vm14, %v6384_v5, 0  ;;  %7461 = vmatmul.mubr.msk.bf16.vlgmr.msra.gmra.mrb[140].mxu1 %vm9844_vm0, %v7459_v4  ;;  %vm9857_vm14 = vmmov %vm9838_vm2 }
 0x93b   : > { %7920 = vmatpush3.bf16.msra.mxu0 %v6395_v59  ;;  %6538 = vmatprep.mubr.bf16.mxu1 %v8226_v7 }
 0x93c   : > { %v6486_v6 = vpop.permute.xlu0 %6485  ;;  %v6691_v8 = vpop.permute.xlu1 %6690  ;;  %7925 = vmatprep.subr.bf16.mxu0 %v8231_v10 }
 0x93d   : > { %v6491_v11 = vsel %vm855_vm7, %v6484_v40, %v6486_v6  ;;  %v6492_v13 = vsel %vm855_vm7, %v6486_v6, %v6488_v45 }
 0x93e   : > { %v6498_v15 = vsel %vm9845_vm13, %v6491_v11, 0  ;;  %7922 = vmatmul.mubr.msk.bf16.vlgmr.msra.gmra.mrb[112].mxu0 %vm9846_vm15, %v7459_v4  ;;  %7464 = vmatprep.subr.msk.bf16.mxu1 %vm9847_vm6, %v6492_v13  ;;  %vm9858_vm13 = vmmov %vm9838_vm2  ;;  %vm9860_vm6 = vcmask 900096  }
 0x93f   : > { %6507 = vmatpush1.bf16.msra.mxu1 %v6498_v15  ;;  %7927 = vmatprep.mubr.msk.bf16.mxu0 %vm9798_vm1, %v8231_v10 }
 0x940   : > { %v6490_v18 = vpop.permute.xlu0 %6489  ;;  %7468 = vmatprep.subr.msk.bf16.mxu1 %vm9848_vm12, %v9576_v30  ;;  %v6695_v20 = vpop.permute.xlu1 %6694  ;;  %vm9861_vm12 = vmmov %vm9838_vm2 }
 0x941   : > { %v6493_v21 = vsel %vm855_vm7, %v6488_v45, %v6490_v18  ;;  %vm9852_vm7 = vmmov %vm9838_vm2  ;;  %v6708_v39 = vsel %vm9857_vm14, %v6695_v20, 0 }
 0x942   : > { %v6504_v61 = vsel %vm9849_vm9, %v6493_v21, 0  ;;  %7465 = vmatmul.mubr.msk.bf16.vlgmr.msra.gmra.mrb[144].mxu1 %vm9850_vm3, %v7463_v16  ;;  %v6602_v14 = vsel %vm9852_vm7, %v9584_v44, 0  ;;  %vm9862_vm9 = vmmov %vm9844_vm0 }
 0x943   : > { %7926 = vmatpush3.bf16.msra.mxu0 %v6504_v61  ;;  %6605 = vmatpush1.bf16.msra.mxu1 %v6596_v9  ;;  %vm9863_vm3 = vmmov %vm9838_vm2 }
 0x944   : > { %v6693_v22 = vpop.permute.xlu0 %6692  ;;  %7931 = vmatprep.subr.bf16.mxu0 %v8231_v10  ;;  %v6799_v2 = vpop.permute.xlu1 %6798  ;;  %6636 = vmatprep.mubr.bf16.mxu1 %v8226_v7  ;;  %vm9865_vm7 = vmmov %vm9860_vm6 }
 0x945   : > { %v6697_v23 = vsel %vm1061_vm8, %v6693_v22, %v6695_v20  ;;  %v6696_v19 = vsel %vm1061_vm8, %v6691_v8, %v6693_v22  ;;  %vm9856_vm8 = vcmask 908288   ;;  %vm9870_vm14 = vmmov %vm9838_vm2 }
 0x946   : > { %7928 = vmatmul.mubr.msk.bf16.vlgmr.msra.gmra.mrb[116].mxu0 %vm9851_vm11, %v7463_v16  ;;  %7472 = vmatprep.subr.msk.bf16.mxu1 %vm9853_vm10, %v6697_v23  ;;  %v6702_v26 = vsel %vm9854_vm5, %v6696_v19, 0  ;;  %vm9859_vm15 = vmmov %vm9856_vm8  ;;  %vm9866_vm10 = vcmask 891904  }
 0x947   : > { %7932 = vmatpush3.bf16.msra.mxu0 %v6602_v14  ;;  %7933 = vmatprep.mubr.msk.bf16.mxu0 %vm9798_vm1, %v8231_v10  ;;  %vm9864_vm11 = vmmov %vm9844_vm0 }
 0x948   : > { %v6797_v12 = vpop.permute.xlu0 %6796  ;;  %7937 = vmatprep.subr.bf16.mxu0 %v8231_v10  ;;  %v6903_v50 = vpop.permute.xlu1 %6902  ;;  %vm9867_vm5 = vmmov %vm9838_vm2 }
 0x949   : > { %v6802_v53 = vsel %vm9859_vm15, %v6797_v12, %v6799_v2  ;;  %vm9872_vm15 = vmmov %vm9838_vm2 }
 0x94a   : > { %7469 = vmatmul.mubr.msk.bf16.vlgmr.msra.gmra.mrb[148].mxu1 %vm9855_vm4, %v7467_v24  ;;  %v6808_v44 = vsel %vm9861_vm12, %v6802_v53, 0  ;;  %vm9868_vm4 = vmmov %vm9844_vm0 }
 0x94b   : > { %6711 = vmatpush1.bf16.msra.mxu1 %v6702_v26  ;;  %6742 = vmatprep.mubr.bf16.mxu1 %v8226_v7  ;;  %vm9874_vm12 = vmmov %vm9838_vm2 }
 0x94c   : > { %v6801_v55 = vpop.permute.xlu0 %6800  ;;  %v6907_v30 = vpop.permute.xlu1 %6906 }
 0x94d   : > { %v6803_v27 = vsel %vm9856_vm8, %v6799_v2, %v6801_v55  ;;  %v6814_v36 = vsel %vm9838_vm2, %v6801_v55, 0  ;;  %vm9869_vm8 = vmmov %vm9838_vm2  ;;  %v6920_v25 = vsel %vm9870_vm14, %v6907_v30, 0 }
 0x94e   : > { %7934 = vmatmul.mubr.msk.bf16.vlgmr.msra.gmra.mrb[120].mxu0 %vm9844_vm0, %v7467_v24  ;;  %7476 = vmatprep.subr.msk.bf16.mxu1 %vm9858_vm13, %v6803_v27  ;;  %vm9871_vm13 = vmmov %vm9866_vm10 }
 0x94f   : > { %7938 = vmatpush3.bf16.msra.mxu0 %v6708_v39  ;;  %7939 = vmatprep.mubr.msk.bf16.mxu0 %vm9798_vm1, %v8231_v10  ;;  %vm9877_vm2 = vmmov %vm9844_vm0 }
 0x950   : > { %v6905_v29 = vpop.permute.xlu0 %6904  ;;  %7943 = vmatprep.subr.bf16.mxu0 %v8231_v10  ;;  %v7011_v32 = vpop.permute.xlu1 %7010 }
 0x951   : > { %v6909_v41 = vsel %vm9860_vm6, %v6905_v29, %v6907_v30  ;;  %v6908_v1 = vsel %vm9865_vm7, %v6903_v50, %v6905_v29  ;;  %vm9873_vm6 = vmmov %vm9844_vm0 }
 0x952   : > { %7473 = vmatmul.mubr.msk.bf16.vlgmr.msra.gmra.mrb[152].mxu1 %vm9862_vm9, %v7471_v28  ;;  %v6914_v37 = vsel %vm9867_vm5, %v6908_v1, 0  ;;  %vm9875_vm9 = vmmov %vm9844_vm0 }
 0x953   : > { %6817 = vmatpush1.bf16.msra.mxu1 %v6808_v44  ;;  %6848 = vmatprep.mubr.bf16.mxu1 %v8226_v7 }
 0x954   : > { %v7009_v17 = vpop.permute.xlu0 %7008  ;;  %7480 = vmatprep.subr.msk.bf16.mxu1 %vm9863_vm3, %v6909_v41  ;;  %vm9876_vm3 = vmmov %vm9844_vm0 }
 0x955   : > { %v7014_v42 = vsel %vm9871_vm13, %v7009_v17, %v7011_v32 }
 0x956   : > { %7940 = vmatmul.mubr.msk.bf16.vlgmr.msra.gmra.mrb[124].mxu0 %vm9864_vm11, %v7471_v28  ;;  %v7020_v47 = vsel %vm9872_vm15, %v7014_v42, 0 }
 0x957   : > { %7944 = vmatpush3.bf16.msra.mxu0 %v6814_v36  ;;  %7945 = vmatprep.mubr.msk.bf16.mxu0 %vm9798_vm1, %v8231_v10 }
 0x958   : > { %v7013_v33 = vpop.permute.xlu0 %7012  ;;  %7949 = vmatprep.subr.bf16.mxu0 %v8231_v10 }
 0x959   : > { %v7015_v34 = vsel %vm9866_vm10, %v7011_v32, %v7013_v33  ;;  %v7026_v49 = vsel %vm9874_vm12, %v7013_v33, 0 }
 0x95a   : > { %7477 = vmatmul.mubr.msk.bf16.vlgmr.msra.gmra.mrb[156].mxu1 %vm9868_vm4, %v7475_v31 }
 0x95b   : > { %6923 = vmatpush1.bf16.msra.mxu1 %v6914_v37  ;;  %6954 = vmatprep.mubr.bf16.mxu1 %v8226_v7 }
 0x95c   : > { %7484 = vmatprep.subr.msk.bf16.mxu1 %vm9869_vm8, %v7015_v34 }
 0x95e   : > { %7946 = vmatmul.mubr.msk.bf16.vlgmr.msra.gmra.mrb[128].mxu0 %vm9844_vm0, %v7475_v31 }
 0x95f   : > { %7950 = vmatpush3.bf16.msra.mxu0 %v6920_v25  ;;  %7951 = vmatprep.mubr.msk.bf16.mxu0 %vm9798_vm1, %v8231_v10 }
 0x960   : > { %7955 = vmatprep.subr.bf16.mxu0 %v8231_v10 }
 0x962   : > { %7481 = vmatmul.mubr.msk.bf16.vlgmr.msra.gmra.mrb[160].mxu1 %vm9873_vm6, %v7479_v43 }
 0x963   : > { %7029 = vmatpush1.bf16.msra.mxu1 %v7020_v47  ;;  %7060 = vmatprep.mubr.bf16.mxu1 %v8226_v7 }
 0x966   : > { %7952 = vmatmul.mubr.msk.bf16.vlgmr.msra.gmra.mrb[132].mxu0 %vm9875_vm9, %v7479_v43 }
 0x967   : > { %7956 = vmatpush3.bf16.msra.mxu0 %v7026_v49  ;;  %7957 = vmatprep.mubr.msk.bf16.mxu0 %vm9798_vm1, %v8231_v10  ;;  %vm7144_vm1 = vcmask 550912  }
 0x96a   : > { %7485 = vmatmul.mubr.msk.bf16.vlgmr.msra.gmra.mrb[164].mxu1 %vm9876_vm3, %v7483_v46 }
 0x96e   : > { %7958 = vmatmul.mubr.msk.bf16.vlgmr.msra.gmra.mrb[136].mxu0 %vm9877_vm2, %v7483_v46 }
 0x9f9   : > { %v6221_v51 = vpop.f32.mrb[132].mxu1 }
 0x9fa   : > { %v6223_v52 = vpop.f32.mrb[133].mxu1 }
 0x9fb   : > { %v6225_v54 = vpop.f32.mrb[134].mxu1 }
 0x9fc   : > { %v6226_v7 = vpop.f32.mrb[135].mxu1 }
 0xa01   : > { %v6262_v56 = vpop.f32.mrb[104].mxu0 }
 0xa02   : > { %v7911_v57 = vpop.f32.mrb[105].mxu0 }
 0xa03   : > { %v6265_v58 = vpop.f32.mrb[106].mxu0 }
 0xa04   : > { %v7912_v62 = vpop.f32.mrb[107].mxu0 }
 0xa05   : > { %v6325_v63 = vpop.f32.mrb[136].mxu1 }
 0xa06   : > { %v6326_v0 = vadd.f32 %v6325_v63, %v6221_v51  ;;  %v6327_v35 = vpop.f32.mrb[137].mxu1 }
 0xa07   : > { %v6328_v40 = vadd.f32 %v6327_v35, %v6223_v52  ;;  %v6329_v48 = vpop.f32.mrb[138].mxu1 }
 0xa08   : > { %v6330_v60 = vpop.f32.mrb[139].mxu1 }
 0xa09   : > { %v6366_v3 = vpop.f32.mrb[108].mxu0 }
 0xa0a   : > { %v6367_v10 = vadd.f32 %v6366_v3, %v6262_v56  ;;  %v7917_v4 = vpop.f32.mrb[109].mxu0 }
 0xa0b   : > { %v6369_v38 = vpop.f32.mrb[110].mxu0 }
 0xa0c   : > { %v7918_v45 = vpop.f32.mrb[111].mxu0 }
 0xa0d   : > { %v6431_v5 = vpop.f32.mrb[140].mxu1 }
 0xa0e   : > { %v6478_v59 = vadd.f32 %v6431_v5, %v6326_v0  ;;  %v6433_v6 = vpop.f32.mrb[141].mxu1 }
 0xa0f   : > { %v6479_v8 = vadd.f32 %v6433_v6, %v6328_v40  ;;  %v6435_v11 = vpop.f32.mrb[142].mxu1 }
 0xa10   : > { %v6436_v13 = vpop.f32.mrb[143].mxu1 }
 0xa11   : > { %v6472_v15 = vpop.f32.mrb[112].mxu0  ;;  %v7116_v13 = vpop.permute.xlu1 %7115 }
 0xa12   : > { %v6480_v16 = vadd.f32 %v6472_v15, %v6367_v10  ;;  %v7923_v18 = vpop.f32.mrb[113].mxu0 }
 0xa13   : > { %v6475_v20 = vpop.f32.mrb[114].mxu0 }
 0xa14   : > { %v7924_v21 = vpop.f32.mrb[115].mxu0 }
 0xa15   : > { %v6540_v61 = vpop.f32.mrb[144].mxu1 }
 0xa16   : > { %v6587_v9 = vadd.f32 %v6540_v61, %v6478_v59  ;;  %v6542_v22 = vpop.f32.mrb[145].mxu1 }
 0xa17   : > { %v6588_v2 = vadd.f32 %v6542_v22, %v6479_v8  ;;  %v6544_v23 = vpop.f32.mrb[146].mxu1 }
 0xa18   : > { %v6545_v14 = vpop.f32.mrb[147].mxu1 }
 0xa19   : > { %v6581_v19 = vpop.f32.mrb[116].mxu0 }
 0xa1a   : > { %v6589_v24 = vadd.f32 %v6581_v19, %v6480_v16  ;;  %v7929_v12 = vpop.f32.mrb[117].mxu0 }
 0xa1b   : > { %v6584_v26 = vpop.f32.mrb[118].mxu0 }
 0xa1c   : > { %v7930_v50 = vpop.f32.mrb[119].mxu0 }
 0xa1d   : > { %v6638_v55 = vpop.f32.mrb[148].mxu1 }
 0xa1e   : > { %v6685_v27 = vadd.f32 %v6638_v55, %v6587_v9  ;;  %v6640_v39 = vpop.f32.mrb[149].mxu1 }
 0xa1f   : > { %v6686_v53 = vadd.f32 %v6640_v39, %v6588_v2  ;;  %v6642_v28 = vpop.f32.mrb[150].mxu1 }
 0xa20   : > { %v6643_v29 = vpop.f32.mrb[151].mxu1 }
 0xa21   : > { %v6679_v30 = vpop.f32.mrb[120].mxu0 }
 0xa22   : > { %v6687_v41 = vadd.f32 %v6679_v30, %v6589_v24  ;;  %v7935_v44 = vpop.f32.mrb[121].mxu0 }
 0xa23   : > { %v6682_v17 = vpop.f32.mrb[122].mxu0 }
 0xa24   : > { %v7936_v36 = vpop.f32.mrb[123].mxu0 }
 0xa25   : > { %v6744_v1 = vpop.f32.mrb[152].mxu1 }
 0xa26   : > { %v6791_v31 = vadd.f32 %v6744_v1, %v6685_v27  ;;  %v6746_v32 = vpop.f32.mrb[153].mxu1 }
 0xa27   : > { %v6792_v33 = vadd.f32 %v6746_v32, %v6686_v53  ;;  %v6748_v34 = vpop.f32.mrb[154].mxu1 }
 0xa28   : > { %v6749_v37 = vpop.f32.mrb[155].mxu1 }
 0xa29   : > { %v6785_v25 = vpop.f32.mrb[124].mxu0 }
 0xa2a   : > { %v6793_v42 = vadd.f32 %v6785_v25, %v6687_v41  ;;  %v7941_v43 = vpop.f32.mrb[125].mxu0 }
 0xa2b   : > { %v6788_v47 = vpop.f32.mrb[126].mxu0 }
 0xa2c   : > { %v7942_v49 = vpop.f32.mrb[127].mxu0 }
 0xa2d   : > { %v6850_v46 = vpop.f32.mrb[156].mxu1 }
 0xa2e   : > { %v6897_v51 = vadd.f32 %v6850_v46, %v6791_v31  ;;  %v6852_v52 = vpop.f32.mrb[157].mxu1 }
 0xa2f   : > { %v6898_v54 = vadd.f32 %v6852_v52, %v6792_v33  ;;  %v6854_v7 = vpop.f32.mrb[158].mxu1 }
 0xa30   : > { %v6855_v56 = vpop.f32.mrb[159].mxu1 }
 0xa31   : > { %v6891_v57 = vpop.f32.mrb[128].mxu0 }
 0xa32   : > { %v6899_v58 = vadd.f32 %v6891_v57, %v6793_v42  ;;  %v7947_v62 = vpop.f32.mrb[129].mxu0 }
 0xa33   : > { %v6894_v63 = vpop.f32.mrb[130].mxu0 }
 0xa34   : > { %v7948_v0 = vpop.f32.mrb[131].mxu0 }
 0xa35   : > { %v6956_v35 = vpop.f32.mrb[160].mxu1 }
 0xa36   : > { %v7003_v40 = vadd.f32 %v6956_v35, %v6897_v51  ;;  %v6958_v48 = vpop.f32.mrb[161].mxu1 }
 0xa37   : > { %v7004_v60 = vadd.f32 %v6958_v48, %v6898_v54  ;;  %v6960_v3 = vpop.f32.mrb[162].mxu1 }
 0xa38   : > { %v6961_v10 = vpop.f32.mrb[163].mxu1 }
 0xa39   : > { %v6997_v4 = vpop.f32.mrb[132].mxu0 }
 0xa3a   : > { %v7005_v38 = vadd.f32 %v6997_v4, %v6899_v58  ;;  %v7953_v45 = vpop.f32.mrb[133].mxu0 }
 0xa3b   : > { %v7000_v5 = vpop.f32.mrb[134].mxu0 }
 0xa3c   : > { %v7954_v59 = vpop.f32.mrb[135].mxu0 }
 0xa3d   : > { %v7062_v6 = vpop.f32.mrb[164].mxu1 }
 0xa3e   : > { %v7109_v8 = vadd.f32 %v7062_v6, %v7003_v40  ;;  %v7064_v11 = vpop.f32.mrb[165].mxu1 }
 0xa3f   : > { %v7110_v15 = vadd.f32 %v7064_v11, %v7004_v60  ;;  %v7066_v16 = vpop.f32.mrb[166].mxu1 }
 0xa40   : > { %v7118_v18 = vadd.f32 %v7116_v13, %v7109_v8  ;;  %v7067_v20 = vpop.f32.mrb[167].mxu1 }
 0xa41   : > { %v7119_v21 = vadd.f32 %v7116_v13, %v7110_v15  ;;  %v7103_v61 = vpop.f32.mrb[136].mxu0 }
 0xa42   : > { %v7487_v9 = vmul.f32 -1.442695, %v7118_v18  ;;  %v7111_v22 = vadd.f32 %v7103_v61, %v7005_v38  ;;  %v7959_v2 = vpop.f32.mrb[137].mxu0 }
 0xa43   : > { %v7488_v23 = vmul.f32 -1.442695, %v7119_v21  ;;  %v7106_v14 = vpop.f32.mrb[138].mxu0 }
 0xa44   : > { %8180 = vpow2.f32 %v7487_v9  ;;  %v7120_v19 = vadd.f32 %v7116_v13, %v7111_v22  ;;  %v7960_v24 = vpop.f32.mrb[139].mxu0 }
 0xa45   : > { %8182 = vpow2.f32 %v7488_v23 }
 0xa46   : > { %v7489_v12 = vmul.f32 -1.442695, %v7120_v19 }
 0xa48   : > { %8184 = vpow2.f32 %v7489_v12 }
 0xa4e   : > { %v8181_v26 = vpop.eup %8180 }
 0xa4f   : > { %v8183_v50 = vpop.eup %8182  ;;  %v7130_v55 = vadd.f32 1.0, %v8181_v26 }
 0xa50   : > { %v7131_v27 = vadd.f32 1.0, %v8183_v50 }
 0xa51   : > { %8186 = vrcp.f32 %v7130_v55 }
 0xa52   : > { %v8185_v39 = vpop.eup %8184  ;;  %8188 = vrcp.f32 %v7131_v27 }
 0xa53   : > { %v7132_v53 = vadd.f32 1.0, %v8185_v39 }
 0xa55   : > { %8190 = vrcp.f32 %v7132_v53 }
 0xa5b   : > { %v8187_v28 = vpop.eup %8186 }
 0xa5c   : > { %v8189_v29 = vpop.eup %8188 }
 0xa5d   : > { %v7141_v30 = vcombine.low %v8187_v28, %v8189_v29 }
 0xa5f   : > { %v8191_v41 = vpop.eup %8190  ;;  %7143 = vst [vmem:[%s8327_s23] sm:$0x77] %v7141_v30 }
 0xa60   : > { %7145 = vst.msk [vmem:[%s8327_s23 + $0x8] sm:$0x7] %vm7144_vm1, %v8191_v41 }
 0xa61 PF: > { %s24_s29 = sadd.s32 1, %s8222_s29  }
 0xa62   : > { %p21_p5 = scmp.ge.s32.totalorder %s24_s29, 4  }
 0xa64   :  { %23 = sbr.rel (!%p21_p5) target bundleno = 1 (0x1), region = 158 }

</bundles_post_ra>
